<compile_context>
chip_gen: v7x
topology: tpu7x:2x2x1
jax: 0.10.0
libtpu: 0.0.40
codegen_flags: <defaults>
</compile_context>

<pallas_src>
import functools

import jax
import jax.numpy as jnp
from jax import lax
from jax.experimental import pallas as pl
from jax.experimental.pallas import tpu as pltpu

# ------------------------- configuration (small synthetic shapes) -------------------------
B = 2                 # batch
DIM = 32              # channels C
NUM_HEADS = 2         # decoder heads
NUM_ENC_HEADS = 1     # encoder heads
NUM_PARTS = 8         # N
PATCH_SIZE = 2        # spatial patch side -> pixels per patch = PATCH_SIZE**2
K_PIX = PATCH_SIZE * PATCH_SIZE
P_NUM = 4             # patch_num
FFN_EXP = 4

EPS = 1e-5
NEG_INF = -1e9


# ------------------------------------ in-kernel helpers ------------------------------------
def _ln(x, g, b):
    mu = jnp.mean(x, axis=-1, keepdims=True)
    xc = x - mu
    var = jnp.mean(xc * xc, axis=-1, keepdims=True)
    return xc * lax.rsqrt(var + EPS) * g + b


def _softmax(s):
    s = s - jnp.max(s, axis=-1, keepdims=True)
    p = jnp.exp(s)
    return p * pl.reciprocal(jnp.sum(p, axis=-1, keepdims=True), approx=True)


def _apply_pos(x, pos, num_heads):
    # Reference apply_pos adds the same per-head pos vector to every head ('(g c)' layout
    # is head-major), which equals concatenating num_heads copies along channels.
    if num_heads > 1:
        pos = jnp.concatenate([pos] * num_heads, axis=-1)
    return x + pos


def _mha(ap, q_in, k_in, v_in, num_heads, *, bias=None, rel_t=None):
    """AnyAttention core.  Weights are pre-transposed ([out, in]) and the softmax scale is
    pre-folded into wq_t at init, so projections are channel-major [C_out, rows] and heads
    are handled with leading-batch dot_generals (no Python head loop)."""
    c = q_in.shape[-1]
    nq = q_in.shape[0]
    nk = k_in.shape[0]
    qn = _ln(q_in, ap["gq"][...], ap["bq"][...])
    kn = _ln(k_in, ap["gk"][...], ap["bk"][...])
    vn = _ln(v_in, ap["gv"][...], ap["bv"][...])

    qh = lax.dot_general(ap["wq_t"][...], qn, (((1,), (1,)), ((), ())),
                         preferred_element_type=jnp.float32)            # [C, Nq] (scaled)
    kh = lax.dot_general(ap["wk_t"][...], kn, (((1,), (1,)), ((), ())),
                         preferred_element_type=jnp.float32)            # [C, Nk]
    vh = lax.dot_general(ap["wv_t"][...], vn, (((1,), (1,)), ((), ())),
                         preferred_element_type=jnp.float32)            # [C, Nk]

    if num_heads == 1:
        s = lax.dot_general(qh, kh, (((0,), (0,)), ((), ())),
                            preferred_element_type=jnp.float32)         # [Nq, Nk]
        if rel_t is not None:
            s = s + jnp.sum(qh[:, :, None] * rel_t, axis=0)
        if bias is not None:
            s = s + bias
        p = _softmax(s)
        oh = lax.dot_general(vh, p, (((1,), (1,)), ((), ())),
                             preferred_element_type=jnp.float32)        # [C, Nq]
    else:
        ch = c // num_heads
        qh = qh.reshape(num_heads, ch, nq)
        kh = kh.reshape(num_heads, ch, nk)
        vh = vh.reshape(num_heads, ch, nk)
        s = lax.dot_general(qh, kh, (((1,), (1,)), ((0,), (0,))),
                            preferred_element_type=jnp.float32)         # [G, Nq, Nk]
        if rel_t is not None:
            # rel_t: [ch, Nq, Nk]; bias[g,q,k] = sum_c q_scaled[g,c,q] * rel_t[c,q,k]
            s = s + jnp.sum(qh[:, :, :, None] * rel_t[None, :, :, :], axis=1)
        if bias is not None:
            s = s + bias                                                 # broadcast over G
        p = _softmax(s)
        oh = lax.dot_general(vh, p, (((2,), (2,)), ((0,), (0,))),
                             preferred_element_type=jnp.float32)        # [G, ch, Nq]
        oh = oh.reshape(c, nq)

    out = lax.dot_general(oh, ap["wo"][...], (((0,), (0,)), ((), ())),
                          preferred_element_type=jnp.float32)           # [Nq, C]
    return out + ap["bo"][...]


def _mlp(mp, x, has_norm):
    t = _ln(x, mp["ng"][...], mp["nb"][...]) if has_norm else x
    h = jnp.dot(t, mp["w1"][...], preferred_element_type=jnp.float32) + mp["b1"][...]
    # TODO(synk): PyTorch nn.GELU() defaults to exact erf; tanh approximation used here.
    h = jax.nn.gelu(h, approximate=True)
    return jnp.dot(h, mp["w2"][...], preferred_element_type=jnp.float32) + mp["b2"][...]


def _reason(rp, x):
    t = _ln(x, rp["g"][...], rp["b"][...])
    return x + jnp.dot(rp["w"][...], t, preferred_element_type=jnp.float32)


# ------------------------------------ the fused kernel -------------------------------------
def _vip_block_kernel(x_ref, parts_ref, qpos_ref, kpos_ref, *rest, treedef, n_params):
    param_refs = rest[:n_params]
    parts_out_ref = rest[n_params]
    feats_ref = rest[n_params + 1]
    prm = jax.tree_util.tree_unflatten(treedef, list(param_refs))
    enc, dec = prm["encoder"], prm["decoder"]

    x = x_ref[...]                      # [P*K, C]
    parts0 = parts_ref[...]             # [Np, C]
    qpos = qpos_ref[...]                # [Np, C // enc_heads]
    kpos = kpos_ref[...]                # [Np, C // heads]

    # ---------------- Encoder ----------------
    q_in = _apply_pos(parts0, qpos, NUM_ENC_HEADS)
    parts = parts0 + _mha(enc["attn"], q_in, x, x, NUM_ENC_HEADS)
    parts = _reason(enc["reason"], parts)
    parts = parts + _mlp(enc["ffn"], parts, has_norm=False)
    parts_out_ref[...] = parts                                          # one [Np, C] store

    # ---------------- Decoder ----------------
    k_in = _apply_pos(parts, kpos, NUM_HEADS)
    out = x + _mha(dec["attn1"], x, k_in, parts, NUM_HEADS)
    out = out + _mlp(dec["ffn1"], out, has_norm=True)
    # attn2: per-patch local attention expressed as full-row attention with a precomputed
    # additive block-diagonal mask + block-diagonal rel-pos table (no (b p) reshape/unroll).
    out = out + _mha(dec["attn2"], out, out, out, NUM_HEADS,
                     bias=dec["attn2_mask"][...], rel_t=dec["rel_t"][...])
    out = out + _mlp(dec["ffn2"], out, has_norm=True)
    feats_ref[...] = out                                                # one [P*K, C] store


# ----------------------------------- jitted forward ----------------------------------------
def _bcast_spec(shape):
    nd = len(shape)
    return pl.BlockSpec(shape, lambda i, _nd=nd: (0,) * _nd)


@jax.jit
def vip_block_forward(kparams, x, parts, part_qpos, part_kpos, mask=None):
    b, p_num, k_pix, c = x.shape
    pk = p_num * k_pix
    n_parts = parts.shape[1]
    xf = x.reshape(b, pk, c)                                            # 'b p k c -> b (p k) c'

    flat, treedef = jax.tree_util.tree_flatten(kparams)
    n_params = len(flat)
    kernel = functools.partial(_vip_block_kernel, treedef=treedef, n_params=n_params)

    in_specs = [
        pl.BlockSpec((None, pk, c), lambda i: (i, 0, 0)),                       # x
        pl.BlockSpec((None, n_parts, c), lambda i: (i, 0, 0)),                  # parts
        pl.BlockSpec((None, n_parts, None, part_qpos.shape[-1]),
                     lambda i: (i, 0, 0, 0)),                                   # part_qpos
        pl.BlockSpec((None, n_parts, None, part_kpos.shape[-1]),
                     lambda i: (i, 0, 0, 0)),                                   # part_kpos
    ] + [_bcast_spec(p.shape) for p in flat]                                    # parameters

    out_specs = [
        pl.BlockSpec((None, n_parts, c), lambda i: (i, 0, 0)),                  # parts out
        pl.BlockSpec((None, pk, c), lambda i: (i, 0, 0)),                       # feats (flat)
    ]
    out_shape = [
        jax.ShapeDtypeStruct((b, n_parts, c), x.dtype),
        jax.ShapeDtypeStruct((b, pk, c), x.dtype),
    ]

    parts_out, feats_flat = pl.pallas_call(
        kernel,
        grid=(b,),
        in_specs=in_specs,
        out_specs=out_specs,
        out_shape=out_shape,
        compiler_params=pltpu.CompilerParams(dimension_semantics=("parallel",)),
    )(xf, parts, part_qpos, part_kpos, *flat)

    feats = feats_flat.reshape(b, p_num, k_pix, c)                      # '(p k) -> p k'
    return feats, parts_out, part_qpos, mask


# ------------------------- one-time parameter / table preparation --------------------------
def _normal(key, shape, std=0.02):
    return std * jax.random.normal(key, shape, dtype=jnp.float32)


def init_attention_params(key, dim, num_heads):
    ks = jax.random.split(key, 4)
    ch = dim // num_heads
    scale = float(ch) ** -0.5
    ones = jnp.ones((1, dim), jnp.float32)
    zeros = jnp.zeros((1, dim), jnp.float32)
    return {
        "gq": ones, "bq": zeros, "gk": ones, "bk": zeros, "gv": ones, "bv": zeros,
        # q/k/v weights stored transposed ([out, in]); softmax scale folded into wq_t once.
        "wq_t": _normal(ks[0], (dim, dim)).T * scale,
        "wk_t": _normal(ks[1], (dim, dim)).T,
        "wv_t": _normal(ks[2], (dim, dim)).T,
        "wo": _normal(ks[3], (dim, dim)),            # [in (head-major), out]
        "bo": zeros,
    }


def init_mlp_params(key, dim, hidden, with_norm):
    k1, k2 = jax.random.split(key)
    p = {
        "w1": _normal(k1, (dim, hidden)), "b1": jnp.zeros((1, hidden), jnp.float32),
        "w2": _normal(k2, (hidden, dim)), "b2": jnp.zeros((1, dim), jnp.float32),
    }
    if with_norm:
        p["ng"] = jnp.ones((1, dim), jnp.float32)
        p["nb"] = jnp.zeros((1, dim), jnp.float32)
    return p


def build_rel_table(key, h, w, head_dim):
    """FullRelPos params assembled once into a block-diagonal table rel_t[c, q_row, k_row]
    (shared by all heads / patches), so the in-kernel bias is a broadcast-mul-reduce."""
    k1, k2 = jax.random.split(key)
    half = head_dim // 2
    std = float(head_dim) ** -0.5
    emb_h = std * jax.random.normal(k1, (2 * h - 1, half), jnp.float32)
    emb_w = std * jax.random.normal(k2, (2 * w - 1, half), jnp.float32)
    idx_h = jnp.arange(h)
    idx_w = jnp.arange(w)
    rel_h = idx_h[None, :] - idx_h[:, None] + (h - 1)                    # [h, h]
    rel_w = idx_w[None, :] - idx_w[:, None] + (w - 1)                    # [w, w]
    abs_h = emb_h[rel_h]                                                 # [h, h, half]
    abs_w = emb_w[rel_w]                                                 # [w, w, half]
    rh = jnp.broadcast_to(abs_h[:, None, :, None, :], (h, w, h, w, half))
    rw = jnp.broadcast_to(abs_w[None, :, None, :, :], (h, w, h, w, half))
    r = jnp.concatenate([rh, rw], axis=-1)                               # [h, w, h, w, ch]
    q_len = h * w
    assert q_len == K_PIX
    r3t = jnp.transpose(r.reshape(q_len, q_len, head_dim), (2, 0, 1))    # [ch, K, K]
    eye = jnp.eye(P_NUM, dtype=jnp.float32)
    full = eye[None, :, None, :, None] * r3t[:, None, :, None, :]        # [ch, P, K, P, K]
    return full.reshape(head_dim, P_NUM * q_len, P_NUM * q_len)          # [ch, PK, PK]


def build_patch_mask(p_num, k_pix):
    """Additive mask: 0 inside a patch's k_pix x k_pix block, -1e9 elsewhere."""
    pid = jnp.repeat(jnp.arange(p_num), k_pix)
    same = pid[:, None] == pid[None, :]
    return jnp.where(same, 0.0, NEG_INF).astype(jnp.float32)


def init_vip_block_params(key):
    """Kernel-ready parameters built ONCE (weight transposes, scale folding, rel-pos table
    and patch-mask construction all hoisted out of the jitted forward)."""
    ks = jax.random.split(key, 8)
    encoder = {
        "attn": init_attention_params(ks[0], DIM, NUM_ENC_HEADS),
        "reason": {
            "g": jnp.ones((1, DIM), jnp.float32),
            "b": jnp.zeros((1, DIM), jnp.float32),
            "w": _normal(ks[1], (NUM_PARTS, NUM_PARTS)),   # Conv1d(Np, Np, 1) weight
        },
        "ffn": init_mlp_params(ks[2], DIM, DIM, with_norm=False),
    }
    decoder = {
        "attn1": init_attention_params(ks[3], DIM, NUM_HEADS),
        "attn2": init_attention_params(ks[4], DIM, NUM_HEADS),
        "rel_t": build_rel_table(ks[5], PATCH_SIZE, PATCH_SIZE, DIM // NUM_HEADS),
        "attn2_mask": build_patch_mask(P_NUM, K_PIX),
        "ffn1": init_mlp_params(ks[6], DIM, DIM * FFN_EXP, with_norm=True),
        "ffn2": init_mlp_params(ks[7], DIM, DIM * FFN_EXP, with_norm=True),
    }
    return {"encoder": encoder, "decoder": decoder}


# ---------------------------------------- main ----------------------------------------------
if __name__ == "__main__":
    key = jax.random.PRNGKey(0)
    kp, kx, kparts, kq, kk = jax.random.split(key, 5)

    params = init_vip_block_params(kp)
    x = jax.random.normal(kx, (B, P_NUM, K_PIX, DIM), jnp.float32)
    parts = jax.random.normal(kparts, (B, NUM_PARTS, DIM), jnp.float32)
    part_qpos = 0.02 * jax.random.normal(kq, (B, NUM_PARTS, 1, DIM // NUM_ENC_HEADS), jnp.float32)
    part_kpos = 0.02 * jax.random.normal(kk, (B, NUM_PARTS, 1, DIM // NUM_HEADS), jnp.float32)

    feats, parts_out, qpos_out, mask_out = vip_block_forward(
        params, x, parts, part_qpos, part_kpos, mask=None)
    jax.block_until_ready((feats, parts_out))

    assert feats.shape == (B, P_NUM, K_PIX, DIM), feats.shape
    assert parts_out.shape == (B, NUM_PARTS, DIM), parts_out.shape
    assert qpos_out.shape == part_qpos.shape
    assert mask_out is None
    assert bool(jnp.all(jnp.isfinite(feats))) and bool(jnp.all(jnp.isfinite(parts_out)))
    print("KERNEL_OK")
</pallas_src>

<mosaic_0001>
module attributes {stable_mosaic.version = 11 : i64} {
  func.func @_vip_block_kernel(%arg0: i32, %arg1: memref<1x16x32xf32, #tpu.memory_space<vmem>>, %arg2: memref<1x8x32xf32, #tpu.memory_space<vmem>>, %arg3: memref<1x8x1x32xf32, #tpu.memory_space<vmem>>, %arg4: memref<1x8x1x16xf32, #tpu.memory_space<vmem>>, %arg5: memref<1x32xf32, #tpu.memory_space<vmem>>, %arg6: memref<1x32xf32, #tpu.memory_space<vmem>>, %arg7: memref<1x32xf32, #tpu.memory_space<vmem>>, %arg8: memref<1x32xf32, #tpu.memory_space<vmem>>, %arg9: memref<1x32xf32, #tpu.memory_space<vmem>>, %arg10: memref<1x32xf32, #tpu.memory_space<vmem>>, %arg11: memref<1x32xf32, #tpu.memory_space<vmem>>, %arg12: memref<32x32xf32, #tpu.memory_space<vmem>>, %arg13: memref<32x32xf32, #tpu.memory_space<vmem>>, %arg14: memref<32x32xf32, #tpu.memory_space<vmem>>, %arg15: memref<32x32xf32, #tpu.memory_space<vmem>>, %arg16: memref<1x32xf32, #tpu.memory_space<vmem>>, %arg17: memref<1x32xf32, #tpu.memory_space<vmem>>, %arg18: memref<1x32xf32, #tpu.memory_space<vmem>>, %arg19: memref<1x32xf32, #tpu.memory_space<vmem>>, %arg20: memref<1x32xf32, #tpu.memory_space<vmem>>, %arg21: memref<1x32xf32, #tpu.memory_space<vmem>>, %arg22: memref<1x32xf32, #tpu.memory_space<vmem>>, %arg23: memref<32x32xf32, #tpu.memory_space<vmem>>, %arg24: memref<32x32xf32, #tpu.memory_space<vmem>>, %arg25: memref<32x32xf32, #tpu.memory_space<vmem>>, %arg26: memref<32x32xf32, #tpu.memory_space<vmem>>, %arg27: memref<16x16xf32, #tpu.memory_space<vmem>>, %arg28: memref<1x128xf32, #tpu.memory_space<vmem>>, %arg29: memref<1x32xf32, #tpu.memory_space<vmem>>, %arg30: memref<1x32xf32, #tpu.memory_space<vmem>>, %arg31: memref<1x32xf32, #tpu.memory_space<vmem>>, %arg32: memref<32x128xf32, #tpu.memory_space<vmem>>, %arg33: memref<128x32xf32, #tpu.memory_space<vmem>>, %arg34: memref<1x128xf32, #tpu.memory_space<vmem>>, %arg35: memref<1x32xf32, #tpu.memory_space<vmem>>, %arg36: memref<1x32xf32, #tpu.memory_space<vmem>>, %arg37: memref<1x32xf32, #tpu.memory_space<vmem>>, %arg38: memref<32x128xf32, #tpu.memory_space<vmem>>, %arg39: memref<128x32xf32, #tpu.memory_space<vmem>>, %arg40: memref<16x16x16xf32, #tpu.memory_space<vmem>>, %arg41: memref<1x32xf32, #tpu.memory_space<vmem>>, %arg42: memref<1x32xf32, #tpu.memory_space<vmem>>, %arg43: memref<1x32xf32, #tpu.memory_space<vmem>>, %arg44: memref<1x32xf32, #tpu.memory_space<vmem>>, %arg45: memref<1x32xf32, #tpu.memory_space<vmem>>, %arg46: memref<1x32xf32, #tpu.memory_space<vmem>>, %arg47: memref<1x32xf32, #tpu.memory_space<vmem>>, %arg48: memref<32x32xf32, #tpu.memory_space<vmem>>, %arg49: memref<32x32xf32, #tpu.memory_space<vmem>>, %arg50: memref<32x32xf32, #tpu.memory_space<vmem>>, %arg51: memref<32x32xf32, #tpu.memory_space<vmem>>, %arg52: memref<1x32xf32, #tpu.memory_space<vmem>>, %arg53: memref<1x32xf32, #tpu.memory_space<vmem>>, %arg54: memref<32x32xf32, #tpu.memory_space<vmem>>, %arg55: memref<32x32xf32, #tpu.memory_space<vmem>>, %arg56: memref<1x32xf32, #tpu.memory_space<vmem>>, %arg57: memref<1x32xf32, #tpu.memory_space<vmem>>, %arg58: memref<8x8xf32, #tpu.memory_space<vmem>>, %arg59: memref<1x8x32xf32, #tpu.memory_space<vmem>>, %arg60: memref<1x16x32xf32, #tpu.memory_space<vmem>>) attributes {dimension_semantics = [#tpu.dimension_semantics<parallel>], iteration_bounds = array<i64: 2>, scalar_prefetch = 0 : i64, scratch_operands = 0 : i64, tpu.core_type = #tpu.core_type<tc>, window_params = [{transform_indices = @transform_0, window_bounds = array<i64: 1, 16, 32>}, {transform_indices = @transform_1, window_bounds = array<i64: 1, 8, 32>}, {transform_indices = @transform_2, window_bounds = array<i64: 1, 8, 1, 32>}, {transform_indices = @transform_3, window_bounds = array<i64: 1, 8, 1, 16>}, {pipeline_mode = #tpu.pipeline_mode<synchronous>, transform_indices = @transform_4, window_bounds = array<i64: 1, 32>}, {pipeline_mode = #tpu.pipeline_mode<synchronous>, transform_indices = @transform_5, window_bounds = array<i64: 1, 32>}, {pipeline_mode = #tpu.pipeline_mode<synchronous>, transform_indices = @transform_6, window_bounds = array<i64: 1, 32>}, {pipeline_mode = #tpu.pipeline_mode<synchronous>, transform_indices = @transform_7, window_bounds = array<i64: 1, 32>}, {pipeline_mode = #tpu.pipeline_mode<synchronous>, transform_indices = @transform_8, window_bounds = array<i64: 1, 32>}, {pipeline_mode = #tpu.pipeline_mode<synchronous>, transform_indices = @transform_9, window_bounds = array<i64: 1, 32>}, {pipeline_mode = #tpu.pipeline_mode<synchronous>, transform_indices = @transform_10, window_bounds = array<i64: 1, 32>}, {pipeline_mode = #tpu.pipeline_mode<synchronous>, transform_indices = @transform_11, window_bounds = array<i64: 32, 32>}, {pipeline_mode = #tpu.pipeline_mode<synchronous>, transform_indices = @transform_12, window_bounds = array<i64: 32, 32>}, {pipeline_mode = #tpu.pipeline_mode<synchronous>, transform_indices = @transform_13, window_bounds = array<i64: 32, 32>}, {pipeline_mode = #tpu.pipeline_mode<synchronous>, transform_indices = @transform_14, window_bounds = array<i64: 32, 32>}, {pipeline_mode = #tpu.pipeline_mode<synchronous>, transform_indices = @transform_15, window_bounds = array<i64: 1, 32>}, {pipeline_mode = #tpu.pipeline_mode<synchronous>, transform_indices = @transform_16, window_bounds = array<i64: 1, 32>}, {pipeline_mode = #tpu.pipeline_mode<synchronous>, transform_indices = @transform_17, window_bounds = array<i64: 1, 32>}, {pipeline_mode = #tpu.pipeline_mode<synchronous>, transform_indices = @transform_18, window_bounds = array<i64: 1, 32>}, {pipeline_mode = #tpu.pipeline_mode<synchronous>, transform_indices = @transform_19, window_bounds = array<i64: 1, 32>}, {pipeline_mode = #tpu.pipeline_mode<synchronous>, transform_indices = @transform_20, window_bounds = array<i64: 1, 32>}, {pipeline_mode = #tpu.pipeline_mode<synchronous>, transform_indices = @transform_21, window_bounds = array<i64: 1, 32>}, {pipeline_mode = #tpu.pipeline_mode<synchronous>, transform_indices = @transform_22, window_bounds = array<i64: 32, 32>}, {pipeline_mode = #tpu.pipeline_mode<synchronous>, transform_indices = @transform_23, window_bounds = array<i64: 32, 32>}, {pipeline_mode = #tpu.pipeline_mode<synchronous>, transform_indices = @transform_24, window_bounds = array<i64: 32, 32>}, {pipeline_mode = #tpu.pipeline_mode<synchronous>, transform_indices = @transform_25, window_bounds = array<i64: 32, 32>}, {pipeline_mode = #tpu.pipeline_mode<synchronous>, transform_indices = @transform_26, window_bounds = array<i64: 16, 16>}, {pipeline_mode = #tpu.pipeline_mode<synchronous>, transform_indices = @transform_27, window_bounds = array<i64: 1, 128>}, {pipeline_mode = #tpu.pipeline_mode<synchronous>, transform_indices = @transform_28, window_bounds = array<i64: 1, 32>}, {pipeline_mode = #tpu.pipeline_mode<synchronous>, transform_indices = @transform_29, window_bounds = array<i64: 1, 32>}, {pipeline_mode = #tpu.pipeline_mode<synchronous>, transform_indices = @transform_30, window_bounds = array<i64: 1, 32>}, {pipeline_mode = #tpu.pipeline_mode<synchronous>, transform_indices = @transform_31, window_bounds = array<i64: 32, 128>}, {pipeline_mode = #tpu.pipeline_mode<synchronous>, transform_indices = @transform_32, window_bounds = array<i64: 128, 32>}, {pipeline_mode = #tpu.pipeline_mode<synchronous>, transform_indices = @transform_33, window_bounds = array<i64: 1, 128>}, {pipeline_mode = #tpu.pipeline_mode<synchronous>, transform_indices = @transform_34, window_bounds = array<i64: 1, 32>}, {pipeline_mode = #tpu.pipeline_mode<synchronous>, transform_indices = @transform_35, window_bounds = array<i64: 1, 32>}, {pipeline_mode = #tpu.pipeline_mode<synchronous>, transform_indices = @transform_36, window_bounds = array<i64: 1, 32>}, {pipeline_mode = #tpu.pipeline_mode<synchronous>, transform_indices = @transform_37, window_bounds = array<i64: 32, 128>}, {pipeline_mode = #tpu.pipeline_mode<synchronous>, transform_indices = @transform_38, window_bounds = array<i64: 128, 32>}, {pipeline_mode = #tpu.pipeline_mode<synchronous>, transform_indices = @transform_39, window_bounds = array<i64: 16, 16, 16>}, {pipeline_mode = #tpu.pipeline_mode<synchronous>, transform_indices = @transform_40, window_bounds = array<i64: 1, 32>}, {pipeline_mode = #tpu.pipeline_mode<synchronous>, transform_indices = @transform_41, window_bounds = array<i64: 1, 32>}, {pipeline_mode = #tpu.pipeline_mode<synchronous>, transform_indices = @transform_42, window_bounds = array<i64: 1, 32>}, {pipeline_mode = #tpu.pipeline_mode<synchronous>, transform_indices = @transform_43, window_bounds = array<i64: 1, 32>}, {pipeline_mode = #tpu.pipeline_mode<synchronous>, transform_indices = @transform_44, window_bounds = array<i64: 1, 32>}, {pipeline_mode = #tpu.pipeline_mode<synchronous>, transform_indices = @transform_45, window_bounds = array<i64: 1, 32>}, {pipeline_mode = #tpu.pipeline_mode<synchronous>, transform_indices = @transform_46, window_bounds = array<i64: 1, 32>}, {pipeline_mode = #tpu.pipeline_mode<synchronous>, transform_indices = @transform_47, window_bounds = array<i64: 32, 32>}, {pipeline_mode = #tpu.pipeline_mode<synchronous>, transform_indices = @transform_48, window_bounds = array<i64: 32, 32>}, {pipeline_mode = #tpu.pipeline_mode<synchronous>, transform_indices = @transform_49, window_bounds = array<i64: 32, 32>}, {pipeline_mode = #tpu.pipeline_mode<synchronous>, transform_indices = @transform_50, window_bounds = array<i64: 32, 32>}, {pipeline_mode = #tpu.pipeline_mode<synchronous>, transform_indices = @transform_51, window_bounds = array<i64: 1, 32>}, {pipeline_mode = #tpu.pipeline_mode<synchronous>, transform_indices = @transform_52, window_bounds = array<i64: 1, 32>}, {pipeline_mode = #tpu.pipeline_mode<synchronous>, transform_indices = @transform_53, window_bounds = array<i64: 32, 32>}, {pipeline_mode = #tpu.pipeline_mode<synchronous>, transform_indices = @transform_54, window_bounds = array<i64: 32, 32>}, {pipeline_mode = #tpu.pipeline_mode<synchronous>, transform_indices = @transform_55, window_bounds = array<i64: 1, 32>}, {pipeline_mode = #tpu.pipeline_mode<synchronous>, transform_indices = @transform_56, window_bounds = array<i64: 1, 32>}, {pipeline_mode = #tpu.pipeline_mode<synchronous>, transform_indices = @transform_57, window_bounds = array<i64: 8, 8>}, {transform_indices = @transform_58, window_bounds = array<i64: 1, 8, 32>}, {transform_indices = @transform_59, window_bounds = array<i64: 1, 16, 32>}]} {
    %c0 = arith.constant 0 : index
    %c0_0 = arith.constant 0 : index
    %c0_1 = arith.constant 0 : index
    %0 = vector.load %arg1[%c0, %c0_0, %c0_1] : memref<1x16x32xf32, #tpu.memory_space<vmem>>, vector<1x16x32xf32>
    %1 = vector.shape_cast %0 : vector<1x16x32xf32> to vector<16x32xf32>
    %c0_2 = arith.constant 0 : index
    %c0_3 = arith.constant 0 : index
    %c0_4 = arith.constant 0 : index
    %2 = vector.load %arg2[%c0_2, %c0_3, %c0_4] : memref<1x8x32xf32, #tpu.memory_space<vmem>>, vector<1x8x32xf32>
    %3 = vector.shape_cast %2 : vector<1x8x32xf32> to vector<8x32xf32>
    %c0_5 = arith.constant 0 : index
    %c0_6 = arith.constant 0 : index
    %c0_7 = arith.constant 0 : index
    %c0_8 = arith.constant 0 : index
    %4 = vector.load %arg3[%c0_5, %c0_6, %c0_7, %c0_8] : memref<1x8x1x32xf32, #tpu.memory_space<vmem>>, vector<1x8x1x32xf32>
    %5 = vector.shape_cast %4 : vector<1x8x1x32xf32> to vector<8x32xf32>
    %c0_9 = arith.constant 0 : index
    %c0_10 = arith.constant 0 : index
    %c0_11 = arith.constant 0 : index
    %c0_12 = arith.constant 0 : index
    %6 = vector.load %arg4[%c0_9, %c0_10, %c0_11, %c0_12] : memref<1x8x1x16xf32, #tpu.memory_space<vmem>>, vector<1x8x1x16xf32>
    %7 = vector.shape_cast %6 : vector<1x8x1x16xf32> to vector<8x16xf32>
    %8 = arith.addf %3, %5 : vector<8x32xf32>
    %c0_13 = arith.constant 0 : index
    %c0_14 = arith.constant 0 : index
    %9 = vector.load %arg46[%c0_13, %c0_14] : memref<1x32xf32, #tpu.memory_space<vmem>>, vector<1x32xf32>
    %c0_15 = arith.constant 0 : index
    %c0_16 = arith.constant 0 : index
    %10 = vector.load %arg43[%c0_15, %c0_16] : memref<1x32xf32, #tpu.memory_space<vmem>>, vector<1x32xf32>
    %cst = arith.constant dense<0.000000e+00> : vector<8xf32>
    %11 = vector.multi_reduction <add>, %8, %cst [1] : vector<8x32xf32> to vector<8xf32>
    %12 = vector.shape_cast %11 : vector<8xf32> to vector<8x1xf32>
    %cst_17 = arith.constant 3.200000e+01 : f32
    %13 = vector.broadcast %cst_17 : f32 to vector<8x1xf32>
    %14 = arith.divf %12, %13 : vector<8x1xf32>
    %15 = vector.broadcast %14 : vector<8x1xf32> to vector<8x32xf32>
    %16 = arith.subf %8, %15 : vector<8x32xf32>
    %17 = arith.mulf %16, %16 : vector<8x32xf32>
    %cst_18 = arith.constant dense<0.000000e+00> : vector<8xf32>
    %18 = vector.multi_reduction <add>, %17, %cst_18 [1] : vector<8x32xf32> to vector<8xf32>
    %19 = vector.shape_cast %18 : vector<8xf32> to vector<8x1xf32>
    %cst_19 = arith.constant 3.200000e+01 : f32
    %20 = vector.broadcast %cst_19 : f32 to vector<8x1xf32>
    %21 = arith.divf %19, %20 : vector<8x1xf32>
    %cst_20 = arith.constant 9.99999974E-6 : f32
    %22 = vector.broadcast %cst_20 : f32 to vector<8x1xf32>
    %23 = arith.addf %21, %22 : vector<8x1xf32>
    %24 = math.rsqrt %23 : vector<8x1xf32>
    %25 = vector.broadcast %24 : vector<8x1xf32> to vector<8x32xf32>
    %26 = arith.mulf %16, %25 : vector<8x32xf32>
    %27 = vector.broadcast %9 : vector<1x32xf32> to vector<8x32xf32>
    %28 = arith.mulf %26, %27 : vector<8x32xf32>
    %29 = vector.broadcast %10 : vector<1x32xf32> to vector<8x32xf32>
    %30 = arith.addf %28, %29 : vector<8x32xf32>
    %c0_21 = arith.constant 0 : index
    %c0_22 = arith.constant 0 : index
    %31 = vector.load %arg45[%c0_21, %c0_22] : memref<1x32xf32, #tpu.memory_space<vmem>>, vector<1x32xf32>
    %c0_23 = arith.constant 0 : index
    %c0_24 = arith.constant 0 : index
    %32 = vector.load %arg41[%c0_23, %c0_24] : memref<1x32xf32, #tpu.memory_space<vmem>>, vector<1x32xf32>
    %cst_25 = arith.constant dense<0.000000e+00> : vector<16xf32>
    %33 = vector.multi_reduction <add>, %1, %cst_25 [1] : vector<16x32xf32> to vector<16xf32>
    %34 = vector.shape_cast %33 : vector<16xf32> to vector<16x1xf32>
    %cst_26 = arith.constant 3.200000e+01 : f32
    %35 = vector.broadcast %cst_26 : f32 to vector<16x1xf32>
    %36 = arith.divf %34, %35 : vector<16x1xf32>
    %37 = vector.broadcast %36 : vector<16x1xf32> to vector<16x32xf32>
    %38 = arith.subf %1, %37 : vector<16x32xf32>
    %39 = arith.mulf %38, %38 : vector<16x32xf32>
    %cst_27 = arith.constant dense<0.000000e+00> : vector<16xf32>
    %40 = vector.multi_reduction <add>, %39, %cst_27 [1] : vector<16x32xf32> to vector<16xf32>
    %41 = vector.shape_cast %40 : vector<16xf32> to vector<16x1xf32>
    %cst_28 = arith.constant 3.200000e+01 : f32
    %42 = vector.broadcast %cst_28 : f32 to vector<16x1xf32>
    %43 = arith.divf %41, %42 : vector<16x1xf32>
    %cst_29 = arith.constant 9.99999974E-6 : f32
    %44 = vector.broadcast %cst_29 : f32 to vector<16x1xf32>
    %45 = arith.addf %43, %44 : vector<16x1xf32>
    %46 = math.rsqrt %45 : vector<16x1xf32>
    %47 = vector.broadcast %46 : vector<16x1xf32> to vector<16x32xf32>
    %48 = arith.mulf %38, %47 : vector<16x32xf32>
    %49 = vector.broadcast %31 : vector<1x32xf32> to vector<16x32xf32>
    %50 = arith.mulf %48, %49 : vector<16x32xf32>
    %51 = vector.broadcast %32 : vector<1x32xf32> to vector<16x32xf32>
    %52 = arith.addf %50, %51 : vector<16x32xf32>
    %c0_30 = arith.constant 0 : index
    %c0_31 = arith.constant 0 : index
    %53 = vector.load %arg47[%c0_30, %c0_31] : memref<1x32xf32, #tpu.memory_space<vmem>>, vector<1x32xf32>
    %c0_32 = arith.constant 0 : index
    %c0_33 = arith.constant 0 : index
    %54 = vector.load %arg44[%c0_32, %c0_33] : memref<1x32xf32, #tpu.memory_space<vmem>>, vector<1x32xf32>
    %cst_34 = arith.constant dense<0.000000e+00> : vector<16xf32>
    %55 = vector.multi_reduction <add>, %1, %cst_34 [1] : vector<16x32xf32> to vector<16xf32>
    %56 = vector.shape_cast %55 : vector<16xf32> to vector<16x1xf32>
    %cst_35 = arith.constant 3.200000e+01 : f32
    %57 = vector.broadcast %cst_35 : f32 to vector<16x1xf32>
    %58 = arith.divf %56, %57 : vector<16x1xf32>
    %59 = vector.broadcast %58 : vector<16x1xf32> to vector<16x32xf32>
    %60 = arith.subf %1, %59 : vector<16x32xf32>
    %61 = arith.mulf %60, %60 : vector<16x32xf32>
    %cst_36 = arith.constant dense<0.000000e+00> : vector<16xf32>
    %62 = vector.multi_reduction <add>, %61, %cst_36 [1] : vector<16x32xf32> to vector<16xf32>
    %63 = vector.shape_cast %62 : vector<16xf32> to vector<16x1xf32>
    %cst_37 = arith.constant 3.200000e+01 : f32
    %64 = vector.broadcast %cst_37 : f32 to vector<16x1xf32>
    %65 = arith.divf %63, %64 : vector<16x1xf32>
    %cst_38 = arith.constant 9.99999974E-6 : f32
    %66 = vector.broadcast %cst_38 : f32 to vector<16x1xf32>
    %67 = arith.addf %65, %66 : vector<16x1xf32>
    %68 = math.rsqrt %67 : vector<16x1xf32>
    %69 = vector.broadcast %68 : vector<16x1xf32> to vector<16x32xf32>
    %70 = arith.mulf %60, %69 : vector<16x32xf32>
    %71 = vector.broadcast %53 : vector<1x32xf32> to vector<16x32xf32>
    %72 = arith.mulf %70, %71 : vector<16x32xf32>
    %73 = vector.broadcast %54 : vector<1x32xf32> to vector<16x32xf32>
    %74 = arith.addf %72, %73 : vector<16x32xf32>
    %c0_39 = arith.constant 0 : index
    %c0_40 = arith.constant 0 : index
    %75 = vector.load %arg50[%c0_39, %c0_40] : memref<32x32xf32, #tpu.memory_space<vmem>>, vector<32x32xf32>
    %cst_41 = arith.constant dense<0.000000e+00> : vector<32x8xf32>
    %76 = tpu.matmul %75, %30, %cst_41 {dimension_numbers = #tpu.dot_dimension_numbers<[1], [1], [0], [0], [0, 0, 1, 0], [], []>} : vector<32x32xf32>, vector<8x32xf32>, vector<32x8xf32> -> vector<32x8xf32>
    %c0_42 = arith.constant 0 : index
    %c0_43 = arith.constant 0 : index
    %77 = vector.load %arg48[%c0_42, %c0_43] : memref<32x32xf32, #tpu.memory_space<vmem>>, vector<32x32xf32>
    %cst_44 = arith.constant dense<0.000000e+00> : vector<32x16xf32>
    %78 = tpu.matmul %77, %52, %cst_44 {dimension_numbers = #tpu.dot_dimension_numbers<[1], [1], [0], [0], [0, 0, 1, 0], [], []>} : vector<32x32xf32>, vector<16x32xf32>, vector<32x16xf32> -> vector<32x16xf32>
    %c0_45 = arith.constant 0 : index
    %c0_46 = arith.constant 0 : index
    %79 = vector.load %arg51[%c0_45, %c0_46] : memref<32x32xf32, #tpu.memory_space<vmem>>, vector<32x32xf32>
    %cst_47 = arith.constant dense<0.000000e+00> : vector<32x16xf32>
    %80 = tpu.matmul %79, %74, %cst_47 {dimension_numbers = #tpu.dot_dimension_numbers<[1], [1], [0], [0], [0, 0, 1, 0], [], []>} : vector<32x32xf32>, vector<16x32xf32>, vector<32x16xf32> -> vector<32x16xf32>
    %cst_48 = arith.constant dense<0.000000e+00> : vector<8x16xf32>
    %81 = tpu.matmul %76, %78, %cst_48 {dimension_numbers = #tpu.dot_dimension_numbers<[0], [0], [1], [1], [0, 1, 1, 1], [], []>} : vector<32x8xf32>, vector<32x16xf32>, vector<8x16xf32> -> vector<8x16xf32>
    %cst_49 = arith.constant dense<0xFF800000> : vector<8xf32>
    %82 = vector.multi_reduction <maximumf>, %81, %cst_49 [1] : vector<8x16xf32> to vector<8xf32>
    %83 = vector.shape_cast %82 : vector<8xf32> to vector<8x1xf32>
    %84 = vector.broadcast %83 : vector<8x1xf32> to vector<8x16xf32>
    %85 = arith.subf %81, %84 : vector<8x16xf32>
    %86 = math.exp %85 : vector<8x16xf32>
    %cst_50 = arith.constant dense<0.000000e+00> : vector<8xf32>
    %87 = vector.multi_reduction <add>, %86, %cst_50 [1] : vector<8x16xf32> to vector<8xf32>
    %88 = vector.shape_cast %87 : vector<8xf32> to vector<8x1xf32>
    %89 = tpu.reciprocal %88 {approx = true} : vector<8x1xf32> -> vector<8x1xf32>
    %90 = vector.broadcast %89 : vector<8x1xf32> to vector<8x16xf32>
    %91 = arith.mulf %86, %90 : vector<8x16xf32>
    %cst_51 = arith.constant dense<0.000000e+00> : vector<32x8xf32>
    %92 = tpu.matmul %80, %91, %cst_51 {dimension_numbers = #tpu.dot_dimension_numbers<[1], [1], [0], [0], [0, 0, 1, 0], [], []>} : vector<32x16xf32>, vector<8x16xf32>, vector<32x8xf32> -> vector<32x8xf32>
    %c0_52 = arith.constant 0 : index
    %c0_53 = arith.constant 0 : index
    %93 = vector.load %arg49[%c0_52, %c0_53] : memref<32x32xf32, #tpu.memory_space<vmem>>, vector<32x32xf32>
    %cst_54 = arith.constant dense<0.000000e+00> : vector<8x32xf32>
    %94 = tpu.matmul %92, %93, %cst_54 {dimension_numbers = #tpu.dot_dimension_numbers<[0], [0], [1], [1], [0, 1, 1, 1], [], []>} : vector<32x8xf32>, vector<32x32xf32>, vector<8x32xf32> -> vector<8x32xf32>
    %c0_55 = arith.constant 0 : index
    %c0_56 = arith.constant 0 : index
    %95 = vector.load %arg42[%c0_55, %c0_56] : memref<1x32xf32, #tpu.memory_space<vmem>>, vector<1x32xf32>
    %96 = vector.broadcast %95 : vector<1x32xf32> to vector<8x32xf32>
    %97 = arith.addf %94, %96 : vector<8x32xf32>
    %98 = arith.addf %3, %97 : vector<8x32xf32>
    %c0_57 = arith.constant 0 : index
    %c0_58 = arith.constant 0 : index
    %99 = vector.load %arg57[%c0_57, %c0_58] : memref<1x32xf32, #tpu.memory_space<vmem>>, vector<1x32xf32>
    %c0_59 = arith.constant 0 : index
    %c0_60 = arith.constant 0 : index
    %100 = vector.load %arg56[%c0_59, %c0_60] : memref<1x32xf32, #tpu.memory_space<vmem>>, vector<1x32xf32>
    %cst_61 = arith.constant dense<0.000000e+00> : vector<8xf32>
    %101 = vector.multi_reduction <add>, %98, %cst_61 [1] : vector<8x32xf32> to vector<8xf32>
    %102 = vector.shape_cast %101 : vector<8xf32> to vector<8x1xf32>
    %cst_62 = arith.constant 3.200000e+01 : f32
    %103 = vector.broadcast %cst_62 : f32 to vector<8x1xf32>
    %104 = arith.divf %102, %103 : vector<8x1xf32>
    %105 = vector.broadcast %104 : vector<8x1xf32> to vector<8x32xf32>
    %106 = arith.subf %98, %105 : vector<8x32xf32>
    %107 = arith.mulf %106, %106 : vector<8x32xf32>
    %cst_63 = arith.constant dense<0.000000e+00> : vector<8xf32>
    %108 = vector.multi_reduction <add>, %107, %cst_63 [1] : vector<8x32xf32> to vector<8xf32>
    %109 = vector.shape_cast %108 : vector<8xf32> to vector<8x1xf32>
    %cst_64 = arith.constant 3.200000e+01 : f32
    %110 = vector.broadcast %cst_64 : f32 to vector<8x1xf32>
    %111 = arith.divf %109, %110 : vector<8x1xf32>
    %cst_65 = arith.constant 9.99999974E-6 : f32
    %112 = vector.broadcast %cst_65 : f32 to vector<8x1xf32>
    %113 = arith.addf %111, %112 : vector<8x1xf32>
    %114 = math.rsqrt %113 : vector<8x1xf32>
    %115 = vector.broadcast %114 : vector<8x1xf32> to vector<8x32xf32>
    %116 = arith.mulf %106, %115 : vector<8x32xf32>
    %117 = vector.broadcast %99 : vector<1x32xf32> to vector<8x32xf32>
    %118 = arith.mulf %116, %117 : vector<8x32xf32>
    %119 = vector.broadcast %100 : vector<1x32xf32> to vector<8x32xf32>
    %120 = arith.addf %118, %119 : vector<8x32xf32>
    %c0_66 = arith.constant 0 : index
    %c0_67 = arith.constant 0 : index
    %121 = vector.load %arg58[%c0_66, %c0_67] : memref<8x8xf32, #tpu.memory_space<vmem>>, vector<8x8xf32>
    %cst_68 = arith.constant dense<0.000000e+00> : vector<8x32xf32>
    %122 = tpu.matmul %121, %120, %cst_68 {dimension_numbers = #tpu.dot_dimension_numbers<[1], [0], [0], [1], [0, 0, 1, 1], [], []>} : vector<8x8xf32>, vector<8x32xf32>, vector<8x32xf32> -> vector<8x32xf32>
    %123 = arith.addf %98, %122 : vector<8x32xf32>
    %c0_69 = arith.constant 0 : index
    %c0_70 = arith.constant 0 : index
    %124 = vector.load %arg54[%c0_69, %c0_70] : memref<32x32xf32, #tpu.memory_space<vmem>>, vector<32x32xf32>
    %cst_71 = arith.constant dense<0.000000e+00> : vector<8x32xf32>
    %125 = tpu.matmul %123, %124, %cst_71 {dimension_numbers = #tpu.dot_dimension_numbers<[1], [0], [0], [1], [0, 0, 1, 1], [], []>} : vector<8x32xf32>, vector<32x32xf32>, vector<8x32xf32> -> vector<8x32xf32>
    %c0_72 = arith.constant 0 : index
    %c0_73 = arith.constant 0 : index
    %126 = vector.load %arg52[%c0_72, %c0_73] : memref<1x32xf32, #tpu.memory_space<vmem>>, vector<1x32xf32>
    %127 = vector.broadcast %126 : vector<1x32xf32> to vector<8x32xf32>
    %128 = arith.addf %125, %127 : vector<8x32xf32>
    %129 = arith.mulf %128, %128 : vector<8x32xf32>
    %130 = arith.mulf %128, %129 : vector<8x32xf32>
    %cst_74 = arith.constant 4.471500e-02 : f32
    %131 = vector.broadcast %cst_74 : f32 to vector<8x32xf32>
    %132 = arith.mulf %131, %130 : vector<8x32xf32>
    %133 = arith.addf %128, %132 : vector<8x32xf32>
    %cst_75 = arith.constant 0.797884583 : f32
    %134 = vector.broadcast %cst_75 : f32 to vector<8x32xf32>
    %135 = arith.mulf %134, %133 : vector<8x32xf32>
    %136 = math.tanh %135 : vector<8x32xf32>
    %cst_76 = arith.constant 1.000000e+00 : f32
    %137 = vector.broadcast %cst_76 : f32 to vector<8x32xf32>
    %138 = arith.addf %137, %136 : vector<8x32xf32>
    %cst_77 = arith.constant 5.000000e-01 : f32
    %139 = vector.broadcast %cst_77 : f32 to vector<8x32xf32>
    %140 = arith.mulf %139, %138 : vector<8x32xf32>
    %141 = arith.mulf %128, %140 : vector<8x32xf32>
    %c0_78 = arith.constant 0 : index
    %c0_79 = arith.constant 0 : index
    %142 = vector.load %arg55[%c0_78, %c0_79] : memref<32x32xf32, #tpu.memory_space<vmem>>, vector<32x32xf32>
    %cst_80 = arith.constant dense<0.000000e+00> : vector<8x32xf32>
    %143 = tpu.matmul %141, %142, %cst_80 {dimension_numbers = #tpu.dot_dimension_numbers<[1], [0], [0], [1], [0, 0, 1, 1], [], []>} : vector<8x32xf32>, vector<32x32xf32>, vector<8x32xf32> -> vector<8x32xf32>
    %c0_81 = arith.constant 0 : index
    %c0_82 = arith.constant 0 : index
    %144 = vector.load %arg53[%c0_81, %c0_82] : memref<1x32xf32, #tpu.memory_space<vmem>>, vector<1x32xf32>
    %145 = vector.broadcast %144 : vector<1x32xf32> to vector<8x32xf32>
    %146 = arith.addf %143, %145 : vector<8x32xf32>
    %147 = arith.addf %123, %146 : vector<8x32xf32>
    %c0_83 = arith.constant 0 : index
    %c0_84 = arith.constant 0 : index
    %c0_85 = arith.constant 0 : index
    %148 = vector.load %arg59[%c0_83, %c0_84, %c0_85] : memref<1x8x32xf32, #tpu.memory_space<vmem>>, vector<1x8x32xf32>
    %149 = vector.shape_cast %148 : vector<1x8x32xf32> to vector<8x32xf32>
    %150 = vector.shape_cast %147 : vector<8x32xf32> to vector<1x8x32xf32>
    tpu.vector_store %arg59[%c0_83, %c0_84, %c0_85], %150 {strides = array<i32>} : memref<1x8x32xf32, #tpu.memory_space<vmem>>, vector<1x8x32xf32>,
    %151 = tpu.concatenate %7, %7 in 1 : vector<8x16xf32>, vector<8x16xf32> -> vector<8x32xf32>
    %152 = arith.addf %147, %151 : vector<8x32xf32>
    %c0_86 = arith.constant 0 : index
    %c0_87 = arith.constant 0 : index
    %153 = vector.load %arg10[%c0_86, %c0_87] : memref<1x32xf32, #tpu.memory_space<vmem>>, vector<1x32xf32>
    %c0_88 = arith.constant 0 : index
    %c0_89 = arith.constant 0 : index
    %154 = vector.load %arg7[%c0_88, %c0_89] : memref<1x32xf32, #tpu.memory_space<vmem>>, vector<1x32xf32>
    %cst_90 = arith.constant dense<0.000000e+00> : vector<16xf32>
    %155 = vector.multi_reduction <add>, %1, %cst_90 [1] : vector<16x32xf32> to vector<16xf32>
    %156 = vector.shape_cast %155 : vector<16xf32> to vector<16x1xf32>
    %cst_91 = arith.constant 3.200000e+01 : f32
    %157 = vector.broadcast %cst_91 : f32 to vector<16x1xf32>
    %158 = arith.divf %156, %157 : vector<16x1xf32>
    %159 = vector.broadcast %158 : vector<16x1xf32> to vector<16x32xf32>
    %160 = arith.subf %1, %159 : vector<16x32xf32>
    %161 = arith.mulf %160, %160 : vector<16x32xf32>
    %cst_92 = arith.constant dense<0.000000e+00> : vector<16xf32>
    %162 = vector.multi_reduction <add>, %161, %cst_92 [1] : vector<16x32xf32> to vector<16xf32>
    %163 = vector.shape_cast %162 : vector<16xf32> to vector<16x1xf32>
    %cst_93 = arith.constant 3.200000e+01 : f32
    %164 = vector.broadcast %cst_93 : f32 to vector<16x1xf32>
    %165 = arith.divf %163, %164 : vector<16x1xf32>
    %cst_94 = arith.constant 9.99999974E-6 : f32
    %166 = vector.broadcast %cst_94 : f32 to vector<16x1xf32>
    %167 = arith.addf %165, %166 : vector<16x1xf32>
    %168 = math.rsqrt %167 : vector<16x1xf32>
    %169 = vector.broadcast %168 : vector<16x1xf32> to vector<16x32xf32>
    %170 = arith.mulf %160, %169 : vector<16x32xf32>
    %171 = vector.broadcast %153 : vector<1x32xf32> to vector<16x32xf32>
    %172 = arith.mulf %170, %171 : vector<16x32xf32>
    %173 = vector.broadcast %154 : vector<1x32xf32> to vector<16x32xf32>
    %174 = arith.addf %172, %173 : vector<16x32xf32>
    %c0_95 = arith.constant 0 : index
    %c0_96 = arith.constant 0 : index
    %175 = vector.load %arg9[%c0_95, %c0_96] : memref<1x32xf32, #tpu.memory_space<vmem>>, vector<1x32xf32>
    %c0_97 = arith.constant 0 : index
    %c0_98 = arith.constant 0 : index
    %176 = vector.load %arg5[%c0_97, %c0_98] : memref<1x32xf32, #tpu.memory_space<vmem>>, vector<1x32xf32>
    %cst_99 = arith.constant dense<0.000000e+00> : vector<8xf32>
    %177 = vector.multi_reduction <add>, %152, %cst_99 [1] : vector<8x32xf32> to vector<8xf32>
    %178 = vector.shape_cast %177 : vector<8xf32> to vector<8x1xf32>
    %cst_100 = arith.constant 3.200000e+01 : f32
    %179 = vector.broadcast %cst_100 : f32 to vector<8x1xf32>
    %180 = arith.divf %178, %179 : vector<8x1xf32>
    %181 = vector.broadcast %180 : vector<8x1xf32> to vector<8x32xf32>
    %182 = arith.subf %152, %181 : vector<8x32xf32>
    %183 = arith.mulf %182, %182 : vector<8x32xf32>
    %cst_101 = arith.constant dense<0.000000e+00> : vector<8xf32>
    %184 = vector.multi_reduction <add>, %183, %cst_101 [1] : vector<8x32xf32> to vector<8xf32>
    %185 = vector.shape_cast %184 : vector<8xf32> to vector<8x1xf32>
    %cst_102 = arith.constant 3.200000e+01 : f32
    %186 = vector.broadcast %cst_102 : f32 to vector<8x1xf32>
    %187 = arith.divf %185, %186 : vector<8x1xf32>
    %cst_103 = arith.constant 9.99999974E-6 : f32
    %188 = vector.broadcast %cst_103 : f32 to vector<8x1xf32>
    %189 = arith.addf %187, %188 : vector<8x1xf32>
    %190 = math.rsqrt %189 : vector<8x1xf32>
    %191 = vector.broadcast %190 : vector<8x1xf32> to vector<8x32xf32>
    %192 = arith.mulf %182, %191 : vector<8x32xf32>
    %193 = vector.broadcast %175 : vector<1x32xf32> to vector<8x32xf32>
    %194 = arith.mulf %192, %193 : vector<8x32xf32>
    %195 = vector.broadcast %176 : vector<1x32xf32> to vector<8x32xf32>
    %196 = arith.addf %194, %195 : vector<8x32xf32>
    %c0_104 = arith.constant 0 : index
    %c0_105 = arith.constant 0 : index
    %197 = vector.load %arg11[%c0_104, %c0_105] : memref<1x32xf32, #tpu.memory_space<vmem>>, vector<1x32xf32>
    %c0_106 = arith.constant 0 : index
    %c0_107 = arith.constant 0 : index
    %198 = vector.load %arg8[%c0_106, %c0_107] : memref<1x32xf32, #tpu.memory_space<vmem>>, vector<1x32xf32>
    %cst_108 = arith.constant dense<0.000000e+00> : vector<8xf32>
    %199 = vector.multi_reduction <add>, %147, %cst_108 [1] : vector<8x32xf32> to vector<8xf32>
    %200 = vector.shape_cast %199 : vector<8xf32> to vector<8x1xf32>
    %cst_109 = arith.constant 3.200000e+01 : f32
    %201 = vector.broadcast %cst_109 : f32 to vector<8x1xf32>
    %202 = arith.divf %200, %201 : vector<8x1xf32>
    %203 = vector.broadcast %202 : vector<8x1xf32> to vector<8x32xf32>
    %204 = arith.subf %147, %203 : vector<8x32xf32>
    %205 = arith.mulf %204, %204 : vector<8x32xf32>
    %cst_110 = arith.constant dense<0.000000e+00> : vector<8xf32>
    %206 = vector.multi_reduction <add>, %205, %cst_110 [1] : vector<8x32xf32> to vector<8xf32>
    %207 = vector.shape_cast %206 : vector<8xf32> to vector<8x1xf32>
    %cst_111 = arith.constant 3.200000e+01 : f32
    %208 = vector.broadcast %cst_111 : f32 to vector<8x1xf32>
    %209 = arith.divf %207, %208 : vector<8x1xf32>
    %cst_112 = arith.constant 9.99999974E-6 : f32
    %210 = vector.broadcast %cst_112 : f32 to vector<8x1xf32>
    %211 = arith.addf %209, %210 : vector<8x1xf32>
    %212 = math.rsqrt %211 : vector<8x1xf32>
    %213 = vector.broadcast %212 : vector<8x1xf32> to vector<8x32xf32>
    %214 = arith.mulf %204, %213 : vector<8x32xf32>
    %215 = vector.broadcast %197 : vector<1x32xf32> to vector<8x32xf32>
    %216 = arith.mulf %214, %215 : vector<8x32xf32>
    %217 = vector.broadcast %198 : vector<1x32xf32> to vector<8x32xf32>
    %218 = arith.addf %216, %217 : vector<8x32xf32>
    %c0_113 = arith.constant 0 : index
    %c0_114 = arith.constant 0 : index
    %219 = vector.load %arg14[%c0_113, %c0_114] : memref<32x32xf32, #tpu.memory_space<vmem>>, vector<32x32xf32>
    %cst_115 = arith.constant dense<0.000000e+00> : vector<32x16xf32>
    %220 = tpu.matmul %219, %174, %cst_115 {dimension_numbers = #tpu.dot_dimension_numbers<[1], [1], [0], [0], [0, 0, 1, 0], [], []>} : vector<32x32xf32>, vector<16x32xf32>, vector<32x16xf32> -> vector<32x16xf32>
    %c0_116 = arith.constant 0 : index
    %c0_117 = arith.constant 0 : index
    %221 = vector.load %arg12[%c0_116, %c0_117] : memref<32x32xf32, #tpu.memory_space<vmem>>, vector<32x32xf32>
    %cst_118 = arith.constant dense<0.000000e+00> : vector<32x8xf32>
    %222 = tpu.matmul %221, %196, %cst_118 {dimension_numbers = #tpu.dot_dimension_numbers<[1], [1], [0], [0], [0, 0, 1, 0], [], []>} : vector<32x32xf32>, vector<8x32xf32>, vector<32x8xf32> -> vector<32x8xf32>
    %c0_119 = arith.constant 0 : index
    %c0_120 = arith.constant 0 : index
    %223 = vector.load %arg15[%c0_119, %c0_120] : memref<32x32xf32, #tpu.memory_space<vmem>>, vector<32x32xf32>
    %cst_121 = arith.constant dense<0.000000e+00> : vector<32x8xf32>
    %224 = tpu.matmul %223, %218, %cst_121 {dimension_numbers = #tpu.dot_dimension_numbers<[1], [1], [0], [0], [0, 0, 1, 0], [], []>} : vector<32x32xf32>, vector<8x32xf32>, vector<32x8xf32> -> vector<32x8xf32>
    %225 = vector.shape_cast %220 : vector<32x16xf32> to vector<2x16x16xf32>
    %226 = vector.shape_cast %222 : vector<32x8xf32> to vector<2x16x8xf32>
    %227 = vector.shape_cast %224 : vector<32x8xf32> to vector<2x16x8xf32>
    %cst_122 = arith.constant dense<0.000000e+00> : vector<2x16x8xf32>
    %228 = tpu.matmul %225, %226, %cst_122 {dimension_numbers = #tpu.dot_dimension_numbers<[1], [1], [2], [2], [0, 0, 0, 2, 1, 2], [0], [0]>} : vector<2x16x16xf32>, vector<2x16x8xf32>, vector<2x16x8xf32> -> vector<2x16x8xf32>
    %cst_123 = arith.constant dense<0xFF800000> : vector<2x16xf32>
    %229 = vector.multi_reduction <maximumf>, %228, %cst_123 [2] : vector<2x16x8xf32> to vector<2x16xf32>
    %230 = vector.shape_cast %229 : vector<2x16xf32> to vector<2x16x1xf32>
    %231 = vector.broadcast %230 : vector<2x16x1xf32> to vector<2x16x8xf32>
    %232 = arith.subf %228, %231 : vector<2x16x8xf32>
    %233 = math.exp %232 : vector<2x16x8xf32>
    %cst_124 = arith.constant dense<0.000000e+00> : vector<2x16xf32>
    %234 = vector.multi_reduction <add>, %233, %cst_124 [2] : vector<2x16x8xf32> to vector<2x16xf32>
    %235 = vector.shape_cast %234 : vector<2x16xf32> to vector<2x16x1xf32>
    %236 = tpu.reciprocal %235 {approx = true} : vector<2x16x1xf32> -> vector<2x16x1xf32>
    %237 = vector.broadcast %236 : vector<2x16x1xf32> to vector<2x16x8xf32>
    %238 = arith.mulf %233, %237 : vector<2x16x8xf32>
    %cst_125 = arith.constant dense<0.000000e+00> : vector<2x16x16xf32>
    %239 = tpu.matmul %227, %238, %cst_125 {dimension_numbers = #tpu.dot_dimension_numbers<[2], [2], [1], [1], [0, 0, 0, 1, 1, 1], [0], [0]>} : vector<2x16x8xf32>, vector<2x16x8xf32>, vector<2x16x16xf32> -> vector<2x16x16xf32>
    %240 = vector.shape_cast %239 : vector<2x16x16xf32> to vector<32x16xf32>
    %c0_126 = arith.constant 0 : index
    %c0_127 = arith.constant 0 : index
    %241 = vector.load %arg13[%c0_126, %c0_127] : memref<32x32xf32, #tpu.memory_space<vmem>>, vector<32x32xf32>
    %cst_128 = arith.constant dense<0.000000e+00> : vector<16x32xf32>
    %242 = tpu.matmul %240, %241, %cst_128 {dimension_numbers = #tpu.dot_dimension_numbers<[0], [0], [1], [1], [0, 1, 1, 1], [], []>} : vector<32x16xf32>, vector<32x32xf32>, vector<16x32xf32> -> vector<16x32xf32>
    %c0_129 = arith.constant 0 : index
    %c0_130 = arith.constant 0 : index
    %243 = vector.load %arg6[%c0_129, %c0_130] : memref<1x32xf32, #tpu.memory_space<vmem>>, vector<1x32xf32>
    %244 = vector.broadcast %243 : vector<1x32xf32> to vector<16x32xf32>
    %245 = arith.addf %242, %244 : vector<16x32xf32>
    %246 = arith.addf %1, %245 : vector<16x32xf32>
    %c0_131 = arith.constant 0 : index
    %c0_132 = arith.constant 0 : index
    %247 = vector.load %arg31[%c0_131, %c0_132] : memref<1x32xf32, #tpu.memory_space<vmem>>, vector<1x32xf32>
    %c0_133 = arith.constant 0 : index
    %c0_134 = arith.constant 0 : index
    %248 = vector.load %arg30[%c0_133, %c0_134] : memref<1x32xf32, #tpu.memory_space<vmem>>, vector<1x32xf32>
    %cst_135 = arith.constant dense<0.000000e+00> : vector<16xf32>
    %249 = vector.multi_reduction <add>, %246, %cst_135 [1] : vector<16x32xf32> to vector<16xf32>
    %250 = vector.shape_cast %249 : vector<16xf32> to vector<16x1xf32>
    %cst_136 = arith.constant 3.200000e+01 : f32
    %251 = vector.broadcast %cst_136 : f32 to vector<16x1xf32>
    %252 = arith.divf %250, %251 : vector<16x1xf32>
    %253 = vector.broadcast %252 : vector<16x1xf32> to vector<16x32xf32>
    %254 = arith.subf %246, %253 : vector<16x32xf32>
    %255 = arith.mulf %254, %254 : vector<16x32xf32>
    %cst_137 = arith.constant dense<0.000000e+00> : vector<16xf32>
    %256 = vector.multi_reduction <add>, %255, %cst_137 [1] : vector<16x32xf32> to vector<16xf32>
    %257 = vector.shape_cast %256 : vector<16xf32> to vector<16x1xf32>
    %cst_138 = arith.constant 3.200000e+01 : f32
    %258 = vector.broadcast %cst_138 : f32 to vector<16x1xf32>
    %259 = arith.divf %257, %258 : vector<16x1xf32>
    %cst_139 = arith.constant 9.99999974E-6 : f32
    %260 = vector.broadcast %cst_139 : f32 to vector<16x1xf32>
    %261 = arith.addf %259, %260 : vector<16x1xf32>
    %262 = math.rsqrt %261 : vector<16x1xf32>
    %263 = vector.broadcast %262 : vector<16x1xf32> to vector<16x32xf32>
    %264 = arith.mulf %254, %263 : vector<16x32xf32>
    %265 = vector.broadcast %247 : vector<1x32xf32> to vector<16x32xf32>
    %266 = arith.mulf %264, %265 : vector<16x32xf32>
    %267 = vector.broadcast %248 : vector<1x32xf32> to vector<16x32xf32>
    %268 = arith.addf %266, %267 : vector<16x32xf32>
    %c0_140 = arith.constant 0 : index
    %c0_141 = arith.constant 0 : index
    %269 = vector.load %arg32[%c0_140, %c0_141] : memref<32x128xf32, #tpu.memory_space<vmem>>, vector<32x128xf32>
    %cst_142 = arith.constant dense<0.000000e+00> : vector<16x128xf32>
    %270 = tpu.matmul %268, %269, %cst_142 {dimension_numbers = #tpu.dot_dimension_numbers<[1], [0], [0], [1], [0, 0, 1, 1], [], []>} : vector<16x32xf32>, vector<32x128xf32>, vector<16x128xf32> -> vector<16x128xf32>
    %c0_143 = arith.constant 0 : index
    %c0_144 = arith.constant 0 : index
    %271 = vector.load %arg28[%c0_143, %c0_144] : memref<1x128xf32, #tpu.memory_space<vmem>>, vector<1x128xf32>
    %272 = vector.broadcast %271 : vector<1x128xf32> to vector<16x128xf32>
    %273 = arith.addf %270, %272 : vector<16x128xf32>
    %274 = arith.mulf %273, %273 : vector<16x128xf32>
    %275 = arith.mulf %273, %274 : vector<16x128xf32>
    %cst_145 = arith.constant 4.471500e-02 : f32
    %276 = vector.broadcast %cst_145 : f32 to vector<16x128xf32>
    %277 = arith.mulf %276, %275 : vector<16x128xf32>
    %278 = arith.addf %273, %277 : vector<16x128xf32>
    %cst_146 = arith.constant 0.797884583 : f32
    %279 = vector.broadcast %cst_146 : f32 to vector<16x128xf32>
    %280 = arith.mulf %279, %278 : vector<16x128xf32>
    %281 = math.tanh %280 : vector<16x128xf32>
    %cst_147 = arith.constant 1.000000e+00 : f32
    %282 = vector.broadcast %cst_147 : f32 to vector<16x128xf32>
    %283 = arith.addf %282, %281 : vector<16x128xf32>
    %cst_148 = arith.constant 5.000000e-01 : f32
    %284 = vector.broadcast %cst_148 : f32 to vector<16x128xf32>
    %285 = arith.mulf %284, %283 : vector<16x128xf32>
    %286 = arith.mulf %273, %285 : vector<16x128xf32>
    %c0_149 = arith.constant 0 : index
    %c0_150 = arith.constant 0 : index
    %287 = vector.load %arg33[%c0_149, %c0_150] : memref<128x32xf32, #tpu.memory_space<vmem>>, vector<128x32xf32>
    %cst_151 = arith.constant dense<0.000000e+00> : vector<16x32xf32>
    %288 = tpu.matmul %286, %287, %cst_151 {dimension_numbers = #tpu.dot_dimension_numbers<[1], [0], [0], [1], [0, 0, 1, 1], [], []>} : vector<16x128xf32>, vector<128x32xf32>, vector<16x32xf32> -> vector<16x32xf32>
    %c0_152 = arith.constant 0 : index
    %c0_153 = arith.constant 0 : index
    %289 = vector.load %arg29[%c0_152, %c0_153] : memref<1x32xf32, #tpu.memory_space<vmem>>, vector<1x32xf32>
    %290 = vector.broadcast %289 : vector<1x32xf32> to vector<16x32xf32>
    %291 = arith.addf %288, %290 : vector<16x32xf32>
    %292 = arith.addf %246, %291 : vector<16x32xf32>
    %c0_154 = arith.constant 0 : index
    %c0_155 = arith.constant 0 : index
    %293 = vector.load %arg27[%c0_154, %c0_155] : memref<16x16xf32, #tpu.memory_space<vmem>>, vector<16x16xf32>
    %c0_156 = arith.constant 0 : index
    %c0_157 = arith.constant 0 : index
    %c0_158 = arith.constant 0 : index
    %294 = vector.load %arg40[%c0_156, %c0_157, %c0_158] : memref<16x16x16xf32, #tpu.memory_space<vmem>>, vector<16x16x16xf32>
    %c0_159 = arith.constant 0 : index
    %c0_160 = arith.constant 0 : index
    %295 = vector.load %arg21[%c0_159, %c0_160] : memref<1x32xf32, #tpu.memory_space<vmem>>, vector<1x32xf32>
    %c0_161 = arith.constant 0 : index
    %c0_162 = arith.constant 0 : index
    %296 = vector.load %arg18[%c0_161, %c0_162] : memref<1x32xf32, #tpu.memory_space<vmem>>, vector<1x32xf32>
    %cst_163 = arith.constant dense<0.000000e+00> : vector<16xf32>
    %297 = vector.multi_reduction <add>, %292, %cst_163 [1] : vector<16x32xf32> to vector<16xf32>
    %298 = vector.shape_cast %297 : vector<16xf32> to vector<16x1xf32>
    %cst_164 = arith.constant 3.200000e+01 : f32
    %299 = vector.broadcast %cst_164 : f32 to vector<16x1xf32>
    %300 = arith.divf %298, %299 : vector<16x1xf32>
    %301 = vector.broadcast %300 : vector<16x1xf32> to vector<16x32xf32>
    %302 = arith.subf %292, %301 : vector<16x32xf32>
    %303 = arith.mulf %302, %302 : vector<16x32xf32>
    %cst_165 = arith.constant dense<0.000000e+00> : vector<16xf32>
    %304 = vector.multi_reduction <add>, %303, %cst_165 [1] : vector<16x32xf32> to vector<16xf32>
    %305 = vector.shape_cast %304 : vector<16xf32> to vector<16x1xf32>
    %cst_166 = arith.constant 3.200000e+01 : f32
    %306 = vector.broadcast %cst_166 : f32 to vector<16x1xf32>
    %307 = arith.divf %305, %306 : vector<16x1xf32>
    %cst_167 = arith.constant 9.99999974E-6 : f32
    %308 = vector.broadcast %cst_167 : f32 to vector<16x1xf32>
    %309 = arith.addf %307, %308 : vector<16x1xf32>
    %310 = math.rsqrt %309 : vector<16x1xf32>
    %311 = vector.broadcast %310 : vector<16x1xf32> to vector<16x32xf32>
    %312 = arith.mulf %302, %311 : vector<16x32xf32>
    %313 = vector.broadcast %295 : vector<1x32xf32> to vector<16x32xf32>
    %314 = arith.mulf %312, %313 : vector<16x32xf32>
    %315 = vector.broadcast %296 : vector<1x32xf32> to vector<16x32xf32>
    %316 = arith.addf %314, %315 : vector<16x32xf32>
    %c0_168 = arith.constant 0 : index
    %c0_169 = arith.constant 0 : index
    %317 = vector.load %arg20[%c0_168, %c0_169] : memref<1x32xf32, #tpu.memory_space<vmem>>, vector<1x32xf32>
    %c0_170 = arith.constant 0 : index
    %c0_171 = arith.constant 0 : index
    %318 = vector.load %arg16[%c0_170, %c0_171] : memref<1x32xf32, #tpu.memory_space<vmem>>, vector<1x32xf32>
    %cst_172 = arith.constant dense<0.000000e+00> : vector<16xf32>
    %319 = vector.multi_reduction <add>, %292, %cst_172 [1] : vector<16x32xf32> to vector<16xf32>
    %320 = vector.shape_cast %319 : vector<16xf32> to vector<16x1xf32>
    %cst_173 = arith.constant 3.200000e+01 : f32
    %321 = vector.broadcast %cst_173 : f32 to vector<16x1xf32>
    %322 = arith.divf %320, %321 : vector<16x1xf32>
    %323 = vector.broadcast %322 : vector<16x1xf32> to vector<16x32xf32>
    %324 = arith.subf %292, %323 : vector<16x32xf32>
    %325 = arith.mulf %324, %324 : vector<16x32xf32>
    %cst_174 = arith.constant dense<0.000000e+00> : vector<16xf32>
    %326 = vector.multi_reduction <add>, %325, %cst_174 [1] : vector<16x32xf32> to vector<16xf32>
    %327 = vector.shape_cast %326 : vector<16xf32> to vector<16x1xf32>
    %cst_175 = arith.constant 3.200000e+01 : f32
    %328 = vector.broadcast %cst_175 : f32 to vector<16x1xf32>
    %329 = arith.divf %327, %328 : vector<16x1xf32>
    %cst_176 = arith.constant 9.99999974E-6 : f32
    %330 = vector.broadcast %cst_176 : f32 to vector<16x1xf32>
    %331 = arith.addf %329, %330 : vector<16x1xf32>
    %332 = math.rsqrt %331 : vector<16x1xf32>
    %333 = vector.broadcast %332 : vector<16x1xf32> to vector<16x32xf32>
    %334 = arith.mulf %324, %333 : vector<16x32xf32>
    %335 = vector.broadcast %317 : vector<1x32xf32> to vector<16x32xf32>
    %336 = arith.mulf %334, %335 : vector<16x32xf32>
    %337 = vector.broadcast %318 : vector<1x32xf32> to vector<16x32xf32>
    %338 = arith.addf %336, %337 : vector<16x32xf32>
    %c0_177 = arith.constant 0 : index
    %c0_178 = arith.constant 0 : index
    %339 = vector.load %arg22[%c0_177, %c0_178] : memref<1x32xf32, #tpu.memory_space<vmem>>, vector<1x32xf32>
    %c0_179 = arith.constant 0 : index
    %c0_180 = arith.constant 0 : index
    %340 = vector.load %arg19[%c0_179, %c0_180] : memref<1x32xf32, #tpu.memory_space<vmem>>, vector<1x32xf32>
    %cst_181 = arith.constant dense<0.000000e+00> : vector<16xf32>
    %341 = vector.multi_reduction <add>, %292, %cst_181 [1] : vector<16x32xf32> to vector<16xf32>
    %342 = vector.shape_cast %341 : vector<16xf32> to vector<16x1xf32>
    %cst_182 = arith.constant 3.200000e+01 : f32
    %343 = vector.broadcast %cst_182 : f32 to vector<16x1xf32>
    %344 = arith.divf %342, %343 : vector<16x1xf32>
    %345 = vector.broadcast %344 : vector<16x1xf32> to vector<16x32xf32>
    %346 = arith.subf %292, %345 : vector<16x32xf32>
    %347 = arith.mulf %346, %346 : vector<16x32xf32>
    %cst_183 = arith.constant dense<0.000000e+00> : vector<16xf32>
    %348 = vector.multi_reduction <add>, %347, %cst_183 [1] : vector<16x32xf32> to vector<16xf32>
    %349 = vector.shape_cast %348 : vector<16xf32> to vector<16x1xf32>
    %cst_184 = arith.constant 3.200000e+01 : f32
    %350 = vector.broadcast %cst_184 : f32 to vector<16x1xf32>
    %351 = arith.divf %349, %350 : vector<16x1xf32>
    %cst_185 = arith.constant 9.99999974E-6 : f32
    %352 = vector.broadcast %cst_185 : f32 to vector<16x1xf32>
    %353 = arith.addf %351, %352 : vector<16x1xf32>
    %354 = math.rsqrt %353 : vector<16x1xf32>
    %355 = vector.broadcast %354 : vector<16x1xf32> to vector<16x32xf32>
    %356 = arith.mulf %346, %355 : vector<16x32xf32>
    %357 = vector.broadcast %339 : vector<1x32xf32> to vector<16x32xf32>
    %358 = arith.mulf %356, %357 : vector<16x32xf32>
    %359 = vector.broadcast %340 : vector<1x32xf32> to vector<16x32xf32>
    %360 = arith.addf %358, %359 : vector<16x32xf32>
    %c0_186 = arith.constant 0 : index
    %c0_187 = arith.constant 0 : index
    %361 = vector.load %arg25[%c0_186, %c0_187] : memref<32x32xf32, #tpu.memory_space<vmem>>, vector<32x32xf32>
    %cst_188 = arith.constant dense<0.000000e+00> : vector<32x16xf32>
    %362 = tpu.matmul %361, %316, %cst_188 {dimension_numbers = #tpu.dot_dimension_numbers<[1], [1], [0], [0], [0, 0, 1, 0], [], []>} : vector<32x32xf32>, vector<16x32xf32>, vector<32x16xf32> -> vector<32x16xf32>
    %c0_189 = arith.constant 0 : index
    %c0_190 = arith.constant 0 : index
    %363 = vector.load %arg23[%c0_189, %c0_190] : memref<32x32xf32, #tpu.memory_space<vmem>>, vector<32x32xf32>
    %cst_191 = arith.constant dense<0.000000e+00> : vector<32x16xf32>
    %364 = tpu.matmul %363, %338, %cst_191 {dimension_numbers = #tpu.dot_dimension_numbers<[1], [1], [0], [0], [0, 0, 1, 0], [], []>} : vector<32x32xf32>, vector<16x32xf32>, vector<32x16xf32> -> vector<32x16xf32>
    %c0_192 = arith.constant 0 : index
    %c0_193 = arith.constant 0 : index
    %365 = vector.load %arg26[%c0_192, %c0_193] : memref<32x32xf32, #tpu.memory_space<vmem>>, vector<32x32xf32>
    %cst_194 = arith.constant dense<0.000000e+00> : vector<32x16xf32>
    %366 = tpu.matmul %365, %360, %cst_194 {dimension_numbers = #tpu.dot_dimension_numbers<[1], [1], [0], [0], [0, 0, 1, 0], [], []>} : vector<32x32xf32>, vector<16x32xf32>, vector<32x16xf32> -> vector<32x16xf32>
    %367 = vector.shape_cast %362 : vector<32x16xf32> to vector<2x16x16xf32>
    %368 = vector.shape_cast %364 : vector<32x16xf32> to vector<2x16x16xf32>
    %369 = vector.shape_cast %366 : vector<32x16xf32> to vector<2x16x16xf32>
    %cst_195 = arith.constant dense<0.000000e+00> : vector<2x16x16xf32>
    %370 = tpu.matmul %367, %368, %cst_195 {dimension_numbers = #tpu.dot_dimension_numbers<[1], [1], [2], [2], [0, 0, 0, 2, 1, 2], [0], [0]>} : vector<2x16x16xf32>, vector<2x16x16xf32>, vector<2x16x16xf32> -> vector<2x16x16xf32>
    %371 = vector.shape_cast %367 : vector<2x16x16xf32> to vector<2x16x16x1xf32>
    %372 = vector.shape_cast %294 : vector<16x16x16xf32> to vector<1x16x16x16xf32>
    %373 = vector.broadcast %371 : vector<2x16x16x1xf32> to vector<2x16x16x16xf32>
    %374 = vector.broadcast %372 : vector<1x16x16x16xf32> to vector<2x16x16x16xf32>
    %375 = arith.mulf %373, %374 : vector<2x16x16x16xf32>
    %cst_196 = arith.constant dense<0.000000e+00> : vector<2x16x16xf32>
    %376 = vector.multi_reduction <add>, %375, %cst_196 [1] : vector<2x16x16x16xf32> to vector<2x16x16xf32>
    %377 = arith.addf %370, %376 : vector<2x16x16xf32>
    %378 = vector.shape_cast %293 : vector<16x16xf32> to vector<1x16x16xf32>
    %379 = vector.broadcast %378 : vector<1x16x16xf32> to vector<2x16x16xf32>
    %380 = arith.addf %377, %379 : vector<2x16x16xf32>
    %cst_197 = arith.constant dense<0xFF800000> : vector<2x16xf32>
    %381 = vector.multi_reduction <maximumf>, %380, %cst_197 [2] : vector<2x16x16xf32> to vector<2x16xf32>
    %382 = vector.shape_cast %381 : vector<2x16xf32> to vector<2x16x1xf32>
    %383 = vector.broadcast %382 : vector<2x16x1xf32> to vector<2x16x16xf32>
    %384 = arith.subf %380, %383 : vector<2x16x16xf32>
    %385 = math.exp %384 : vector<2x16x16xf32>
    %cst_198 = arith.constant dense<0.000000e+00> : vector<2x16xf32>
    %386 = vector.multi_reduction <add>, %385, %cst_198 [2] : vector<2x16x16xf32> to vector<2x16xf32>
    %387 = vector.shape_cast %386 : vector<2x16xf32> to vector<2x16x1xf32>
    %388 = tpu.reciprocal %387 {approx = true} : vector<2x16x1xf32> -> vector<2x16x1xf32>
    %389 = vector.broadcast %388 : vector<2x16x1xf32> to vector<2x16x16xf32>
    %390 = arith.mulf %385, %389 : vector<2x16x16xf32>
    %cst_199 = arith.constant dense<0.000000e+00> : vector<2x16x16xf32>
    %391 = tpu.matmul %369, %390, %cst_199 {dimension_numbers = #tpu.dot_dimension_numbers<[2], [2], [1], [1], [0, 0, 0, 1, 1, 1], [0], [0]>} : vector<2x16x16xf32>, vector<2x16x16xf32>, vector<2x16x16xf32> -> vector<2x16x16xf32>
    %392 = vector.shape_cast %391 : vector<2x16x16xf32> to vector<32x16xf32>
    %c0_200 = arith.constant 0 : index
    %c0_201 = arith.constant 0 : index
    %393 = vector.load %arg24[%c0_200, %c0_201] : memref<32x32xf32, #tpu.memory_space<vmem>>, vector<32x32xf32>
    %cst_202 = arith.constant dense<0.000000e+00> : vector<16x32xf32>
    %394 = tpu.matmul %392, %393, %cst_202 {dimension_numbers = #tpu.dot_dimension_numbers<[0], [0], [1], [1], [0, 1, 1, 1], [], []>} : vector<32x16xf32>, vector<32x32xf32>, vector<16x32xf32> -> vector<16x32xf32>
    %c0_203 = arith.constant 0 : index
    %c0_204 = arith.constant 0 : index
    %395 = vector.load %arg17[%c0_203, %c0_204] : memref<1x32xf32, #tpu.memory_space<vmem>>, vector<1x32xf32>
    %396 = vector.broadcast %395 : vector<1x32xf32> to vector<16x32xf32>
    %397 = arith.addf %394, %396 : vector<16x32xf32>
    %398 = arith.addf %292, %397 : vector<16x32xf32>
    %c0_205 = arith.constant 0 : index
    %c0_206 = arith.constant 0 : index
    %399 = vector.load %arg37[%c0_205, %c0_206] : memref<1x32xf32, #tpu.memory_space<vmem>>, vector<1x32xf32>
    %c0_207 = arith.constant 0 : index
    %c0_208 = arith.constant 0 : index
    %400 = vector.load %arg36[%c0_207, %c0_208] : memref<1x32xf32, #tpu.memory_space<vmem>>, vector<1x32xf32>
    %cst_209 = arith.constant dense<0.000000e+00> : vector<16xf32>
    %401 = vector.multi_reduction <add>, %398, %cst_209 [1] : vector<16x32xf32> to vector<16xf32>
    %402 = vector.shape_cast %401 : vector<16xf32> to vector<16x1xf32>
    %cst_210 = arith.constant 3.200000e+01 : f32
    %403 = vector.broadcast %cst_210 : f32 to vector<16x1xf32>
    %404 = arith.divf %402, %403 : vector<16x1xf32>
    %405 = vector.broadcast %404 : vector<16x1xf32> to vector<16x32xf32>
    %406 = arith.subf %398, %405 : vector<16x32xf32>
    %407 = arith.mulf %406, %406 : vector<16x32xf32>
    %cst_211 = arith.constant dense<0.000000e+00> : vector<16xf32>
    %408 = vector.multi_reduction <add>, %407, %cst_211 [1] : vector<16x32xf32> to vector<16xf32>
    %409 = vector.shape_cast %408 : vector<16xf32> to vector<16x1xf32>
    %cst_212 = arith.constant 3.200000e+01 : f32
    %410 = vector.broadcast %cst_212 : f32 to vector<16x1xf32>
    %411 = arith.divf %409, %410 : vector<16x1xf32>
    %cst_213 = arith.constant 9.99999974E-6 : f32
    %412 = vector.broadcast %cst_213 : f32 to vector<16x1xf32>
    %413 = arith.addf %411, %412 : vector<16x1xf32>
    %414 = math.rsqrt %413 : vector<16x1xf32>
    %415 = vector.broadcast %414 : vector<16x1xf32> to vector<16x32xf32>
    %416 = arith.mulf %406, %415 : vector<16x32xf32>
    %417 = vector.broadcast %399 : vector<1x32xf32> to vector<16x32xf32>
    %418 = arith.mulf %416, %417 : vector<16x32xf32>
    %419 = vector.broadcast %400 : vector<1x32xf32> to vector<16x32xf32>
    %420 = arith.addf %418, %419 : vector<16x32xf32>
    %c0_214 = arith.constant 0 : index
    %c0_215 = arith.constant 0 : index
    %421 = vector.load %arg38[%c0_214, %c0_215] : memref<32x128xf32, #tpu.memory_space<vmem>>, vector<32x128xf32>
    %cst_216 = arith.constant dense<0.000000e+00> : vector<16x128xf32>
    %422 = tpu.matmul %420, %421, %cst_216 {dimension_numbers = #tpu.dot_dimension_numbers<[1], [0], [0], [1], [0, 0, 1, 1], [], []>} : vector<16x32xf32>, vector<32x128xf32>, vector<16x128xf32> -> vector<16x128xf32>
    %c0_217 = arith.constant 0 : index
    %c0_218 = arith.constant 0 : index
    %423 = vector.load %arg34[%c0_217, %c0_218] : memref<1x128xf32, #tpu.memory_space<vmem>>, vector<1x128xf32>
    %424 = vector.broadcast %423 : vector<1x128xf32> to vector<16x128xf32>
    %425 = arith.addf %422, %424 : vector<16x128xf32>
    %426 = arith.mulf %425, %425 : vector<16x128xf32>
    %427 = arith.mulf %425, %426 : vector<16x128xf32>
    %cst_219 = arith.constant 4.471500e-02 : f32
    %428 = vector.broadcast %cst_219 : f32 to vector<16x128xf32>
    %429 = arith.mulf %428, %427 : vector<16x128xf32>
    %430 = arith.addf %425, %429 : vector<16x128xf32>
    %cst_220 = arith.constant 0.797884583 : f32
    %431 = vector.broadcast %cst_220 : f32 to vector<16x128xf32>
    %432 = arith.mulf %431, %430 : vector<16x128xf32>
    %433 = math.tanh %432 : vector<16x128xf32>
    %cst_221 = arith.constant 1.000000e+00 : f32
    %434 = vector.broadcast %cst_221 : f32 to vector<16x128xf32>
    %435 = arith.addf %434, %433 : vector<16x128xf32>
    %cst_222 = arith.constant 5.000000e-01 : f32
    %436 = vector.broadcast %cst_222 : f32 to vector<16x128xf32>
    %437 = arith.mulf %436, %435 : vector<16x128xf32>
    %438 = arith.mulf %425, %437 : vector<16x128xf32>
    %c0_223 = arith.constant 0 : index
    %c0_224 = arith.constant 0 : index
    %439 = vector.load %arg39[%c0_223, %c0_224] : memref<128x32xf32, #tpu.memory_space<vmem>>, vector<128x32xf32>
    %cst_225 = arith.constant dense<0.000000e+00> : vector<16x32xf32>
    %440 = tpu.matmul %438, %439, %cst_225 {dimension_numbers = #tpu.dot_dimension_numbers<[1], [0], [0], [1], [0, 0, 1, 1], [], []>} : vector<16x128xf32>, vector<128x32xf32>, vector<16x32xf32> -> vector<16x32xf32>
    %c0_226 = arith.constant 0 : index
    %c0_227 = arith.constant 0 : index
    %441 = vector.load %arg35[%c0_226, %c0_227] : memref<1x32xf32, #tpu.memory_space<vmem>>, vector<1x32xf32>
    %442 = vector.broadcast %441 : vector<1x32xf32> to vector<16x32xf32>
    %443 = arith.addf %440, %442 : vector<16x32xf32>
    %444 = arith.addf %398, %443 : vector<16x32xf32>
    %c0_228 = arith.constant 0 : index
    %c0_229 = arith.constant 0 : index
    %c0_230 = arith.constant 0 : index
    %445 = vector.load %arg60[%c0_228, %c0_229, %c0_230] : memref<1x16x32xf32, #tpu.memory_space<vmem>>, vector<1x16x32xf32>
    %446 = vector.shape_cast %445 : vector<1x16x32xf32> to vector<16x32xf32>
    %447 = vector.shape_cast %444 : vector<16x32xf32> to vector<1x16x32xf32>
    tpu.vector_store %arg60[%c0_228, %c0_229, %c0_230], %447 {strides = array<i32>} : memref<1x16x32xf32, #tpu.memory_space<vmem>>, vector<1x16x32xf32>,
    return
  }
  func.func @transform_0(%arg0: i32) -> (i32, i32, i32) {
    %c0_i32 = arith.constant 0 : i32
    %c0_i32_0 = arith.constant 0 : i32
    %c0_i32_1 = arith.constant 0 : i32
    return %arg0, %c0_i32, %c0_i32_0 : i32, i32, i32
  }
  func.func @transform_1(%arg0: i32) -> (i32, i32, i32) {
    %c0_i32 = arith.constant 0 : i32
    %c0_i32_0 = arith.constant 0 : i32
    %c0_i32_1 = arith.constant 0 : i32
    return %arg0, %c0_i32, %c0_i32_0 : i32, i32, i32
  }
  func.func @transform_2(%arg0: i32) -> (i32, i32, i32, i32) {
    %c0_i32 = arith.constant 0 : i32
    %c0_i32_0 = arith.constant 0 : i32
    %c0_i32_1 = arith.constant 0 : i32
    %c0_i32_2 = arith.constant 0 : i32
    return %arg0, %c0_i32, %c0_i32_0, %c0_i32_1 : i32, i32, i32, i32
  }
  func.func @transform_3(%arg0: i32) -> (i32, i32, i32, i32) {
    %c0_i32 = arith.constant 0 : i32
    %c0_i32_0 = arith.constant 0 : i32
    %c0_i32_1 = arith.constant 0 : i32
    %c0_i32_2 = arith.constant 0 : i32
    return %arg0, %c0_i32, %c0_i32_0, %c0_i32_1 : i32, i32, i32, i32
  }
  func.func @transform_4(%arg0: i32) -> (i32, i32) {
    %c0_i32 = arith.constant 0 : i32
    %c0_i32_0 = arith.constant 0 : i32
    %c0_i32_1 = arith.constant 0 : i32
    return %c0_i32, %c0_i32_0 : i32, i32
  }
  func.func @transform_5(%arg0: i32) -> (i32, i32) {
    %c0_i32 = arith.constant 0 : i32
    %c0_i32_0 = arith.constant 0 : i32
    %c0_i32_1 = arith.constant 0 : i32
    return %c0_i32, %c0_i32_0 : i32, i32
  }
  func.func @transform_6(%arg0: i32) -> (i32, i32) {
    %c0_i32 = arith.constant 0 : i32
    %c0_i32_0 = arith.constant 0 : i32
    %c0_i32_1 = arith.constant 0 : i32
    return %c0_i32, %c0_i32_0 : i32, i32
  }
  func.func @transform_7(%arg0: i32) -> (i32, i32) {
    %c0_i32 = arith.constant 0 : i32
    %c0_i32_0 = arith.constant 0 : i32
    %c0_i32_1 = arith.constant 0 : i32
    return %c0_i32, %c0_i32_0 : i32, i32
  }
  func.func @transform_8(%arg0: i32) -> (i32, i32) {
    %c0_i32 = arith.constant 0 : i32
    %c0_i32_0 = arith.constant 0 : i32
    %c0_i32_1 = arith.constant 0 : i32
    return %c0_i32, %c0_i32_0 : i32, i32
  }
  func.func @transform_9(%arg0: i32) -> (i32, i32) {
    %c0_i32 = arith.constant 0 : i32
    %c0_i32_0 = arith.constant 0 : i32
    %c0_i32_1 = arith.constant 0 : i32
    return %c0_i32, %c0_i32_0 : i32, i32
  }
  func.func @transform_10(%arg0: i32) -> (i32, i32) {
    %c0_i32 = arith.constant 0 : i32
    %c0_i32_0 = arith.constant 0 : i32
    %c0_i32_1 = arith.constant 0 : i32
    return %c0_i32, %c0_i32_0 : i32, i32
  }
  func.func @transform_11(%arg0: i32) -> (i32, i32) {
    %c0_i32 = arith.constant 0 : i32
    %c0_i32_0 = arith.constant 0 : i32
    %c0_i32_1 = arith.constant 0 : i32
    return %c0_i32, %c0_i32_0 : i32, i32
  }
  func.func @transform_12(%arg0: i32) -> (i32, i32) {
    %c0_i32 = arith.constant 0 : i32
    %c0_i32_0 = arith.constant 0 : i32
    %c0_i32_1 = arith.constant 0 : i32
    return %c0_i32, %c0_i32_0 : i32, i32
  }
  func.func @transform_13(%arg0: i32) -> (i32, i32) {
    %c0_i32 = arith.constant 0 : i32
    %c0_i32_0 = arith.constant 0 : i32
    %c0_i32_1 = arith.constant 0 : i32
    return %c0_i32, %c0_i32_0 : i32, i32
  }
  func.func @transform_14(%arg0: i32) -> (i32, i32) {
    %c0_i32 = arith.constant 0 : i32
    %c0_i32_0 = arith.constant 0 : i32
    %c0_i32_1 = arith.constant 0 : i32
    return %c0_i32, %c0_i32_0 : i32, i32
  }
  func.func @transform_15(%arg0: i32) -> (i32, i32) {
    %c0_i32 = arith.constant 0 : i32
    %c0_i32_0 = arith.constant 0 : i32
    %c0_i32_1 = arith.constant 0 : i32
    return %c0_i32, %c0_i32_0 : i32, i32
  }
  func.func @transform_16(%arg0: i32) -> (i32, i32) {
    %c0_i32 = arith.constant 0 : i32
    %c0_i32_0 = arith.constant 0 : i32
    %c0_i32_1 = arith.constant 0 : i32
    return %c0_i32, %c0_i32_0 : i32, i32
  }
  func.func @transform_17(%arg0: i32) -> (i32, i32) {
    %c0_i32 = arith.constant 0 : i32
    %c0_i32_0 = arith.constant 0 : i32
    %c0_i32_1 = arith.constant 0 : i32
    return %c0_i32, %c0_i32_0 : i32, i32
  }
  func.func @transform_18(%arg0: i32) -> (i32, i32) {
    %c0_i32 = arith.constant 0 : i32
    %c0_i32_0 = arith.constant 0 : i32
    %c0_i32_1 = arith.constant 0 : i32
    return %c0_i32, %c0_i32_0 : i32, i32
  }
  func.func @transform_19(%arg0: i32) -> (i32, i32) {
    %c0_i32 = arith.constant 0 : i32
    %c0_i32_0 = arith.constant 0 : i32
    %c0_i32_1 = arith.constant 0 : i32
    return %c0_i32, %c0_i32_0 : i32, i32
  }
  func.func @transform_20(%arg0: i32) -> (i32, i32) {
    %c0_i32 = arith.constant 0 : i32
    %c0_i32_0 = arith.constant 0 : i32
    %c0_i32_1 = arith.constant 0 : i32
    return %c0_i32, %c0_i32_0 : i32, i32
  }
  func.func @transform_21(%arg0: i32) -> (i32, i32) {
    %c0_i32 = arith.constant 0 : i32
    %c0_i32_0 = arith.constant 0 : i32
    %c0_i32_1 = arith.constant 0 : i32
    return %c0_i32, %c0_i32_0 : i32, i32
  }
  func.func @transform_22(%arg0: i32) -> (i32, i32) {
    %c0_i32 = arith.constant 0 : i32
    %c0_i32_0 = arith.constant 0 : i32
    %c0_i32_1 = arith.constant 0 : i32
    return %c0_i32, %c0_i32_0 : i32, i32
  }
  func.func @transform_23(%arg0: i32) -> (i32, i32) {
    %c0_i32 = arith.constant 0 : i32
    %c0_i32_0 = arith.constant 0 : i32
    %c0_i32_1 = arith.constant 0 : i32
    return %c0_i32, %c0_i32_0 : i32, i32
  }
  func.func @transform_24(%arg0: i32) -> (i32, i32) {
    %c0_i32 = arith.constant 0 : i32
    %c0_i32_0 = arith.constant 0 : i32
    %c0_i32_1 = arith.constant 0 : i32
    return %c0_i32, %c0_i32_0 : i32, i32
  }
  func.func @transform_25(%arg0: i32) -> (i32, i32) {
    %c0_i32 = arith.constant 0 : i32
    %c0_i32_0 = arith.constant 0 : i32
    %c0_i32_1 = arith.constant 0 : i32
    return %c0_i32, %c0_i32_0 : i32, i32
  }
  func.func @transform_26(%arg0: i32) -> (i32, i32) {
    %c0_i32 = arith.constant 0 : i32
    %c0_i32_0 = arith.constant 0 : i32
    %c0_i32_1 = arith.constant 0 : i32
    return %c0_i32, %c0_i32_0 : i32, i32
  }
  func.func @transform_27(%arg0: i32) -> (i32, i32) {
    %c0_i32 = arith.constant 0 : i32
    %c0_i32_0 = arith.constant 0 : i32
    %c0_i32_1 = arith.constant 0 : i32
    return %c0_i32, %c0_i32_0 : i32, i32
  }
  func.func @transform_28(%arg0: i32) -> (i32, i32) {
    %c0_i32 = arith.constant 0 : i32
    %c0_i32_0 = arith.constant 0 : i32
    %c0_i32_1 = arith.constant 0 : i32
    return %c0_i32, %c0_i32_0 : i32, i32
  }
  func.func @transform_29(%arg0: i32) -> (i32, i32) {
    %c0_i32 = arith.constant 0 : i32
    %c0_i32_0 = arith.constant 0 : i32
    %c0_i32_1 = arith.constant 0 : i32
    return %c0_i32, %c0_i32_0 : i32, i32
  }
  func.func @transform_30(%arg0: i32) -> (i32, i32) {
    %c0_i32 = arith.constant 0 : i32
    %c0_i32_0 = arith.constant 0 : i32
    %c0_i32_1 = arith.constant 0 : i32
    return %c0_i32, %c0_i32_0 : i32, i32
  }
  func.func @transform_31(%arg0: i32) -> (i32, i32) {
    %c0_i32 = arith.constant 0 : i32
    %c0_i32_0 = arith.constant 0 : i32
    %c0_i32_1 = arith.constant 0 : i32
    return %c0_i32, %c0_i32_0 : i32, i32
  }
  func.func @transform_32(%arg0: i32) -> (i32, i32) {
    %c0_i32 = arith.constant 0 : i32
    %c0_i32_0 = arith.constant 0 : i32
    %c0_i32_1 = arith.constant 0 : i32
    return %c0_i32, %c0_i32_0 : i32, i32
  }
  func.func @transform_33(%arg0: i32) -> (i32, i32) {
    %c0_i32 = arith.constant 0 : i32
    %c0_i32_0 = arith.constant 0 : i32
    %c0_i32_1 = arith.constant 0 : i32
    return %c0_i32, %c0_i32_0 : i32, i32
  }
  func.func @transform_34(%arg0: i32) -> (i32, i32) {
    %c0_i32 = arith.constant 0 : i32
    %c0_i32_0 = arith.constant 0 : i32
    %c0_i32_1 = arith.constant 0 : i32
    return %c0_i32, %c0_i32_0 : i32, i32
  }
  func.func @transform_35(%arg0: i32) -> (i32, i32) {
    %c0_i32 = arith.constant 0 : i32
    %c0_i32_0 = arith.constant 0 : i32
    %c0_i32_1 = arith.constant 0 : i32
    return %c0_i32, %c0_i32_0 : i32, i32
  }
  func.func @transform_36(%arg0: i32) -> (i32, i32) {
    %c0_i32 = arith.constant 0 : i32
    %c0_i32_0 = arith.constant 0 : i32
    %c0_i32_1 = arith.constant 0 : i32
    return %c0_i32, %c0_i32_0 : i32, i32
  }
  func.func @transform_37(%arg0: i32) -> (i32, i32) {
    %c0_i32 = arith.constant 0 : i32
    %c0_i32_0 = arith.constant 0 : i32
    %c0_i32_1 = arith.constant 0 : i32
    return %c0_i32, %c0_i32_0 : i32, i32
  }
  func.func @transform_38(%arg0: i32) -> (i32, i32) {
    %c0_i32 = arith.constant 0 : i32
    %c0_i32_0 = arith.constant 0 : i32
    %c0_i32_1 = arith.constant 0 : i32
    return %c0_i32, %c0_i32_0 : i32, i32
  }
  func.func @transform_39(%arg0: i32) -> (i32, i32, i32) {
    %c0_i32 = arith.constant 0 : i32
    %c0_i32_0 = arith.constant 0 : i32
    %c0_i32_1 = arith.constant 0 : i32
    %c0_i32_2 = arith.constant 0 : i32
    return %c0_i32, %c0_i32_0, %c0_i32_1 : i32, i32, i32
  }
  func.func @transform_40(%arg0: i32) -> (i32, i32) {
    %c0_i32 = arith.constant 0 : i32
    %c0_i32_0 = arith.constant 0 : i32
    %c0_i32_1 = arith.constant 0 : i32
    return %c0_i32, %c0_i32_0 : i32, i32
  }
  func.func @transform_41(%arg0: i32) -> (i32, i32) {
    %c0_i32 = arith.constant 0 : i32
    %c0_i32_0 = arith.constant 0 : i32
    %c0_i32_1 = arith.constant 0 : i32
    return %c0_i32, %c0_i32_0 : i32, i32
  }
  func.func @transform_42(%arg0: i32) -> (i32, i32) {
    %c0_i32 = arith.constant 0 : i32
    %c0_i32_0 = arith.constant 0 : i32
    %c0_i32_1 = arith.constant 0 : i32
    return %c0_i32, %c0_i32_0 : i32, i32
  }
  func.func @transform_43(%arg0: i32) -> (i32, i32) {
    %c0_i32 = arith.constant 0 : i32
    %c0_i32_0 = arith.constant 0 : i32
    %c0_i32_1 = arith.constant 0 : i32
    return %c0_i32, %c0_i32_0 : i32, i32
  }
  func.func @transform_44(%arg0: i32) -> (i32, i32) {
    %c0_i32 = arith.constant 0 : i32
    %c0_i32_0 = arith.constant 0 : i32
    %c0_i32_1 = arith.constant 0 : i32
    return %c0_i32, %c0_i32_0 : i32, i32
  }
  func.func @transform_45(%arg0: i32) -> (i32, i32) {
    %c0_i32 = arith.constant 0 : i32
    %c0_i32_0 = arith.constant 0 : i32
    %c0_i32_1 = arith.constant 0 : i32
    return %c0_i32, %c0_i32_0 : i32, i32
  }
  func.func @transform_46(%arg0: i32) -> (i32, i32) {
    %c0_i32 = arith.constant 0 : i32
    %c0_i32_0 = arith.constant 0 : i32
    %c0_i32_1 = arith.constant 0 : i32
    return %c0_i32, %c0_i32_0 : i32, i32
  }
  func.func @transform_47(%arg0: i32) -> (i32, i32) {
    %c0_i32 = arith.constant 0 : i32
    %c0_i32_0 = arith.constant 0 : i32
    %c0_i32_1 = arith.constant 0 : i32
    return %c0_i32, %c0_i32_0 : i32, i32
  }
  func.func @transform_48(%arg0: i32) -> (i32, i32) {
    %c0_i32 = arith.constant 0 : i32
    %c0_i32_0 = arith.constant 0 : i32
    %c0_i32_1 = arith.constant 0 : i32
    return %c0_i32, %c0_i32_0 : i32, i32
  }
  func.func @transform_49(%arg0: i32) -> (i32, i32) {
    %c0_i32 = arith.constant 0 : i32
    %c0_i32_0 = arith.constant 0 : i32
    %c0_i32_1 = arith.constant 0 : i32
    return %c0_i32, %c0_i32_0 : i32, i32
  }
  func.func @transform_50(%arg0: i32) -> (i32, i32) {
    %c0_i32 = arith.constant 0 : i32
    %c0_i32_0 = arith.constant 0 : i32
    %c0_i32_1 = arith.constant 0 : i32
    return %c0_i32, %c0_i32_0 : i32, i32
  }
  func.func @transform_51(%arg0: i32) -> (i32, i32) {
    %c0_i32 = arith.constant 0 : i32
    %c0_i32_0 = arith.constant 0 : i32
    %c0_i32_1 = arith.constant 0 : i32
    return %c0_i32, %c0_i32_0 : i32, i32
  }
  func.func @transform_52(%arg0: i32) -> (i32, i32) {
    %c0_i32 = arith.constant 0 : i32
    %c0_i32_0 = arith.constant 0 : i32
    %c0_i32_1 = arith.constant 0 : i32
    return %c0_i32, %c0_i32_0 : i32, i32
  }
  func.func @transform_53(%arg0: i32) -> (i32, i32) {
    %c0_i32 = arith.constant 0 : i32
    %c0_i32_0 = arith.constant 0 : i32
    %c0_i32_1 = arith.constant 0 : i32
    return %c0_i32, %c0_i32_0 : i32, i32
  }
  func.func @transform_54(%arg0: i32) -> (i32, i32) {
    %c0_i32 = arith.constant 0 : i32
    %c0_i32_0 = arith.constant 0 : i32
    %c0_i32_1 = arith.constant 0 : i32
    return %c0_i32, %c0_i32_0 : i32, i32
  }
  func.func @transform_55(%arg0: i32) -> (i32, i32) {
    %c0_i32 = arith.constant 0 : i32
    %c0_i32_0 = arith.constant 0 : i32
    %c0_i32_1 = arith.constant 0 : i32
    return %c0_i32, %c0_i32_0 : i32, i32
  }
  func.func @transform_56(%arg0: i32) -> (i32, i32) {
    %c0_i32 = arith.constant 0 : i32
    %c0_i32_0 = arith.constant 0 : i32
    %c0_i32_1 = arith.constant 0 : i32
    return %c0_i32, %c0_i32_0 : i32, i32
  }
  func.func @transform_57(%arg0: i32) -> (i32, i32) {
    %c0_i32 = arith.constant 0 : i32
    %c0_i32_0 = arith.constant 0 : i32
    %c0_i32_1 = arith.constant 0 : i32
    return %c0_i32, %c0_i32_0 : i32, i32
  }
  func.func @transform_58(%arg0: i32) -> (i32, i32, i32) {
    %c0_i32 = arith.constant 0 : i32
    %c0_i32_0 = arith.constant 0 : i32
    %c0_i32_1 = arith.constant 0 : i32
    return %arg0, %c0_i32, %c0_i32_0 : i32, i32, i32
  }
  func.func @transform_59(%arg0: i32) -> (i32, i32, i32) {
    %c0_i32 = arith.constant 0 : i32
    %c0_i32_0 = arith.constant 0 : i32
    %c0_i32_1 = arith.constant 0 : i32
    return %arg0, %c0_i32, %c0_i32_0 : i32, i32, i32
  }
}

</mosaic_0001>

<bundles_post_ra>
// kernel: vip_block_forward.1
= control target key start
LH: loop header
LB: loop body
LE: loop exit
PB: predicated region body
PF: predicated region fallthrough
CT: control target
= control target key end

     0   :  { %s9680_s6 = smov 1   ;;  %s9681_s10 = smov 2   ;;  %s11550_s0 = inlined_call_operand.smem [shape: u32[60], index: -1, kind: input, shape index: {}] }
   0x1   :  { %s9799_s5 = sld [smem:[%s11550_s0]]   ;;  %s9682_s14 = smov 3  }
   0x2   :  { %s9804_s9 = sld [smem:[%s11550_s0 + %s9680_s6]]   ;;  %s9683_s18 = smov 4  }
   0x3   :  { %s9809_s13 = sld [smem:[%s11550_s0 + %s9681_s10]]   ;;  %s9684_s22 = smov 5  }
   0x4   :  { %s9814_s17 = sld [smem:[%s11550_s0 + %s9682_s14]]   ;;  %s9685_s26 = smov 6  }
   0x5   :  { %s9819_s21 = sld [smem:[%s11550_s0 + %s9683_s18]]   ;;  %s9686_s30 = smov 7  }
   0x6   :  { %s9824_s25 = sld [smem:[%s11550_s0 + %s9684_s22]]   ;;  %s9687_s4 = smov 8  }
   0x7   :  { %11624 = sst [smem:[#allocation88_spill]] %s9799_s5  ;;  %s9688_s10 = smov 9  }
   0x8   :  { %11625 = sst [smem:[#allocation89_spill]] %s9804_s9  ;;  %s9689_s15 = smov 10  }
   0x9   :  { %11626 = sst [smem:[#allocation90_spill]] %s9809_s13  ;;  %s9690_s20 = smov 11  }
   0xa   :  { %11627 = sst [smem:[#allocation91_spill]] %s9814_s17  ;;  %s9692_s1 = smov 13  }
   0xb   :  { %11628 = sst [smem:[#allocation92_spill]] %s9819_s21  ;;  %s9693_s7 = smov 14  }
   0xc   :  { %11629 = sst [smem:[#allocation93_spill]] %s9824_s25  ;;  %s9695_s22 = smov 16  }
   0xd   :  { %s9829_s29 = sld [smem:[%s11550_s0 + %s9685_s26]]   ;;  %s9691_s26 = smov 12  }
   0xe   :  { %s9834_s3 = sld [smem:[%s11550_s0 + %s9686_s30]]   ;;  %s9696_s28 = smov 17  }
   0xf   :  { %s9839_s8 = sld [smem:[%s11550_s0 + %s9687_s4]]  }
  0x10   :  { %s9844_s14 = sld [smem:[%s11550_s0 + %s9688_s10]]  }
  0x11   :  { %s9849_s19 = sld [smem:[%s11550_s0 + %s9689_s15]]   ;;  %s9694_s15 = smov 15  }
  0x12   :  { %s9854_s24 = sld [smem:[%s11550_s0 + %s9690_s20]]  }
  0x13   :  { %11630 = sst [smem:[#allocation94_spill]] %s9829_s29 }
  0x14   :  { %11631 = sst [smem:[#allocation95_spill]] %s9834_s3 }
  0x15   :  { %11632 = sst [smem:[#allocation96_spill]] %s9839_s8 }
  0x16   :  { %11633 = sst [smem:[#allocation97_spill]] %s9844_s14 }
  0x17   :  { %11634 = sst [smem:[#allocation98_spill]] %s9849_s19 }
  0x18   :  { %11635 = sst [smem:[#allocation99_spill]] %s9854_s24 }
  0x19   :  { %s9859_s30 = sld [smem:[%s11550_s0 + %s9691_s26]]  }
  0x1a   :  { %s9864_s6 = sld [smem:[%s11550_s0 + %s9692_s1]]  }
  0x1b   :  { %s9869_s12 = sld [smem:[%s11550_s0 + %s9693_s7]]   ;;  %s9697_s7 = smov 18  }
  0x1c   :  { %s9874_s20 = sld [smem:[%s11550_s0 + %s9694_s15]]   ;;  %s9698_s15 = smov 19  }
  0x1d   :  { %s9879_s27 = sld [smem:[%s11550_s0 + %s9695_s22]]   ;;  %s9699_s22 = smov 20  }
  0x1e   :  { %s9884_s4 = sld [smem:[%s11550_s0 + %s9696_s28]]   ;;  %s9700_s28 = smov 21  }
  0x1f   :  { %11636 = sst [smem:[#allocation100_spill]] %s9859_s30 }
  0x20   :  { %11637 = sst [smem:[#allocation101_spill]] %s9864_s6 }
  0x21   :  { %11638 = sst [smem:[#allocation102_spill]] %s9869_s12 }
  0x22   :  { %11639 = sst [smem:[#allocation103_spill]] %s9874_s20 }
  0x23   :  { %11640 = sst [smem:[#allocation104_spill]] %s9879_s27 }
  0x24   :  { %11641 = sst [smem:[#allocation105_spill]] %s9884_s4 }
  0x25   :  { %s9889_s25 = sld [smem:[%s11550_s0 + %s9697_s7]]   ;;  %s9701_s7 = smov 22  }
  0x26   :  { %s9894_s20 = sld [smem:[%s11550_s0 + %s9698_s15]]   ;;  %s9702_s15 = smov 23  }
  0x27   :  { %s9899_s27 = sld [smem:[%s11550_s0 + %s9699_s22]]   ;;  %s9703_s22 = smov 24  }
  0x28   :  { %s9904_s4 = sld [smem:[%s11550_s0 + %s9700_s28]]   ;;  %s9704_s28 = smov 25  }
  0x29   :  { %s9914_s30 = sld [smem:[%s11550_s0 + %s9702_s15]]   ;;  %s9706_s15 = smov 27  }
  0x2a   :  { %s9919_s3 = sld [smem:[%s11550_s0 + %s9703_s22]]   ;;  %s9707_s22 = smov 28  }
  0x2b   :  { %11642 = sst [smem:[#allocation106_spill]] %s9889_s25 }
  0x2c   :  { %11643 = sst [smem:[#allocation107_spill]] %s9894_s20 }
  0x2d   :  { %11644 = sst [smem:[#allocation108_spill]] %s9899_s27 }
  0x2e   :  { %11645 = sst [smem:[#allocation109_spill]] %s9904_s4 }
  0x2f   :  { %s9909_s25 = sld [smem:[%s11550_s0 + %s9701_s7]]   ;;  %s9705_s7 = smov 26  }
  0x30   :  { %11647 = sst [smem:[#allocation111_spill]] %s9914_s30 }
  0x31   :  { %11648 = sst [smem:[#allocation112_spill]] %s9919_s3 }
  0x32   :  { %s9924_s19 = sld [smem:[%s11550_s0 + %s9704_s28]]   ;;  %s9708_s28 = smov 29  }
  0x33   :  { %s9929_s21 = sld [smem:[%s11550_s0 + %s9705_s7]]   ;;  %s9709_s7 = smov 30  }
  0x34   :  { %s9934_s8 = sld [smem:[%s11550_s0 + %s9706_s15]]   ;;  %s9710_s15 = smov 31  }
  0x35   :  { %11646 = sst [smem:[#allocation110_spill]] %s9909_s25 }
  0x36   :  { %s9939_s24 = sld [smem:[%s11550_s0 + %s9707_s22]]   ;;  %s9711_s22 = smov 32  }
  0x37   :  { %s9944_s6 = sld [smem:[%s11550_s0 + %s9708_s28]]   ;;  %s9712_s28 = smov 33  }
  0x38   :  { %s9949_s29 = sld [smem:[%s11550_s0 + %s9709_s7]]   ;;  %s9713_s7 = smov 34  }
  0x39   :  { %11649 = sst [smem:[#allocation113_spill]] %s9929_s21 }
  0x3a   :  { %11650 = sst [smem:[#allocation114_spill]] %s9934_s8 }
  0x3b   :  { %s9954_s14 = sld [smem:[%s11550_s0 + %s9710_s15]]   ;;  %s9714_s15 = smov 35  }
  0x3c   :  { %11651 = sst [smem:[#allocation115_spill]] %s9939_s24 }
  0x3d   :  { %11652 = sst [smem:[#allocation116_spill]] %s9944_s6 }
  0x3e   :  { %11653 = sst [smem:[#allocation117_spill]] %s9949_s29 }
  0x3f   :  { %s9959_s5 = sld [smem:[%s11550_s0 + %s9711_s22]]   ;;  %s9715_s22 = smov 36  }
  0x40   :  { %s9964_s13 = sld [smem:[%s11550_s0 + %s9712_s28]]   ;;  %s9716_s28 = smov 37  }
  0x41   :  { %s9969_s17 = sld [smem:[%s11550_s0 + %s9713_s7]]   ;;  %s9717_s7 = smov 38  }
  0x42   :  { %s9974_s9 = sld [smem:[%s11550_s0 + %s9714_s15]]   ;;  %s9718_s15 = smov 39  }
  0x43   :  { %s9989_s29 = sld [smem:[%s11550_s0 + %s9717_s7]]   ;;  %s9721_s7 = smov 42  }
  0x45   :  { %11654 = sst [smem:[#allocation118_spill]] %s9959_s5 }
  0x46   :  { %11655 = sst [smem:[#allocation119_spill]] %s9964_s13 }
  0x47   :  { %s9979_s5 = sld [smem:[%s11550_s0 + %s9715_s22]]   ;;  %s9719_s22 = smov 40  }
  0x48   :  { %11656 = sst [smem:[#allocation120_spill]] %s9974_s9 }
  0x49   :  { %s9984_s13 = sld [smem:[%s11550_s0 + %s9716_s28]]   ;;  %s9720_s28 = smov 41  }
  0x4a   :  { %11659 = sst [smem:[#allocation123_spill]] %s9989_s29 }
  0x4b   :  { %s9994_s9 = sld [smem:[%s11550_s0 + %s9718_s15]]   ;;  %s9722_s15 = smov 43  }
  0x4c   :  { %s9999_s24 = sld [smem:[%s11550_s0 + %s9719_s22]]   ;;  %s9723_s22 = smov 44  }
  0x4d   :  { %11657 = sst [smem:[#allocation121_spill]] %s9979_s5 }
  0x4e   :  { %s10009_s29 = sld [smem:[%s11550_s0 + %s9721_s7]]   ;;  %s9725_s7 = smov 46  }
  0x4f   :  { %11658 = sst [smem:[#allocation122_spill]] %s9984_s13 }
  0x50   :  { %s10004_s13 = sld [smem:[%s11550_s0 + %s9720_s28]]   ;;  %s9724_s28 = smov 45  }
  0x51   :  { %11660 = sst [smem:[#allocation124_spill]] %s9994_s9 }
  0x52   :  { %s10014_s9 = sld [smem:[%s11550_s0 + %s9722_s15]]   ;;  %s9726_s15 = smov 47  }
  0x53   :  { %s10019_s21 = sld [smem:[%s11550_s0 + %s9723_s22]]   ;;  %s9727_s22 = smov 48  }
  0x54   :  { %s10029_s3 = sld [smem:[%s11550_s0 + %s9725_s7]]   ;;  %s9729_s7 = smov 50  }
  0x55   :  { %s10039_s25 = sld [smem:[%s11550_s0 + %s9727_s22]]   ;;  %s9731_s22 = smov 52  }
  0x56   :  { %11661 = sst [smem:[#allocation125_spill]] %s10004_s13 }
  0x57   :  { %s10024_s13 = sld [smem:[%s11550_s0 + %s9724_s28]]   ;;  %s9728_s28 = smov 49  }
  0x58   :  { %11662 = sst [smem:[#allocation126_spill]] %s10014_s9 }
  0x59   :  { %s10034_s9 = sld [smem:[%s11550_s0 + %s9726_s15]]   ;;  %s9730_s15 = smov 51  }
  0x5a   :  { %11664 = sst [smem:[#allocation128_spill]] %s10029_s3 }
  0x5b   :  { %s10049_s27 = sld [smem:[%s11550_s0 + %s9729_s7]]   ;;  %s9733_s7 = smov 54  }
  0x5c   :  { %s10059_s12 = sld [smem:[%s11550_s0 + %s9731_s22]]   ;;  %s9735_s22 = smov 56  }
  0x5d   :  { %11663 = sst [smem:[#allocation127_spill]] %s10024_s13 }
  0x5e   :  { %s10044_s13 = sld [smem:[%s11550_s0 + %s9728_s28]]   ;;  %s9732_s28 = smov 53  }
  0x5f   :  { %11665 = sst [smem:[#allocation129_spill]] %s10034_s9 }
  0x60   :  { %s10054_s9 = sld [smem:[%s11550_s0 + %s9730_s15]]   ;;  %s9734_s15 = smov 55  }
  0x61   :  { %11667 = sst [smem:[#allocation131_spill]] %s10049_s27 }
  0x62   :  { %11669 = sst [smem:[#allocation133_spill]] %s10059_s12 }
  0x63   :  { %s10069_s27 = sld [smem:[%s11550_s0 + %s9733_s7]]   ;;  %s9737_s7 = smov 58  }
  0x64   :  { %11666 = sst [smem:[#allocation130_spill]] %s10044_s13 }
  0x65   :  { %s10064_s13 = sld [smem:[%s11550_s0 + %s9732_s28]]   ;;  %s9736_s28 = smov 57  }
  0x66   :  { %11668 = sst [smem:[#allocation132_spill]] %s10054_s9 }
  0x67   :  { %s10074_s9 = sld [smem:[%s11550_s0 + %s9734_s15]]   ;;  %s9738_s15 = smov 59  }
  0x68   :  { %s10079_s12 = sld [smem:[%s11550_s0 + %s9735_s22]]  }
  0x69   :  { %11671 = sst [smem:[#allocation135_spill]] %s10069_s27 }
  0x6a   :  { %s10089_s27 = sld [smem:[%s11550_s0 + %s9737_s7]]  }
  0x6b   :  { %11670 = sst [smem:[#allocation134_spill]] %s10064_s13 }
  0x6c   :  { %s10084_s13 = sld [smem:[%s11550_s0 + %s9736_s28]]  }
  0x6d   :  { %11672 = sst [smem:[#allocation136_spill]] %s10074_s9 }
  0x6e   :  { %s10094_s9 = sld [smem:[%s11550_s0 + %s9738_s15]]  }
  0x74   :  { %11673 = sst [smem:[#allocation137_spill]] %s10094_s9 }
  0x75   :  { %125 = vsyncpa [#allocation3], 0 }
  0x76   :  { %127 = vsyncpa [#allocation3 + $0x1], 0 }
  0x77   :  { %128 = vsyncpa [#allocation6], 0 }
  0x78   :  { %130 = vsyncpa [#allocation6 + $0x1], 0 }
  0x79   :  { %131 = vsyncpa [#allocation9], 0 }
  0x7a   :  { %132 = vsyncpa [#allocation12], 0 }
  0x7b   :  { %133 = vsyncpa [#allocation15], 0 }
  0x7c   :  { %134 = vsyncpa [#allocation18], 0 }
  0x7d   :  { %135 = vsyncpa [#allocation21], 0 }
  0x7e   :  { %136 = vsyncpa [#allocation24], 0 }
  0x7f   :  { %137 = vsyncpa [#allocation27], 0 }
  0x80   :  { %138 = vsyncpa [#allocation30], 0 }
  0x81   :  { %139 = vsyncpa [#allocation33], 0 }
  0x82   :  { %140 = vsyncpa [#allocation36], 0 }
  0x83   :  { %141 = vsyncpa [#allocation39], 0 }
  0x84   :  { %142 = vsyncpa [#allocation42], 0 }
  0x85   :  { %143 = vsyncpa [#allocation45], 0 }
  0x86   :  { %144 = vsyncpa [#allocation48], 0 }
  0x87   :  { %145 = vsyncpa [#allocation51], 0 }
  0x88   :  { %146 = vsyncpa [#allocation54], 0 }
  0x89   :  { %147 = vsyncpa [#allocation57], 0 }
  0x8a   :  { %148 = vsyncpa [#allocation60], 0 }
  0x8b   :  { %149 = vsyncpa [#allocation4], 0 }
  0x8c   :  { %151 = vsyncpa [#allocation4 + $0x1], 0 }
  0x8d   :  { %152 = vsyncpa [#allocation64], 0 }
  0x8e   :  { %154 = vsyncpa [#allocation64 + $0x1], 0  ;;  %s10096_s0 = smov 0   ;;  %s10098_s22 = smov 0  }
  0x8f   :  { %s10100_s23 = smov 0   ;;  %s10102_s26 = smov 0  }
  0x90 LB: > { %s11674_s8 = sld [smem:[#allocation114_spill]]  ;;  %s11675_s6 = sld [smem:[#allocation116_spill]]  ;;  %s9674_s23 = sphi %s10100_s23, %s11785_s23   ;;  %s9670_s22 = sphi %s10098_s22, %s11784_s22   ;;  %s9666_s0 = sphi %s10096_s0, %s11783_s0   ;;  %s9678_s26 = sphi %s10102_s26, %s11781_s26  }
  0x91   : > { %s11676_s5 = sld [smem:[#allocation121_spill]]  ;;  %s11677_s3 = sld [smem:[#allocation128_spill]] }
  0x92   : > { %s11678_s30 = sld [smem:[#allocation111_spill]]  ;;  %s11679_s4 = sld [smem:[#allocation109_spill]] }
  0x93   : > { %s11680_s20 = sld [smem:[#allocation107_spill]]  ;;  %11681 = sst [smem:[#allocation138_spill]] %s9666_s0 }
  0x94   : > { %s10117_s28 = sadd.s32 4294967295, %s9678_s26   ;;  %s7120_s1 = sadd.s32 4294967294, %s9678_s26  }
  0x95   : > { %s10121_s2 = sadd.s32 1, %s9678_s26   ;;  %s193_s7 = sadd.s32 1, %s9674_s23 }
  0x96   : > { %11682 = sst [smem:[#allocation139_spill]] %s10121_s2  ;;  %s190_s10 = ssub.s32 %s9678_s26, %s10121_s2 }
  0x97   : > { %p200_p0 = scmp.ne.s32.totalorder %s9674_s23, %s9670_s22  ;;  %p191_p1 = scmp.eq.s32.totalorder %s190_s10, 0 }
  0x98   : > { %p201_p2 = scmp.eq.s32.totalorder %s9678_s26, 0  ;;  %p206_p3 = scmp.ne.s32.totalorder %s9670_s22, %s9666_s0 }
  0x99   : > { %p11619_p4 = scmp.eq.s32.totalorder %s10117_s28, 0  ;;  %p1416_p7 = scmp.eq.s32.totalorder %s10117_s28, 1 }
  0x9a   : > { %s10133_s11 = scalar_select %p191_p1, %s9674_s23, %s193_s7  }
  0x9b   : > { %p10135_p5 = por %p201_p2, %p200_p0  ;;  %p10141_p6 = por %p11619_p4, %p206_p3 }
  0x9c   : > { %11683 = sst [smem:[#allocation140_spill]] %s10133_s11  ;;  %p1422_p8 = scmp.eq.s32.totalorder %s7120_s1, 1 }
  0x9d   : > { %s11685_s16 = scalar_select %p10141_p6, 1, 0 }
  0x9e   : > { %p7121_p9 = scmp.ge.s32.totalorder %s9678_s26, 1  ;;  %p1455_p10 = scmp.lt.s32.totalorder %s9678_s26, 3 }
  0x9f   : > { %p10148_p11 = por %p1416_p7, %p200_p0  ;;  %p10152_p12 = por %p1422_p8, %p206_p3 }
  0xa0   : > { %p10156_p13 = pnand %p7121_p9, %p1455_p10 }
  0xa1   : > { %s11686_s18 = scalar_select %p10148_p11, 1, 0 }
  0xa2   : > { %s11687_s7 = scalar_select %p10152_p12, 1, 0 }
  0xa3   : > { %s11689_s10 = scalar_select %p10156_p13, 1, 0 }
  0xa4   : > { %11688 = sst [smem:[#allocation141_spill]] %s11687_s7  ;;  %1459 = sbr.rel (%p10156_p13) target bundleno = 1063 (0x427), region = 12 }
  0xa5   : > { %s9739_s11 = smov (!%p10156_p13), [#allocation8]   ;;  %s9740_s2 = smov (!%p10156_p13), [#allocation11]  }
  0xa6   : > { %s1523_s1 = sshll.u32 (!%p10156_p13), %s9739_s11, 4  ;;  %s1545_s0 = sshll.u32 (!%p10156_p13), %s9740_s2, 4  ;;  %s1524_s1 = int_to_ptr.vmem [resolvable:$true] %s1523_s1  ;;  %s10162_s0 = int_to_ptr.vmem [resolvable:$true] %s1545_s0 }
  0xa7   : > { %s8478_s9 = scalar_lea.hbm (!%p10156_p13), %s11680_s20, 16 }
  0xa8   : > { %p8479_p0 = scmp.ne.s32.totalorder (!%p10156_p13), %s11680_s20, %s8478_s9  ;;  %p8484_p3 = scmp.lt.u32.totalorder (!%p10156_p13), %s8478_s9, %s11680_s20 }
  0xaa   : > { %p8480_p1 = pnand (!%p10156_p13), %p8479_p0, %p11619_p4 }
  0xac   : > { %p8481_p2 = pneg %p8480_p1 }
  0xae   : > { %p8486_p7 = pnand %p8484_p3, %p8481_p2 }
  0xb0   : > { %8489 = shalt.err (!%p8486_p7)
}
  0xb1   : > { %s8490_s7 = scalar_lea.vmem %s1524_s1, 16  ;;  %s8496_s11 = scalar_lea.vmem %s1524_s1, 32 }
  0xb2   : > { %p8491_p8 = scmp.ne.s32.totalorder %s1524_s1, %s8490_s7  ;;  %p8497_p12 = scmp.lt.s32.totalorder %s1524_s1, %s1524_s1 }
  0xb3   : > { %p8498_p11 = scmp.lt.s32.totalorder %s8496_s11, %s8490_s7 }
  0xb4   : > { %p8492_p9 = pnand %p8491_p8, %p11619_p4 }
  0xb5   : > { %p8499_p6 = por %p8498_p11, %p8497_p12 }
  0xb6   : > { %p8493_p10 = pneg %p8492_p9 }
  0xb8   : > { %p8500_p13 = pnand %p8499_p6, %p8493_p10 }
  0xba   : > { %8503 = shalt.err (!%p8500_p13)
}
  0xbb   : > { %8026 = dma.hbm_to_vmem [thread:$0]  (%p11619_p4), %s11680_s20, 16, %s1524_s1, [#allocation9]  }
  0xbc   : > { %s8504_s9 = scalar_lea.hbm %s11679_s4, 16 }
  0xbd   : > { %p8505_p0 = scmp.ne.s32.totalorder %s11679_s4, %s8504_s9  ;;  %p8510_p3 = scmp.lt.u32.totalorder %s8504_s9, %s11679_s4 }
  0xbf   : > { %p8506_p1 = pnand %p8505_p0, %p11619_p4 }
  0xc1   : > { %p8507_p2 = pneg %p8506_p1 }
  0xc3   : > { %p8512_p7 = pnand %p8510_p3, %p8507_p2 }
  0xc5   : > { %8515 = shalt.err (!%p8512_p7)
}
  0xc6   : > { %s8516_s2 = scalar_lea.vmem %s10162_s0, 16  ;;  %s8522_s7 = scalar_lea.vmem %s10162_s0, 32 }
  0xc7   : > { %p8517_p6 = scmp.ne.s32.totalorder %s10162_s0, %s8516_s2  ;;  %p8523_p13 = scmp.lt.s32.totalorder %s10162_s0, %s10162_s0 }
  0xc8   : > { %p8524_p8 = scmp.lt.s32.totalorder %s8522_s7, %s8516_s2 }
  0xc9   : > { %p8518_p11 = pnand %p8517_p6, %p11619_p4 }
  0xca   : > { %p8525_p9 = por %p8524_p8, %p8523_p13 }
  0xcb   : > { %p8519_p12 = pneg %p8518_p11 }
  0xcd   : > { %p8526_p10 = pnand %p8525_p9, %p8519_p12 }
  0xcf   : > { %8529 = shalt.err (!%p8526_p10)
}
  0xd0   : > { %8030 = dma.hbm_to_vmem [thread:$0]  (%p11619_p4), %s11679_s4, 16, %s10162_s0, [#allocation12]  }
  0xd1   : > { %s9741_s1 = smov [#allocation14]   ;;  %s9742_s9 = smov [#allocation17]  }
  0xd2   : > { %s1568_s11 = sshll.u32 %s9741_s1, 4  ;;  %s1594_s20 = sshll.u32 %s9742_s9, 4  ;;  %s1569_s11 = int_to_ptr.vmem [resolvable:$true] %s1568_s11  ;;  %s10190_s20 = int_to_ptr.vmem [resolvable:$true] %s1594_s20 }
  0xd3   : > { %s8530_s2 = scalar_lea.hbm %s11678_s30, 512 }
  0xd4   : > { %p8531_p0 = scmp.ne.s32.totalorder %s11678_s30, %s8530_s2  ;;  %p8536_p3 = scmp.lt.u32.totalorder %s8530_s2, %s11678_s30 }
  0xd6   : > { %p8532_p1 = pnand %p8531_p0, %p11619_p4 }
  0xd8   : > { %p8533_p2 = pneg %p8532_p1 }
  0xda   : > { %p8538_p7 = pnand %p8536_p3, %p8533_p2 }
  0xdc   : > { %8541 = shalt.err (!%p8538_p7)
}
  0xdd   : > { %s8542_s7 = scalar_lea.vmem %s1569_s11, 512  ;;  %p8549_p13 = scmp.lt.s32.totalorder %s1569_s11, %s1569_s11 }
  0xde   : > { %p8543_p6 = scmp.ne.s32.totalorder %s1569_s11, %s8542_s7  ;;  %p8550_p8 = scmp.lt.s32.totalorder %s8542_s7, %s8542_s7 }
  0xe0   : > { %p8544_p11 = pnand %p8543_p6, %p11619_p4  ;;  %p8551_p9 = por %p8550_p8, %p8549_p13 }
  0xe2   : > { %p8545_p12 = pneg %p8544_p11 }
  0xe4   : > { %p8552_p10 = pnand %p8551_p9, %p8545_p12 }
  0xe6   : > { %8555 = shalt.err (!%p8552_p10)
}
  0xe7   : > { %s11592_s0 = smov 128   ;;  %s11594_s1 = smov 8  }
  0xe8   : > { %8034 = dma.hbm_to_vmem [thread:$0]  (%p11619_p4), %s11678_s30, 512, %s1569_s11, [#allocation15], %s11592_s0, %s11592_s0, %s11594_s1  }
  0xe9   : > { %s8556_s9 = scalar_lea.hbm %s9924_s19, 512 }
  0xea   : > { %p8557_p0 = scmp.ne.s32.totalorder %s9924_s19, %s8556_s9  ;;  %p8562_p3 = scmp.lt.u32.totalorder %s8556_s9, %s9924_s19 }
  0xec   : > { %p8558_p1 = pnand %p8557_p0, %p11619_p4 }
  0xee   : > { %p8559_p2 = pneg %p8558_p1 }
  0xf0   : > { %p8564_p7 = pnand %p8562_p3, %p8559_p2 }
  0xf2   : > { %8567 = shalt.err (!%p8564_p7)
}
  0xf3   : > { %s8568_s2 = scalar_lea.vmem %s10190_s20, 512  ;;  %p8575_p13 = scmp.lt.s32.totalorder %s10190_s20, %s10190_s20 }
  0xf4   : > { %p8569_p6 = scmp.ne.s32.totalorder %s10190_s20, %s8568_s2  ;;  %p8576_p8 = scmp.lt.s32.totalorder %s8568_s2, %s8568_s2 }
  0xf6   : > { %p8570_p11 = pnand %p8569_p6, %p11619_p4  ;;  %p8577_p9 = por %p8576_p8, %p8575_p13 }
  0xf8   : > { %p8571_p12 = pneg %p8570_p11 }
  0xfa   : > { %p8578_p10 = pnand %p8577_p9, %p8571_p12 }
  0xfc   : > { %8581 = shalt.err (!%p8578_p10)
}
  0xfd   : > { %8038 = dma.hbm_to_vmem [thread:$0]  (%p11619_p4), %s9924_s19, 512, %s10190_s20, [#allocation18], %s11592_s0, %s11592_s0, %s11594_s1  }
  0xfe   : > { %s9745_s11 = smov [#allocation20]   ;;  %s9746_s9 = smov [#allocation23]  }
  0xff   : > { %s1621_s7 = sshll.u32 %s9745_s11, 4  ;;  %s1643_s4 = sshll.u32 %s9746_s9, 4  ;;  %s1622_s7 = int_to_ptr.vmem [resolvable:$true] %s1621_s7  ;;  %s10223_s4 = int_to_ptr.vmem [resolvable:$true] %s1643_s4 }
 0x100   : > { %s8582_s2 = scalar_lea.hbm %s11674_s8, 16 }
 0x101   : > { %p8583_p0 = scmp.ne.s32.totalorder %s11674_s8, %s8582_s2  ;;  %p8588_p3 = scmp.lt.u32.totalorder %s8582_s2, %s11674_s8 }
 0x103   : > { %p8584_p1 = pnand %p8583_p0, %p11619_p4 }
 0x105   : > { %p8585_p2 = pneg %p8584_p1 }
 0x107   : > { %p8590_p7 = pnand %p8588_p3, %p8585_p2 }
 0x109   : > { %8593 = shalt.err (!%p8590_p7)
}
 0x10a   : > { %s8594_s30 = scalar_lea.vmem %s1622_s7, 16  ;;  %s8600_s20 = scalar_lea.vmem %s1622_s7, 32 }
 0x10b   : > { %p8595_p6 = scmp.ne.s32.totalorder %s1622_s7, %s8594_s30  ;;  %p8601_p13 = scmp.lt.s32.totalorder %s1622_s7, %s1622_s7 }
 0x10c   : > { %p8602_p8 = scmp.lt.s32.totalorder %s8600_s20, %s8594_s30 }
 0x10d   : > { %p8596_p11 = pnand %p8595_p6, %p11619_p4 }
 0x10e   : > { %p8603_p9 = por %p8602_p8, %p8601_p13 }
 0x10f   : > { %p8597_p12 = pneg %p8596_p11 }
 0x111   : > { %p8604_p10 = pnand %p8603_p9, %p8597_p12 }
 0x113   : > { %8607 = shalt.err (!%p8604_p10)
}
 0x114   : > { %8042 = dma.hbm_to_vmem [thread:$0]  (%p11619_p4), %s11674_s8, 16, %s1622_s7, [#allocation21]  }
 0x115   : > { %s8608_s11 = scalar_lea.hbm %s11675_s6, 16 }
 0x116   : > { %p8609_p0 = scmp.ne.s32.totalorder %s11675_s6, %s8608_s11  ;;  %p8614_p3 = scmp.lt.u32.totalorder %s8608_s11, %s11675_s6 }
 0x118   : > { %p8610_p1 = pnand %p8609_p0, %p11619_p4 }
 0x11a   : > { %p8611_p2 = pneg %p8610_p1 }
 0x11c   : > { %p8616_p7 = pnand %p8614_p3, %p8611_p2 }
 0x11e   : > { %8619 = shalt.err (!%p8616_p7)
}
 0x11f   : > { %s8620_s30 = scalar_lea.vmem %s10223_s4, 16  ;;  %s8626_s9 = scalar_lea.vmem %s10223_s4, 32 }
 0x120   : > { %p8621_p6 = scmp.ne.s32.totalorder %s10223_s4, %s8620_s30  ;;  %p8627_p13 = scmp.lt.s32.totalorder %s10223_s4, %s10223_s4 }
 0x121   : > { %p8628_p8 = scmp.lt.s32.totalorder %s8626_s9, %s8620_s30 }
 0x122   : > { %p8622_p11 = pnand %p8621_p6, %p11619_p4 }
 0x123   : > { %p8629_p9 = por %p8628_p8, %p8627_p13 }
 0x124   : > { %p8623_p12 = pneg %p8622_p11 }
 0x126   : > { %p8630_p10 = pnand %p8629_p9, %p8623_p12 }
 0x128   : > { %8633 = shalt.err (!%p8630_p10)
}
 0x129   : > { %8046 = dma.hbm_to_vmem [thread:$0]  (%p11619_p4), %s11675_s6, 16, %s10223_s4, [#allocation24]  }
 0x12a   : > { %s9747_s7 = smov [#allocation26]   ;;  %s9748_s20 = smov [#allocation29]  }
 0x12b   : > { %s1664_s2 = sshll.u32 %s9747_s7, 4  ;;  %s1692_s11 = sshll.u32 %s9748_s20, 4  ;;  %s1665_s2 = int_to_ptr.vmem [resolvable:$true] %s1664_s2  ;;  %s10251_s11 = int_to_ptr.vmem [resolvable:$true] %s1692_s11 }
 0x12c   : > { %s8634_s30 = scalar_lea.hbm %s9954_s14, 512 }
 0x12d   : > { %p8635_p0 = scmp.ne.s32.totalorder %s9954_s14, %s8634_s30  ;;  %p8640_p3 = scmp.lt.u32.totalorder %s8634_s30, %s9954_s14 }
 0x12f   : > { %p8636_p1 = pnand %p8635_p0, %p11619_p4 }
 0x131   : > { %p8637_p2 = pneg %p8636_p1 }
 0x133   : > { %p8642_p7 = pnand %p8640_p3, %p8637_p2 }
 0x135   : > { %8645 = shalt.err (!%p8642_p7)
}
 0x136   : > { %s8646_s9 = scalar_lea.vmem %s1665_s2, 512  ;;  %p8653_p13 = scmp.lt.s32.totalorder %s1665_s2, %s1665_s2 }
 0x137   : > { %p8647_p6 = scmp.ne.s32.totalorder %s1665_s2, %s8646_s9  ;;  %p8654_p8 = scmp.lt.s32.totalorder %s8646_s9, %s8646_s9 }
 0x139   : > { %p8648_p11 = pnand %p8647_p6, %p11619_p4  ;;  %p8655_p9 = por %p8654_p8, %p8653_p13 }
 0x13b   : > { %p8649_p12 = pneg %p8648_p11 }
 0x13d   : > { %p8656_p10 = pnand %p8655_p9, %p8649_p12 }
 0x13f   : > { %8659 = shalt.err (!%p8656_p10)
}
 0x140   : > { %8050 = dma.hbm_to_vmem [thread:$0]  (%p11619_p4), %s9954_s14, 512, %s1665_s2, [#allocation27], %s11592_s0, %s11592_s0, %s11594_s1  }
 0x141   : > { %s8660_s4 = scalar_lea.hbm %s9969_s17, 16 }
 0x142   : > { %p8661_p0 = scmp.ne.s32.totalorder %s9969_s17, %s8660_s4  ;;  %p8666_p3 = scmp.lt.u32.totalorder %s8660_s4, %s9969_s17 }
 0x144   : > { %p8662_p1 = pnand %p8661_p0, %p11619_p4 }
 0x146   : > { %p8663_p2 = pneg %p8662_p1 }
 0x148   : > { %p8668_p7 = pnand %p8666_p3, %p8663_p2 }
 0x14a   : > { %8671 = shalt.err (!%p8668_p7)
}
 0x14b   : > { %s8672_s7 = scalar_lea.vmem %s10251_s11, 16  ;;  %s8678_s20 = scalar_lea.vmem %s10251_s11, 32 }
 0x14c   : > { %p8673_p6 = scmp.ne.s32.totalorder %s10251_s11, %s8672_s7  ;;  %p8679_p13 = scmp.lt.s32.totalorder %s10251_s11, %s10251_s11 }
 0x14d   : > { %p8680_p8 = scmp.lt.s32.totalorder %s8678_s20, %s8672_s7 }
 0x14e   : > { %p8674_p11 = pnand %p8673_p6, %p11619_p4 }
 0x14f   : > { %p8681_p9 = por %p8680_p8, %p8679_p13 }
 0x150   : > { %p8675_p12 = pneg %p8674_p11 }
 0x152   : > { %p8682_p10 = pnand %p8681_p9, %p8675_p12 }
 0x154   : > { %8685 = shalt.err (!%p8682_p10)
}
 0x155   : > { %8054 = dma.hbm_to_vmem [thread:$0]  (%p11619_p4), %s9969_s17, 16, %s10251_s11, [#allocation30]  }
 0x156   : > { %s9749_s2 = smov [#allocation32]   ;;  %s9750_s9 = smov [#allocation35]  }
 0x157   : > { %s1714_s30 = sshll.u32 %s9749_s2, 4  ;;  %s1744_s4 = sshll.u32 %s9750_s9, 4  ;;  %s1715_s30 = int_to_ptr.vmem [resolvable:$true] %s1714_s30  ;;  %s10282_s4 = int_to_ptr.vmem [resolvable:$true] %s1744_s4 }
 0x158   : > { %s8686_s7 = scalar_lea.hbm %s11676_s5, 16 }
 0x159   : > { %p8687_p0 = scmp.ne.s32.totalorder %s11676_s5, %s8686_s7  ;;  %p8692_p3 = scmp.lt.u32.totalorder %s8686_s7, %s11676_s5 }
 0x15b   : > { %p8688_p1 = pnand %p8687_p0, %p11619_p4 }
 0x15d   : > { %p8689_p2 = pneg %p8688_p1 }
 0x15f   : > { %p8694_p7 = pnand %p8692_p3, %p8689_p2 }
 0x161   : > { %8697 = shalt.err (!%p8694_p7)
}
 0x162   : > { %s8698_s20 = scalar_lea.vmem %s1715_s30, 16  ;;  %s8704_s11 = scalar_lea.vmem %s1715_s30, 32 }
 0x163   : > { %p8699_p6 = scmp.ne.s32.totalorder %s1715_s30, %s8698_s20  ;;  %p8705_p13 = scmp.lt.s32.totalorder %s1715_s30, %s1715_s30 }
 0x164   : > { %p8706_p8 = scmp.lt.s32.totalorder %s8704_s11, %s8698_s20 }
 0x165   : > { %p8700_p11 = pnand %p8699_p6, %p11619_p4 }
 0x166   : > { %p8707_p9 = por %p8706_p8, %p8705_p13 }
 0x167   : > { %p8701_p12 = pneg %p8700_p11 }
 0x169   : > { %p8708_p10 = pnand %p8707_p9, %p8701_p12 }
 0x16b   : > { %8711 = shalt.err (!%p8708_p10)
}
 0x16c   : > { %8058 = dma.hbm_to_vmem [thread:$0]  (%p11619_p4), %s11676_s5, 16, %s1715_s30, [#allocation33]  }
 0x16d   : > { %s8712_s2 = scalar_lea.hbm %s9999_s24, 16 }
 0x16e   : > { %p8713_p0 = scmp.ne.s32.totalorder %s9999_s24, %s8712_s2  ;;  %p8718_p3 = scmp.lt.u32.totalorder %s8712_s2, %s9999_s24 }
 0x170   : > { %p8714_p1 = pnand %p8713_p0, %p11619_p4 }
 0x172   : > { %p8715_p2 = pneg %p8714_p1 }
 0x174   : > { %p8720_p7 = pnand %p8718_p3, %p8715_p2 }
 0x176   : > { %8723 = shalt.err (!%p8720_p7)
}
 0x177   : > { %s8724_s9 = scalar_lea.vmem %s10282_s4, 16  ;;  %s8730_s7 = scalar_lea.vmem %s10282_s4, 32 }
 0x178   : > { %p8725_p6 = scmp.ne.s32.totalorder %s10282_s4, %s8724_s9  ;;  %p8731_p13 = scmp.lt.s32.totalorder %s10282_s4, %s10282_s4 }
 0x179   : > { %p8732_p8 = scmp.lt.s32.totalorder %s8730_s7, %s8724_s9 }
 0x17a   : > { %p8726_p11 = pnand %p8725_p6, %p11619_p4 }
 0x17b   : > { %p8733_p9 = por %p8732_p8, %p8731_p13 }
 0x17c   : > { %p8727_p12 = pneg %p8726_p11 }
 0x17e   : > { %p8734_p10 = pnand %p8733_p9, %p8727_p12 }
 0x180   : > { %8737 = shalt.err (!%p8734_p10)
}
 0x181   : > { %8062 = dma.hbm_to_vmem [thread:$0]  (%p11619_p4), %s9999_s24, 16, %s10282_s4, [#allocation36]  }
 0x182   : > { %s9751_s30 = smov [#allocation38]   ;;  %s9752_s11 = smov [#allocation41]  }
 0x183   : > { %s1766_s20 = sshll.u32 %s9751_s30, 4  ;;  %s1788_s2 = sshll.u32 %s9752_s11, 4  ;;  %s1767_s20 = int_to_ptr.vmem [resolvable:$true] %s1766_s20  ;;  %s10310_s2 = int_to_ptr.vmem [resolvable:$true] %s1788_s2 }
 0x184   : > { %s8738_s9 = scalar_lea.hbm %s10009_s29, 16 }
 0x185   : > { %p8739_p0 = scmp.ne.s32.totalorder %s10009_s29, %s8738_s9  ;;  %p8744_p3 = scmp.lt.u32.totalorder %s8738_s9, %s10009_s29 }
 0x187   : > { %p8740_p1 = pnand %p8739_p0, %p11619_p4 }
 0x189   : > { %p8741_p2 = pneg %p8740_p1 }
 0x18b   : > { %p8746_p7 = pnand %p8744_p3, %p8741_p2 }
 0x18d   : > { %8749 = shalt.err (!%p8746_p7)
}
 0x18e   : > { %s8750_s7 = scalar_lea.vmem %s1767_s20, 16  ;;  %s8756_s4 = scalar_lea.vmem %s1767_s20, 32 }
 0x18f   : > { %p8751_p6 = scmp.ne.s32.totalorder %s1767_s20, %s8750_s7  ;;  %p8757_p13 = scmp.lt.s32.totalorder %s1767_s20, %s1767_s20 }
 0x190   : > { %p8758_p8 = scmp.lt.s32.totalorder %s8756_s4, %s8750_s7 }
 0x191   : > { %p8752_p11 = pnand %p8751_p6, %p11619_p4 }
 0x192   : > { %p8759_p9 = por %p8758_p8, %p8757_p13 }
 0x193   : > { %p8753_p12 = pneg %p8752_p11 }
 0x195   : > { %p8760_p10 = pnand %p8759_p9, %p8753_p12 }
 0x197   : > { %8763 = shalt.err (!%p8760_p10)
}
 0x198   : > { %8066 = dma.hbm_to_vmem [thread:$0]  (%p11619_p4), %s10009_s29, 16, %s1767_s20, [#allocation39]  }
 0x199   : > { %s8764_s30 = scalar_lea.hbm %s10019_s21, 16 }
 0x19a   : > { %p8765_p0 = scmp.ne.s32.totalorder %s10019_s21, %s8764_s30  ;;  %p8770_p3 = scmp.lt.u32.totalorder %s8764_s30, %s10019_s21 }
 0x19c   : > { %p8766_p1 = pnand %p8765_p0, %p11619_p4 }
 0x19e   : > { %p8767_p2 = pneg %p8766_p1 }
 0x1a0   : > { %p8772_p7 = pnand %p8770_p3, %p8767_p2 }
 0x1a2   : > { %8775 = shalt.err (!%p8772_p7)
}
 0x1a3   : > { %s8776_s11 = scalar_lea.vmem %s10310_s2, 16  ;;  %s8782_s9 = scalar_lea.vmem %s10310_s2, 32 }
 0x1a4   : > { %p8777_p6 = scmp.ne.s32.totalorder %s10310_s2, %s8776_s11  ;;  %p8783_p13 = scmp.lt.s32.totalorder %s10310_s2, %s10310_s2 }
 0x1a5   : > { %p8784_p8 = scmp.lt.s32.totalorder %s8782_s9, %s8776_s11 }
 0x1a6   : > { %p8778_p11 = pnand %p8777_p6, %p11619_p4 }
 0x1a7   : > { %p8785_p9 = por %p8784_p8, %p8783_p13 }
 0x1a8   : > { %p8779_p12 = pneg %p8778_p11 }
 0x1aa   : > { %p8786_p10 = pnand %p8785_p9, %p8779_p12 }
 0x1ac   : > { %8789 = shalt.err (!%p8786_p10)
}
 0x1ad   : > { %8070 = dma.hbm_to_vmem [thread:$0]  (%p11619_p4), %s10019_s21, 16, %s10310_s2, [#allocation42]  }
 0x1ae   : > { %s9753_s20 = smov [#allocation44]   ;;  %s9754_s4 = smov [#allocation47]  }
 0x1af   : > { %s1810_s7 = sshll.u32 %s9753_s20, 4  ;;  %s1833_s30 = sshll.u32 %s9754_s4, 4  ;;  %s1811_s7 = int_to_ptr.vmem [resolvable:$true] %s1810_s7  ;;  %s10338_s30 = int_to_ptr.vmem [resolvable:$true] %s1833_s30 }
 0x1b0   : > { %s8790_s11 = scalar_lea.hbm %s11677_s3, 16 }
 0x1b1   : > { %p8791_p0 = scmp.ne.s32.totalorder %s11677_s3, %s8790_s11  ;;  %p8796_p3 = scmp.lt.u32.totalorder %s8790_s11, %s11677_s3 }
 0x1b3   : > { %p8792_p1 = pnand %p8791_p0, %p11619_p4 }
 0x1b5   : > { %p8793_p2 = pneg %p8792_p1 }
 0x1b7   : > { %p8798_p7 = pnand %p8796_p3, %p8793_p2 }
 0x1b9   : > { %8801 = shalt.err (!%p8798_p7)
}
 0x1ba   : > { %s8802_s9 = scalar_lea.vmem %s1811_s7, 16  ;;  %s8808_s2 = scalar_lea.vmem %s1811_s7, 32 }
 0x1bb   : > { %p8803_p6 = scmp.ne.s32.totalorder %s1811_s7, %s8802_s9  ;;  %p8809_p13 = scmp.lt.s32.totalorder %s1811_s7, %s1811_s7 }
 0x1bc   : > { %p8810_p8 = scmp.lt.s32.totalorder %s8808_s2, %s8802_s9 }
 0x1bd   : > { %p8804_p11 = pnand %p8803_p6, %p11619_p4 }
 0x1be   : > { %p8811_p9 = por %p8810_p8, %p8809_p13 }
 0x1bf   : > { %p8805_p12 = pneg %p8804_p11 }
 0x1c1   : > { %p8812_p10 = pnand %p8811_p9, %p8805_p12 }
 0x1c3   : > { %8815 = shalt.err (!%p8812_p10)
}
 0x1c4   : > { %8074 = dma.hbm_to_vmem [thread:$0]  (%p11619_p4), %s11677_s3, 16, %s1811_s7, [#allocation45]  }
 0x1c5   : > { %s8816_s20 = scalar_lea.hbm %s10039_s25, 512 }
 0x1c6   : > { %p8817_p0 = scmp.ne.s32.totalorder %s10039_s25, %s8816_s20  ;;  %p8822_p3 = scmp.lt.u32.totalorder %s8816_s20, %s10039_s25 }
 0x1c8   : > { %p8818_p1 = pnand %p8817_p0, %p11619_p4 }
 0x1ca   : > { %p8819_p2 = pneg %p8818_p1 }
 0x1cc   : > { %p8824_p7 = pnand %p8822_p3, %p8819_p2 }
 0x1ce   : > { %8827 = shalt.err (!%p8824_p7)
}
 0x1cf   : > { %s8828_s4 = scalar_lea.vmem %s10338_s30, 512  ;;  %p8835_p13 = scmp.lt.s32.totalorder %s10338_s30, %s10338_s30 }
 0x1d0   : > { %p8829_p6 = scmp.ne.s32.totalorder %s10338_s30, %s8828_s4  ;;  %p8836_p8 = scmp.lt.s32.totalorder %s8828_s4, %s8828_s4 }
 0x1d2   : > { %p8830_p11 = pnand %p8829_p6, %p11619_p4  ;;  %p8837_p9 = por %p8836_p8, %p8835_p13 }
 0x1d4   : > { %p8831_p12 = pneg %p8830_p11 }
 0x1d6   : > { %p8838_p10 = pnand %p8837_p9, %p8831_p12 }
 0x1d8   : > { %8841 = shalt.err (!%p8838_p10)
}
 0x1d9   : > { %s11690_s7 = sld [smem:[#allocation131_spill]]  ;;  %s9755_s11 = smov [#allocation50]  }
 0x1da   : > { %8078 = dma.hbm_to_vmem [thread:$0]  (%p11619_p4), %s10039_s25, 512, %s10338_s30, [#allocation48], %s11592_s0, %s11592_s0, %s11594_s1  }
 0x1db   : > { %s1859_s9 = sshll.u32 %s9755_s11, 4  ;;  %s9756_s2 = smov [#allocation53]   ;;  %s1860_s9 = int_to_ptr.vmem [resolvable:$true] %s1859_s9 }
 0x1dc   : > { %s1884_s20 = sshll.u32 %s9756_s2, 4  ;;  %s10368_s20 = int_to_ptr.vmem [resolvable:$true] %s1884_s20 }
 0x1df   : > { %s8842_s4 = scalar_lea.hbm %s11690_s7, 512 }
 0x1e0   : > { %p8843_p0 = scmp.ne.s32.totalorder %s11690_s7, %s8842_s4  ;;  %p8848_p3 = scmp.lt.u32.totalorder %s8842_s4, %s11690_s7 }
 0x1e2   : > { %p8844_p1 = pnand %p8843_p0, %p11619_p4 }
 0x1e4   : > { %p8845_p2 = pneg %p8844_p1 }
 0x1e6   : > { %p8850_p7 = pnand %p8848_p3, %p8845_p2 }
 0x1e8   : > { %8853 = shalt.err (!%p8850_p7)
}
 0x1e9   : > { %s8854_s3 = scalar_lea.vmem %s1860_s9, 512  ;;  %p8861_p13 = scmp.lt.s32.totalorder %s1860_s9, %s1860_s9 }
 0x1ea   : > { %p8855_p6 = scmp.ne.s32.totalorder %s1860_s9, %s8854_s3  ;;  %p8862_p8 = scmp.lt.s32.totalorder %s8854_s3, %s8854_s3 }
 0x1ec   : > { %p8856_p11 = pnand %p8855_p6, %p11619_p4  ;;  %p8863_p9 = por %p8862_p8, %p8861_p13 }
 0x1ee   : > { %p8857_p12 = pneg %p8856_p11 }
 0x1f0   : > { %p8864_p10 = pnand %p8863_p9, %p8857_p12 }
 0x1f2   : > { %8867 = shalt.err (!%p8864_p10)
}
 0x1f3   : > { %s11691_s30 = sld [smem:[#allocation133_spill]] }
 0x1f4   : > { %8082 = dma.hbm_to_vmem [thread:$0]  (%p11619_p4), %s11690_s7, 512, %s1860_s9, [#allocation51], %s11592_s0, %s11592_s0, %s11594_s1  }
 0x1f9   : > { %s8868_s11 = scalar_lea.hbm %s11691_s30, 16 }
 0x1fa   : > { %p8869_p0 = scmp.ne.s32.totalorder %s11691_s30, %s8868_s11  ;;  %p8874_p3 = scmp.lt.u32.totalorder %s8868_s11, %s11691_s30 }
 0x1fc   : > { %p8870_p1 = pnand %p8869_p0, %p11619_p4 }
 0x1fe   : > { %p8871_p2 = pneg %p8870_p1 }
 0x200   : > { %p8876_p7 = pnand %p8874_p3, %p8871_p2 }
 0x202   : > { %8879 = shalt.err (!%p8876_p7)
}
 0x203   : > { %s8880_s3 = scalar_lea.vmem %s10368_s20, 16  ;;  %s8886_s2 = scalar_lea.vmem %s10368_s20, 32 }
 0x204   : > { %p8881_p6 = scmp.ne.s32.totalorder %s10368_s20, %s8880_s3  ;;  %p8887_p13 = scmp.lt.s32.totalorder %s10368_s20, %s10368_s20 }
 0x205   : > { %p8888_p8 = scmp.lt.s32.totalorder %s8886_s2, %s8880_s3 }
 0x206   : > { %p8882_p11 = pnand %p8881_p6, %p11619_p4 }
 0x207   : > { %p8889_p9 = por %p8888_p8, %p8887_p13 }
 0x208   : > { %p8883_p12 = pneg %p8882_p11 }
 0x20a   : > { %p8890_p10 = pnand %p8889_p9, %p8883_p12 }
 0x20c   : > { %8893 = shalt.err (!%p8890_p10)
}
 0x20d   : > { %s11692_s9 = sld [smem:[#allocation135_spill]]  ;;  %s9757_s4 = smov [#allocation56]  }
 0x20e   : > { %8086 = dma.hbm_to_vmem [thread:$0]  (%p11619_p4), %s11691_s30, 16, %s10368_s20, [#allocation54]  }
 0x20f   : > { %s1907_s11 = sshll.u32 %s9757_s4, 4  ;;  %s9758_s0 = smov [#allocation59]   ;;  %s1908_s11 = int_to_ptr.vmem [resolvable:$true] %s1907_s11 }
 0x210   : > { %s1932_s1 = sshll.u32 %s9758_s0, 4  ;;  %s10399_s1 = int_to_ptr.vmem [resolvable:$true] %s1932_s1 }
 0x213   : > { %s8894_s3 = scalar_lea.hbm %s11692_s9, 512 }
 0x214   : > { %p8895_p0 = scmp.ne.s32.totalorder %s11692_s9, %s8894_s3  ;;  %p8900_p3 = scmp.lt.u32.totalorder %s8894_s3, %s11692_s9 }
 0x216   : > { %p8896_p1 = pnand %p8895_p0, %p11619_p4 }
 0x218   : > { %p8897_p2 = pneg %p8896_p1 }
 0x21a   : > { %p8902_p7 = pnand %p8900_p3, %p8897_p2 }
 0x21c   : > { %8905 = shalt.err (!%p8902_p7)
}
 0x21d   : > { %s8906_s2 = scalar_lea.vmem %s1908_s11, 512  ;;  %p8913_p13 = scmp.lt.s32.totalorder %s1908_s11, %s1908_s11 }
 0x21e   : > { %p8907_p6 = scmp.ne.s32.totalorder %s1908_s11, %s8906_s2  ;;  %p8914_p8 = scmp.lt.s32.totalorder %s8906_s2, %s8906_s2 }
 0x220   : > { %p8908_p11 = pnand %p8907_p6, %p11619_p4  ;;  %p8915_p9 = por %p8914_p8, %p8913_p13 }
 0x222   : > { %p8909_p12 = pneg %p8908_p11 }
 0x224   : > { %p8916_p10 = pnand %p8915_p9, %p8909_p12 }
 0x226   : > { %8919 = shalt.err (!%p8916_p10)
}
 0x227   : > { %s11693_s0 = smov 8   ;;  %s11694_s20 = smov 128  }
 0x228   : > { %8090 = dma.hbm_to_vmem [thread:$0]  (%p11619_p4), %s11692_s9, 512, %s1908_s11, [#allocation57], %s11694_s20, %s11694_s20, %s11693_s0  }
 0x229   : > { %s8920_s4 = scalar_lea.hbm %s10079_s12, 16 }
 0x22a   : > { %p8921_p0 = scmp.ne.s32.totalorder %s10079_s12, %s8920_s4  ;;  %p8926_p3 = scmp.lt.u32.totalorder %s8920_s4, %s10079_s12 }
 0x22c   : > { %p8922_p1 = pnand %p8921_p0, %p11619_p4 }
 0x22e   : > { %p8923_p2 = pneg %p8922_p1 }
 0x230   : > { %p8928_p7 = pnand %p8926_p3, %p8923_p2 }
 0x232   : > { %8931 = shalt.err (!%p8928_p7)
}
 0x233   : > { %s8932_s3 = scalar_lea.vmem %s10399_s1, 16  ;;  %s8938_s2 = scalar_lea.vmem %s10399_s1, 32 }
 0x234   : > { %p8933_p6 = scmp.ne.s32.totalorder %s10399_s1, %s8932_s3  ;;  %p8939_p13 = scmp.lt.s32.totalorder %s10399_s1, %s10399_s1 }
 0x235   : > { %p8940_p8 = scmp.lt.s32.totalorder %s8938_s2, %s8932_s3 }
 0x236   : > { %p8934_p11 = pnand %p8933_p6, %p11619_p4 }
 0x237   : > { %p8941_p9 = por %p8940_p8, %p8939_p13 }
 0x238   : > { %p8935_p12 = pneg %p8934_p11 }
 0x23a   : > { %p8942_p10 = pnand %p8941_p9, %p8935_p12 }
 0x23c   : > { %8945 = shalt.err (!%p8942_p10)
}
 0x23d   : > { %s11695_s11 = sld [smem:[#allocation102_spill]]  ;;  %s9759_s4 = smov [#allocation7]  }
 0x23e   : > { %8094 = dma.hbm_to_vmem [thread:$0]  (%p11619_p4), %s10079_s12, 16, %s10399_s1, [#allocation60]  }
 0x23f   : > { %s1497_s5 = sshll.u32 %s9759_s4, 4  ;;  %s9760_s6 = smov [#allocation10]   ;;  %s1498_s5 = int_to_ptr.vmem [resolvable:$true] %s1497_s5 }
 0x240   : > { %s1534_s7 = sshll.u32 %s9760_s6, 4  ;;  %s1535_s7 = int_to_ptr.vmem [resolvable:$true] %s1534_s7 }
 0x243   : > { %s8946_s8 = scalar_lea.hbm %s11695_s11, 512 }
 0x244   : > { %p8947_p0 = scmp.ne.s32.totalorder %s11695_s11, %s8946_s8  ;;  %p8952_p3 = scmp.lt.u32.totalorder %s8946_s8, %s11695_s11 }
 0x246   : > { %p8948_p1 = pnand %p8947_p0, %p11619_p4 }
 0x248   : > { %p8949_p2 = pneg %p8948_p1 }
 0x24a   : > { %p8954_p7 = pnand %p8952_p3, %p8949_p2 }
 0x24c   : > { %8957 = shalt.err (!%p8954_p7)
}
 0x24d   : > { %s8958_s3 = scalar_lea.vmem %s1498_s5, 512  ;;  %p8965_p13 = scmp.lt.s32.totalorder %s1498_s5, %s1498_s5 }
 0x24e   : > { %p8959_p6 = scmp.ne.s32.totalorder %s1498_s5, %s8958_s3  ;;  %p8966_p8 = scmp.lt.s32.totalorder %s8958_s3, %s8958_s3 }
 0x250   : > { %p8960_p11 = pnand %p8959_p6, %p11619_p4  ;;  %p8967_p9 = por %p8966_p8, %p8965_p13 }
 0x252   : > { %p8961_p12 = pneg %p8960_p11 }
 0x254   : > { %p8968_p10 = pnand %p8967_p9, %p8961_p12 }
 0x256   : > { %8971 = shalt.err (!%p8968_p10)
}
 0x257   : > { %s11696_s8 = sld [smem:[#allocation108_spill]] }
 0x258   : > { %8024 = dma.hbm_to_vmem [thread:$0]  (%p11619_p4), %s11695_s11, 512, %s1498_s5, [#allocation6], %s11694_s20, %s11694_s20, %s11693_s0  }
 0x25d   : > { %s8972_s6 = scalar_lea.hbm %s11696_s8, 16 }
 0x25e   : > { %p8973_p0 = scmp.ne.s32.totalorder %s11696_s8, %s8972_s6  ;;  %p8978_p3 = scmp.lt.u32.totalorder %s8972_s6, %s11696_s8 }
 0x260   : > { %p8974_p1 = pnand %p8973_p0, %p11619_p4 }
 0x262   : > { %p8975_p2 = pneg %p8974_p1 }
 0x264   : > { %p8980_p7 = pnand %p8978_p3, %p8975_p2 }
 0x266   : > { %8983 = shalt.err (!%p8980_p7)
}
 0x267   : > { %s8984_s1 = scalar_lea.vmem %s1535_s7, 16  ;;  %s8990_s2 = scalar_lea.vmem %s1535_s7, 32 }
 0x268   : > { %p8985_p6 = scmp.ne.s32.totalorder %s1535_s7, %s8984_s1  ;;  %p8991_p13 = scmp.lt.s32.totalorder %s1535_s7, %s1535_s7 }
 0x269   : > { %p8992_p8 = scmp.lt.s32.totalorder %s8990_s2, %s8984_s1 }
 0x26a   : > { %p8986_p11 = pnand %p8985_p6, %p11619_p4 }
 0x26b   : > { %p8993_p9 = por %p8992_p8, %p8991_p13 }
 0x26c   : > { %p8987_p12 = pneg %p8986_p11 }
 0x26e   : > { %p8994_p10 = pnand %p8993_p9, %p8987_p12 }
 0x270   : > { %8997 = shalt.err (!%p8994_p10)
}
 0x271   : > { %s11697_s5 = sld [smem:[#allocation110_spill]]  ;;  %s9761_s4 = smov [#allocation13]  }
 0x272   : > { %8028 = dma.hbm_to_vmem [thread:$0]  (%p11619_p4), %s11696_s8, 16, %s1535_s7, [#allocation9]  }
 0x273   : > { %s1555_s3 = sshll.u32 %s9761_s4, 4  ;;  %s9762_s6 = smov [#allocation16]   ;;  %s1556_s3 = int_to_ptr.vmem [resolvable:$true] %s1555_s3 }
 0x274   : > { %s1581_s9 = sshll.u32 %s9762_s6, 4  ;;  %s1582_s9 = int_to_ptr.vmem [resolvable:$true] %s1581_s9 }
 0x277   : > { %s8998_s11 = scalar_lea.hbm %s11697_s5, 512 }
 0x278   : > { %p8999_p0 = scmp.ne.s32.totalorder %s11697_s5, %s8998_s11  ;;  %p9004_p3 = scmp.lt.u32.totalorder %s8998_s11, %s11697_s5 }
 0x27a   : > { %p9000_p1 = pnand %p8999_p0, %p11619_p4 }
 0x27c   : > { %p9001_p2 = pneg %p9000_p1 }
 0x27e   : > { %p9006_p7 = pnand %p9004_p3, %p9001_p2 }
 0x280   : > { %9009 = shalt.err (!%p9006_p7)
}
 0x281   : > { %s9010_s1 = scalar_lea.vmem %s1556_s3, 512  ;;  %p9017_p13 = scmp.lt.s32.totalorder %s1556_s3, %s1556_s3 }
 0x282   : > { %p9011_p6 = scmp.ne.s32.totalorder %s1556_s3, %s9010_s1  ;;  %p9018_p8 = scmp.lt.s32.totalorder %s9010_s1, %s9010_s1 }
 0x284   : > { %p9012_p11 = pnand %p9011_p6, %p11619_p4  ;;  %p9019_p9 = por %p9018_p8, %p9017_p13 }
 0x286   : > { %p9013_p12 = pneg %p9012_p11 }
 0x288   : > { %p9020_p10 = pnand %p9019_p9, %p9013_p12 }
 0x28a   : > { %9023 = shalt.err (!%p9020_p10)
}
 0x28b   : > { %s11698_s7 = sld [smem:[#allocation112_spill]] }
 0x28c   : > { %8032 = dma.hbm_to_vmem [thread:$0]  (%p11619_p4), %s11697_s5, 512, %s1556_s3, [#allocation12], %s11694_s20, %s11694_s20, %s11693_s0  }
 0x291   : > { %s9024_s11 = scalar_lea.hbm %s11698_s7, 512 }
 0x292   : > { %p9025_p0 = scmp.ne.s32.totalorder %s11698_s7, %s9024_s11  ;;  %p9030_p3 = scmp.lt.u32.totalorder %s9024_s11, %s11698_s7 }
 0x294   : > { %p9026_p1 = pnand %p9025_p0, %p11619_p4 }
 0x296   : > { %p9027_p2 = pneg %p9026_p1 }
 0x298   : > { %p9032_p7 = pnand %p9030_p3, %p9027_p2 }
 0x29a   : > { %9035 = shalt.err (!%p9032_p7)
}
 0x29b   : > { %s9036_s2 = scalar_lea.vmem %s1582_s9, 512  ;;  %p9043_p13 = scmp.lt.s32.totalorder %s1582_s9, %s1582_s9 }
 0x29c   : > { %p9037_p6 = scmp.ne.s32.totalorder %s1582_s9, %s9036_s2  ;;  %p9044_p8 = scmp.lt.s32.totalorder %s9036_s2, %s9036_s2 }
 0x29e   : > { %p9038_p11 = pnand %p9037_p6, %p11619_p4  ;;  %p9045_p9 = por %p9044_p8, %p9043_p13 }
 0x2a0   : > { %p9039_p12 = pneg %p9038_p11 }
 0x2a2   : > { %p9046_p10 = pnand %p9045_p9, %p9039_p12 }
 0x2a4   : > { %9049 = shalt.err (!%p9046_p10)
}
 0x2a5   : > { %s11699_s4 = sld [smem:[#allocation113_spill]]  ;;  %s9763_s3 = smov [#allocation19]  }
 0x2a6   : > { %8036 = dma.hbm_to_vmem [thread:$0]  (%p11619_p4), %s11698_s7, 512, %s1582_s9, [#allocation15], %s11694_s20, %s11694_s20, %s11693_s0  }
 0x2a7   : > { %s1607_s6 = sshll.u32 %s9763_s3, 4  ;;  %s9764_s1 = smov [#allocation22]   ;;  %s1608_s6 = int_to_ptr.vmem [resolvable:$true] %s1607_s6 }
 0x2a8   : > { %s1632_s11 = sshll.u32 %s9764_s1, 4  ;;  %s1633_s11 = int_to_ptr.vmem [resolvable:$true] %s1632_s11 }
 0x2ab   : > { %s9050_s2 = scalar_lea.hbm %s11699_s4, 256 }
 0x2ac   : > { %p9051_p0 = scmp.ne.s32.totalorder %s11699_s4, %s9050_s2  ;;  %p9056_p3 = scmp.lt.u32.totalorder %s9050_s2, %s11699_s4 }
 0x2ae   : > { %p9052_p1 = pnand %p9051_p0, %p11619_p4 }
 0x2b0   : > { %p9053_p2 = pneg %p9052_p1 }
 0x2b2   : > { %p9058_p7 = pnand %p9056_p3, %p9053_p2 }
 0x2b4   : > { %9061 = shalt.err (!%p9058_p7)
}
 0x2b5   : > { %s9062_s5 = scalar_lea.vmem %s1608_s6, 256  ;;  %p9069_p13 = scmp.lt.s32.totalorder %s1608_s6, %s1608_s6 }
 0x2b6   : > { %p9063_p6 = scmp.ne.s32.totalorder %s1608_s6, %s9062_s5  ;;  %p9070_p8 = scmp.lt.s32.totalorder %s9062_s5, %s9062_s5 }
 0x2b8   : > { %p9064_p11 = pnand %p9063_p6, %p11619_p4  ;;  %p9071_p9 = por %p9070_p8, %p9069_p13 }
 0x2ba   : > { %p9065_p12 = pneg %p9064_p11 }
 0x2bc   : > { %p9072_p10 = pnand %p9071_p9, %p9065_p12 }
 0x2be   : > { %9075 = shalt.err (!%p9072_p10)
}
 0x2bf   : > { %s11700_s9 = sld [smem:[#allocation115_spill]] }
 0x2c0   : > { %8040 = dma.hbm_to_vmem [thread:$0]  (%p11619_p4), %s11699_s4, 256, %s1608_s6, [#allocation18], %s11694_s20, %s11694_s20, %s11693_s0  }
 0x2c5   : > { %s9076_s3 = scalar_lea.hbm %s11700_s9, 16 }
 0x2c6   : > { %p9077_p0 = scmp.ne.s32.totalorder %s11700_s9, %s9076_s3  ;;  %p9082_p3 = scmp.lt.u32.totalorder %s9076_s3, %s11700_s9 }
 0x2c8   : > { %p9078_p1 = pnand %p9077_p0, %p11619_p4 }
 0x2ca   : > { %p9079_p2 = pneg %p9078_p1 }
 0x2cc   : > { %p9084_p7 = pnand %p9082_p3, %p9079_p2 }
 0x2ce   : > { %9087 = shalt.err (!%p9084_p7)
}
 0x2cf   : > { %s9088_s5 = scalar_lea.vmem %s1633_s11, 16  ;;  %s9094_s1 = scalar_lea.vmem %s1633_s11, 32 }
 0x2d0   : > { %p9089_p6 = scmp.ne.s32.totalorder %s1633_s11, %s9088_s5  ;;  %p9095_p13 = scmp.lt.s32.totalorder %s1633_s11, %s1633_s11 }
 0x2d1   : > { %p9096_p8 = scmp.lt.s32.totalorder %s9094_s1, %s9088_s5 }
 0x2d2   : > { %p9090_p11 = pnand %p9089_p6, %p11619_p4 }
 0x2d3   : > { %p9097_p9 = por %p9096_p8, %p9095_p13 }
 0x2d4   : > { %p9091_p12 = pneg %p9090_p11 }
 0x2d6   : > { %p9098_p10 = pnand %p9097_p9, %p9091_p12 }
 0x2d8   : > { %9101 = shalt.err (!%p9098_p10)
}
 0x2d9   : > { %s11701_s6 = sld [smem:[#allocation117_spill]]  ;;  %s9765_s2 = smov [#allocation25]  }
 0x2da   : > { %8044 = dma.hbm_to_vmem [thread:$0]  (%p11619_p4), %s11700_s9, 16, %s1633_s11, [#allocation21]  }
 0x2db   : > { %s1654_s3 = sshll.u32 %s9765_s2, 4  ;;  %s9766_s4 = smov [#allocation28]   ;;  %s1655_s3 = int_to_ptr.vmem [resolvable:$true] %s1654_s3 }
 0x2dc   : > { %s1681_s7 = sshll.u32 %s9766_s4, 4  ;;  %s1682_s7 = int_to_ptr.vmem [resolvable:$true] %s1681_s7 }
 0x2df   : > { %s9102_s8 = scalar_lea.hbm %s11701_s6, 16 }
 0x2e0   : > { %p9103_p0 = scmp.ne.s32.totalorder %s11701_s6, %s9102_s8  ;;  %p9108_p3 = scmp.lt.u32.totalorder %s9102_s8, %s11701_s6 }
 0x2e2   : > { %p9104_p1 = pnand %p9103_p0, %p11619_p4 }
 0x2e4   : > { %p9105_p2 = pneg %p9104_p1 }
 0x2e6   : > { %p9110_p7 = pnand %p9108_p3, %p9105_p2 }
 0x2e8   : > { %9113 = shalt.err (!%p9110_p7)
}
 0x2e9   : > { %s9114_s5 = scalar_lea.vmem %s1655_s3, 16  ;;  %s9120_s11 = scalar_lea.vmem %s1655_s3, 32 }
 0x2ea   : > { %p9115_p6 = scmp.ne.s32.totalorder %s1655_s3, %s9114_s5  ;;  %p9121_p13 = scmp.lt.s32.totalorder %s1655_s3, %s1655_s3 }
 0x2eb   : > { %p9122_p8 = scmp.lt.s32.totalorder %s9120_s11, %s9114_s5 }
 0x2ec   : > { %p9116_p11 = pnand %p9115_p6, %p11619_p4 }
 0x2ed   : > { %p9123_p9 = por %p9122_p8, %p9121_p13 }
 0x2ee   : > { %p9117_p12 = pneg %p9116_p11 }
 0x2f0   : > { %p9124_p10 = pnand %p9123_p9, %p9117_p12 }
 0x2f2   : > { %9127 = shalt.err (!%p9124_p10)
}
 0x2f3   : > { %s11702_s4 = sld [smem:[#allocation119_spill]] }
 0x2f4   : > { %8048 = dma.hbm_to_vmem [thread:$0]  (%p11619_p4), %s11701_s6, 16, %s1655_s3, [#allocation24]  }
 0x2f9   : > { %s9128_s8 = scalar_lea.hbm %s11702_s4, 16 }
 0x2fa   : > { %p9129_p0 = scmp.ne.s32.totalorder %s11702_s4, %s9128_s8  ;;  %p9134_p3 = scmp.lt.u32.totalorder %s9128_s8, %s11702_s4 }
 0x2fc   : > { %p9130_p1 = pnand %p9129_p0, %p11619_p4 }
 0x2fe   : > { %p9131_p2 = pneg %p9130_p1 }
 0x300   : > { %p9136_p7 = pnand %p9134_p3, %p9131_p2 }
 0x302   : > { %9139 = shalt.err (!%p9136_p7)
}
 0x303   : > { %s9140_s1 = scalar_lea.vmem %s1682_s7, 16  ;;  %s9146_s2 = scalar_lea.vmem %s1682_s7, 32 }
 0x304   : > { %p9141_p6 = scmp.ne.s32.totalorder %s1682_s7, %s9140_s1  ;;  %p9147_p13 = scmp.lt.s32.totalorder %s1682_s7, %s1682_s7 }
 0x305   : > { %p9148_p8 = scmp.lt.s32.totalorder %s9146_s2, %s9140_s1 }
 0x306   : > { %p9142_p11 = pnand %p9141_p6, %p11619_p4 }
 0x307   : > { %p9149_p9 = por %p9148_p8, %p9147_p13 }
 0x308   : > { %p9143_p12 = pneg %p9142_p11 }
 0x30a   : > { %p9150_p10 = pnand %p9149_p9, %p9143_p12 }
 0x30c   : > { %9153 = shalt.err (!%p9150_p10)
}
 0x30d   : > { %s11703_s3 = sld [smem:[#allocation120_spill]]  ;;  %s9767_s5 = smov [#allocation31]  }
 0x30e   : > { %8052 = dma.hbm_to_vmem [thread:$0]  (%p11619_p4), %s11702_s4, 16, %s1682_s7, [#allocation27]  }
 0x30f   : > { %s1703_s11 = sshll.u32 %s9767_s5, 4  ;;  %s9768_s8 = smov [#allocation34]   ;;  %s1704_s11 = int_to_ptr.vmem [resolvable:$true] %s1703_s11 }
 0x310   : > { %s1724_s6 = sshll.u32 %s9768_s8, 4  ;;  %s1725_s6 = int_to_ptr.vmem [resolvable:$true] %s1724_s6 }
 0x313   : > { %s9154_s9 = scalar_lea.hbm %s11703_s3, 16 }
 0x314   : > { %p9155_p0 = scmp.ne.s32.totalorder %s11703_s3, %s9154_s9  ;;  %p9160_p3 = scmp.lt.u32.totalorder %s9154_s9, %s11703_s3 }
 0x316   : > { %p9156_p1 = pnand %p9155_p0, %p11619_p4 }
 0x318   : > { %p9157_p2 = pneg %p9156_p1 }
 0x31a   : > { %p9162_p7 = pnand %p9160_p3, %p9157_p2 }
 0x31c   : > { %9165 = shalt.err (!%p9162_p7)
}
 0x31d   : > { %s9166_s1 = scalar_lea.vmem %s1704_s11, 16  ;;  %s9172_s7 = scalar_lea.vmem %s1704_s11, 32 }
 0x31e   : > { %p9167_p6 = scmp.ne.s32.totalorder %s1704_s11, %s9166_s1  ;;  %p9173_p13 = scmp.lt.s32.totalorder %s1704_s11, %s1704_s11 }
 0x31f   : > { %p9174_p8 = scmp.lt.s32.totalorder %s9172_s7, %s9166_s1 }
 0x320   : > { %p9168_p11 = pnand %p9167_p6, %p11619_p4 }
 0x321   : > { %p9175_p9 = por %p9174_p8, %p9173_p13 }
 0x322   : > { %p9169_p12 = pneg %p9168_p11 }
 0x324   : > { %p9176_p10 = pnand %p9175_p9, %p9169_p12 }
 0x326   : > { %9179 = shalt.err (!%p9176_p10)
}
 0x327   : > { %s11704_s2 = sld [smem:[#allocation122_spill]] }
 0x328   : > { %8056 = dma.hbm_to_vmem [thread:$0]  (%p11619_p4), %s11703_s3, 16, %s1704_s11, [#allocation30]  }
 0x32d   : > { %s9180_s9 = scalar_lea.hbm %s11704_s2, 512 }
 0x32e   : > { %p9181_p0 = scmp.ne.s32.totalorder %s11704_s2, %s9180_s9  ;;  %p9186_p3 = scmp.lt.u32.totalorder %s9180_s9, %s11704_s2 }
 0x330   : > { %p9182_p1 = pnand %p9181_p0, %p11619_p4 }
 0x332   : > { %p9183_p2 = pneg %p9182_p1 }
 0x334   : > { %p9188_p7 = pnand %p9186_p3, %p9183_p2 }
 0x336   : > { %9191 = shalt.err (!%p9188_p7)
}
 0x337   : > { %s9192_s5 = scalar_lea.vmem %s1725_s6, 512  ;;  %p9199_p13 = scmp.lt.s32.totalorder %s1725_s6, %s1725_s6 }
 0x338   : > { %p9193_p6 = scmp.ne.s32.totalorder %s1725_s6, %s9192_s5  ;;  %p9200_p8 = scmp.lt.s32.totalorder %s9192_s5, %s9192_s5 }
 0x33a   : > { %p9194_p11 = pnand %p9193_p6, %p11619_p4  ;;  %p9201_p9 = por %p9200_p8, %p9199_p13 }
 0x33c   : > { %p9195_p12 = pneg %p9194_p11 }
 0x33e   : > { %p9202_p10 = pnand %p9201_p9, %p9195_p12 }
 0x340   : > { %9205 = shalt.err (!%p9202_p10)
}
 0x341   : > { %s11705_s11 = sld [smem:[#allocation125_spill]]  ;;  %s9769_s8 = smov [#allocation37]  }
 0x342   : > { %8060 = dma.hbm_to_vmem [thread:$0]  (%p11619_p4), %s11704_s2, 512, %s1725_s6, [#allocation33], %s11694_s20, %s11694_s20, %s11693_s0  }
 0x343   : > { %s1755_s1 = sshll.u32 %s9769_s8, 4  ;;  %s9770_s7 = smov [#allocation40]   ;;  %s1756_s1 = int_to_ptr.vmem [resolvable:$true] %s1755_s1 }
 0x344   : > { %s1777_s9 = sshll.u32 %s9770_s7, 4  ;;  %s1778_s9 = int_to_ptr.vmem [resolvable:$true] %s1777_s9 }
 0x347   : > { %s9206_s5 = scalar_lea.hbm %s11705_s11, 16 }
 0x348   : > { %p9207_p0 = scmp.ne.s32.totalorder %s11705_s11, %s9206_s5  ;;  %p9212_p3 = scmp.lt.u32.totalorder %s9206_s5, %s11705_s11 }
 0x34a   : > { %p9208_p1 = pnand %p9207_p0, %p11619_p4 }
 0x34c   : > { %p9209_p2 = pneg %p9208_p1 }
 0x34e   : > { %p9214_p7 = pnand %p9212_p3, %p9209_p2 }
 0x350   : > { %9217 = shalt.err (!%p9214_p7)
}
 0x351   : > { %s9218_s3 = scalar_lea.vmem %s1756_s1, 16  ;;  %s9224_s6 = scalar_lea.vmem %s1756_s1, 32 }
 0x352   : > { %p9219_p6 = scmp.ne.s32.totalorder %s1756_s1, %s9218_s3  ;;  %p9225_p13 = scmp.lt.s32.totalorder %s1756_s1, %s1756_s1 }
 0x353   : > { %p9226_p8 = scmp.lt.s32.totalorder %s9224_s6, %s9218_s3 }
 0x354   : > { %p9220_p11 = pnand %p9219_p6, %p11619_p4 }
 0x355   : > { %p9227_p9 = por %p9226_p8, %p9225_p13 }
 0x356   : > { %p9221_p12 = pneg %p9220_p11 }
 0x358   : > { %p9228_p10 = pnand %p9227_p9, %p9221_p12 }
 0x35a   : > { %9231 = shalt.err (!%p9228_p10)
}
 0x35b   : > { %s11706_s8 = sld [smem:[#allocation126_spill]] }
 0x35c   : > { %8064 = dma.hbm_to_vmem [thread:$0]  (%p11619_p4), %s11705_s11, 16, %s1756_s1, [#allocation36]  }
 0x361   : > { %s9232_s7 = scalar_lea.hbm %s11706_s8, 16 }
 0x362   : > { %p9233_p0 = scmp.ne.s32.totalorder %s11706_s8, %s9232_s7  ;;  %p9238_p3 = scmp.lt.u32.totalorder %s9232_s7, %s11706_s8 }
 0x364   : > { %p9234_p1 = pnand %p9233_p0, %p11619_p4 }
 0x366   : > { %p9235_p2 = pneg %p9234_p1 }
 0x368   : > { %p9240_p7 = pnand %p9238_p3, %p9235_p2 }
 0x36a   : > { %9243 = shalt.err (!%p9240_p7)
}
 0x36b   : > { %s9244_s3 = scalar_lea.vmem %s1778_s9, 16  ;;  %s9250_s5 = scalar_lea.vmem %s1778_s9, 32 }
 0x36c   : > { %p9245_p6 = scmp.ne.s32.totalorder %s1778_s9, %s9244_s3  ;;  %p9251_p13 = scmp.lt.s32.totalorder %s1778_s9, %s1778_s9 }
 0x36d   : > { %p9252_p8 = scmp.lt.s32.totalorder %s9250_s5, %s9244_s3 }
 0x36e   : > { %p9246_p11 = pnand %p9245_p6, %p11619_p4 }
 0x36f   : > { %p9253_p9 = por %p9252_p8, %p9251_p13 }
 0x370   : > { %p9247_p12 = pneg %p9246_p11 }
 0x372   : > { %p9254_p10 = pnand %p9253_p9, %p9247_p12 }
 0x374   : > { %9257 = shalt.err (!%p9254_p10)
}
 0x375   : > { %s11707_s1 = sld [smem:[#allocation127_spill]]  ;;  %s9771_s6 = smov [#allocation43]  }
 0x376   : > { %8068 = dma.hbm_to_vmem [thread:$0]  (%p11619_p4), %s11706_s8, 16, %s1778_s9, [#allocation39]  }
 0x377   : > { %s1799_s7 = sshll.u32 %s9771_s6, 4  ;;  %s9772_s2 = smov [#allocation46]   ;;  %s1800_s7 = int_to_ptr.vmem [resolvable:$true] %s1799_s7 }
 0x378   : > { %s1820_s4 = sshll.u32 %s9772_s2, 4  ;;  %s1821_s4 = int_to_ptr.vmem [resolvable:$true] %s1820_s4 }
 0x37b   : > { %s9258_s11 = scalar_lea.hbm %s11707_s1, 16 }
 0x37c   : > { %p9259_p0 = scmp.ne.s32.totalorder %s11707_s1, %s9258_s11  ;;  %p9264_p3 = scmp.lt.u32.totalorder %s9258_s11, %s11707_s1 }
 0x37e   : > { %p9260_p1 = pnand %p9259_p0, %p11619_p4 }
 0x380   : > { %p9261_p2 = pneg %p9260_p1 }
 0x382   : > { %p9266_p7 = pnand %p9264_p3, %p9261_p2 }
 0x384   : > { %9269 = shalt.err (!%p9266_p7)
}
 0x385   : > { %s9270_s3 = scalar_lea.vmem %s1800_s7, 16  ;;  %s9276_s9 = scalar_lea.vmem %s1800_s7, 32 }
 0x386   : > { %p9271_p6 = scmp.ne.s32.totalorder %s1800_s7, %s9270_s3  ;;  %p9277_p13 = scmp.lt.s32.totalorder %s1800_s7, %s1800_s7 }
 0x387   : > { %p9278_p8 = scmp.lt.s32.totalorder %s9276_s9, %s9270_s3 }
 0x388   : > { %p9272_p11 = pnand %p9271_p6, %p11619_p4 }
 0x389   : > { %p9279_p9 = por %p9278_p8, %p9277_p13 }
 0x38a   : > { %p9273_p12 = pneg %p9272_p11 }
 0x38c   : > { %p9280_p10 = pnand %p9279_p9, %p9273_p12 }
 0x38e   : > { %9283 = shalt.err (!%p9280_p10)
}
 0x38f   : > { %s11708_s2 = sld [smem:[#allocation129_spill]] }
 0x390   : > { %8072 = dma.hbm_to_vmem [thread:$0]  (%p11619_p4), %s11707_s1, 16, %s1800_s7, [#allocation42]  }
 0x395   : > { %s9284_s11 = scalar_lea.hbm %s11708_s2, 512 }
 0x396   : > { %p9285_p0 = scmp.ne.s32.totalorder %s11708_s2, %s9284_s11  ;;  %p9290_p3 = scmp.lt.u32.totalorder %s9284_s11, %s11708_s2 }
 0x398   : > { %p9286_p1 = pnand %p9285_p0, %p11619_p4 }
 0x39a   : > { %p9287_p2 = pneg %p9286_p1 }
 0x39c   : > { %p9292_p7 = pnand %p9290_p3, %p9287_p2 }
 0x39e   : > { %9295 = shalt.err (!%p9292_p7)
}
 0x39f   : > { %s9296_s5 = scalar_lea.vmem %s1821_s4, 512  ;;  %p9303_p13 = scmp.lt.s32.totalorder %s1821_s4, %s1821_s4 }
 0x3a0   : > { %p9297_p6 = scmp.ne.s32.totalorder %s1821_s4, %s9296_s5  ;;  %p9304_p8 = scmp.lt.s32.totalorder %s9296_s5, %s9296_s5 }
 0x3a2   : > { %p9298_p11 = pnand %p9297_p6, %p11619_p4  ;;  %p9305_p9 = por %p9304_p8, %p9303_p13 }
 0x3a4   : > { %p9299_p12 = pneg %p9298_p11 }
 0x3a6   : > { %p9306_p10 = pnand %p9305_p9, %p9299_p12 }
 0x3a8   : > { %9309 = shalt.err (!%p9306_p10)
}
 0x3a9   : > { %s11709_s6 = sld [smem:[#allocation130_spill]]  ;;  %s9773_s7 = smov [#allocation49]  }
 0x3aa   : > { %8076 = dma.hbm_to_vmem [thread:$0]  (%p11619_p4), %s11708_s2, 512, %s1821_s4, [#allocation45], %s11694_s20, %s11694_s20, %s11693_s0  }
 0x3ab   : > { %s1846_s3 = sshll.u32 %s9773_s7, 4  ;;  %s9774_s9 = smov [#allocation52]   ;;  %s1847_s3 = int_to_ptr.vmem [resolvable:$true] %s1846_s3 }
 0x3ac   : > { %s1873_s11 = sshll.u32 %s9774_s9, 4  ;;  %s1874_s11 = int_to_ptr.vmem [resolvable:$true] %s1873_s11 }
 0x3af   : > { %s9310_s5 = scalar_lea.hbm %s11709_s6, 512 }
 0x3b0   : > { %p9311_p0 = scmp.ne.s32.totalorder %s11709_s6, %s9310_s5  ;;  %p9316_p3 = scmp.lt.u32.totalorder %s9310_s5, %s11709_s6 }
 0x3b2   : > { %p9312_p1 = pnand %p9311_p0, %p11619_p4 }
 0x3b4   : > { %p9313_p2 = pneg %p9312_p1 }
 0x3b6   : > { %p9318_p7 = pnand %p9316_p3, %p9313_p2 }
 0x3b8   : > { %9321 = shalt.err (!%p9318_p7)
}
 0x3b9   : > { %s9322_s1 = scalar_lea.vmem %s1847_s3, 512  ;;  %p9329_p13 = scmp.lt.s32.totalorder %s1847_s3, %s1847_s3 }
 0x3ba   : > { %p9323_p6 = scmp.ne.s32.totalorder %s1847_s3, %s9322_s1  ;;  %p9330_p8 = scmp.lt.s32.totalorder %s9322_s1, %s9322_s1 }
 0x3bc   : > { %p9324_p11 = pnand %p9323_p6, %p11619_p4  ;;  %p9331_p9 = por %p9330_p8, %p9329_p13 }
 0x3be   : > { %p9325_p12 = pneg %p9324_p11 }
 0x3c0   : > { %p9332_p10 = pnand %p9331_p9, %p9325_p12 }
 0x3c2   : > { %9335 = shalt.err (!%p9332_p10)
}
 0x3c3   : > { %s11710_s4 = sld [smem:[#allocation132_spill]] }
 0x3c4   : > { %8080 = dma.hbm_to_vmem [thread:$0]  (%p11619_p4), %s11709_s6, 512, %s1847_s3, [#allocation48], %s11694_s20, %s11694_s20, %s11693_s0  }
 0x3c9   : > { %s9336_s7 = scalar_lea.hbm %s11710_s4, 16 }
 0x3ca   : > { %p9337_p0 = scmp.ne.s32.totalorder %s11710_s4, %s9336_s7  ;;  %p9342_p3 = scmp.lt.u32.totalorder %s9336_s7, %s11710_s4 }
 0x3cc   : > { %p9338_p1 = pnand %p9337_p0, %p11619_p4 }
 0x3ce   : > { %p9339_p2 = pneg %p9338_p1 }
 0x3d0   : > { %p9344_p7 = pnand %p9342_p3, %p9339_p2 }
 0x3d2   : > { %9347 = shalt.err (!%p9344_p7)
}
 0x3d3   : > { %s9348_s1 = scalar_lea.vmem %s1874_s11, 16  ;;  %s9354_s9 = scalar_lea.vmem %s1874_s11, 32 }
 0x3d4   : > { %p9349_p6 = scmp.ne.s32.totalorder %s1874_s11, %s9348_s1  ;;  %p9355_p13 = scmp.lt.s32.totalorder %s1874_s11, %s1874_s11 }
 0x3d5   : > { %p9356_p8 = scmp.lt.s32.totalorder %s9354_s9, %s9348_s1 }
 0x3d6   : > { %p9350_p11 = pnand %p9349_p6, %p11619_p4 }
 0x3d7   : > { %p9357_p9 = por %p9356_p8, %p9355_p13 }
 0x3d8   : > { %p9351_p12 = pneg %p9350_p11 }
 0x3da   : > { %p9358_p10 = pnand %p9357_p9, %p9351_p12 }
 0x3dc   : > { %9361 = shalt.err (!%p9358_p10)
}
 0x3dd   : > { %s11711_s3 = sld [smem:[#allocation134_spill]]  ;;  %s9775_s5 = smov [#allocation55]  }
 0x3de   : > { %8084 = dma.hbm_to_vmem [thread:$0]  (%p11619_p4), %s11710_s4, 16, %s1874_s11, [#allocation51]  }
 0x3df   : > { %s1894_s7 = sshll.u32 %s9775_s5, 4  ;;  %s9776_s2 = smov [#allocation58]   ;;  %s1895_s7 = int_to_ptr.vmem [resolvable:$true] %s1894_s7 }
 0x3e0   : > { %s1921_s6 = sshll.u32 %s9776_s2, 4  ;;  %s1922_s6 = int_to_ptr.vmem [resolvable:$true] %s1921_s6 }
 0x3e3   : > { %s9362_s8 = scalar_lea.hbm %s11711_s3, 512 }
 0x3e4   : > { %p9363_p0 = scmp.ne.s32.totalorder %s11711_s3, %s9362_s8  ;;  %p9368_p3 = scmp.lt.u32.totalorder %s9362_s8, %s11711_s3 }
 0x3e6   : > { %p9364_p1 = pnand %p9363_p0, %p11619_p4 }
 0x3e8   : > { %p9365_p2 = pneg %p9364_p1 }
 0x3ea   : > { %p9370_p7 = pnand %p9368_p3, %p9365_p2 }
 0x3ec   : > { %9373 = shalt.err (!%p9370_p7)
}
 0x3ed   : > { %s9374_s1 = scalar_lea.vmem %s1895_s7, 512  ;;  %p9381_p13 = scmp.lt.s32.totalorder %s1895_s7, %s1895_s7 }
 0x3ee   : > { %p9375_p6 = scmp.ne.s32.totalorder %s1895_s7, %s9374_s1  ;;  %p9382_p8 = scmp.lt.s32.totalorder %s9374_s1, %s9374_s1 }
 0x3f0   : > { %p9376_p11 = pnand %p9375_p6, %p11619_p4  ;;  %p9383_p9 = por %p9382_p8, %p9381_p13 }
 0x3f2   : > { %p9377_p12 = pneg %p9376_p11 }
 0x3f4   : > { %p9384_p10 = pnand %p9383_p9, %p9377_p12 }
 0x3f6   : > { %9387 = shalt.err (!%p9384_p10)
}
 0x3f7   : > { %s11712_s8 = sld [smem:[#allocation136_spill]] }
 0x3f8   : > { %8088 = dma.hbm_to_vmem [thread:$0]  (%p11619_p4), %s11711_s3, 512, %s1895_s7, [#allocation54], %s11694_s20, %s11694_s20, %s11693_s0  }
 0x3fd   : > { %s9388_s2 = scalar_lea.hbm %s11712_s8, 16 }
 0x3fe   : > { %p9389_p0 = scmp.ne.s32.totalorder %s11712_s8, %s9388_s2  ;;  %p9394_p3 = scmp.lt.u32.totalorder %s9388_s2, %s11712_s8 }
 0x400   : > { %p9390_p1 = pnand %p9389_p0, %p11619_p4 }
 0x402   : > { %p9391_p2 = pneg %p9390_p1 }
 0x404   : > { %p9396_p7 = pnand %p9394_p3, %p9391_p2 }
 0x406   : > { %9399 = shalt.err (!%p9396_p7)
}
 0x407   : > { %s9400_s11 = scalar_lea.vmem %s1922_s6, 16  ;;  %s9406_s9 = scalar_lea.vmem %s1922_s6, 32 }
 0x408   : > { %p9401_p6 = scmp.ne.s32.totalorder %s1922_s6, %s9400_s11  ;;  %p9407_p13 = scmp.lt.s32.totalorder %s1922_s6, %s1922_s6 }
 0x409   : > { %p9408_p8 = scmp.lt.s32.totalorder %s9406_s9, %s9400_s11 }
 0x40a   : > { %p9402_p11 = pnand %p9401_p6, %p11619_p4 }
 0x40b   : > { %p9409_p9 = por %p9408_p8, %p9407_p13 }
 0x40c   : > { %p9403_p12 = pneg %p9402_p11 }
 0x40e   : > { %p9410_p10 = pnand %p9409_p9, %p9403_p12 }
 0x410   : > { %9413 = shalt.err (!%p9410_p10)
}
 0x411   : > { %8092 = dma.hbm_to_vmem [thread:$0]  (%p11619_p4), %s11712_s8, 16, %s1922_s6, [#allocation57]  }
 0x412   : > { %s9777_s0 = smov [#allocation61]   ;;  %s9414_s5 = scalar_lea.hbm %s10084_s13, 128 }
 0x413   : > { %s1943_s20 = sshll.u32 %s9777_s0, 4  ;;  %p9415_p0 = scmp.ne.s32.totalorder %s10084_s13, %s9414_s5  ;;  %s1944_s20 = int_to_ptr.vmem [resolvable:$true] %s1943_s20 }
 0x414   : > { %p9420_p3 = scmp.lt.u32.totalorder %s9414_s5, %s10084_s13 }
 0x415   : > { %p9416_p1 = pnand %p9415_p0, %p11619_p4 }
 0x417   : > { %p9417_p2 = pneg %p9416_p1 }
 0x419   : > { %p9422_p7 = pnand %p9420_p3, %p9417_p2 }
 0x41b   : > { %9425 = shalt.err (!%p9422_p7)
}
 0x41c   : > { %s9426_s7 = scalar_lea.vmem %s1944_s20, 128  ;;  %p9433_p13 = scmp.lt.s32.totalorder %s1944_s20, %s1944_s20 }
 0x41d   : > { %p9427_p6 = scmp.ne.s32.totalorder %s1944_s20, %s9426_s7  ;;  %p9434_p8 = scmp.lt.s32.totalorder %s9426_s7, %s9426_s7 }
 0x41f   : > { %p9428_p11 = pnand %p9427_p6, %p11619_p4  ;;  %p9435_p9 = por %p9434_p8, %p9433_p13 }
 0x421   : > { %p9429_p12 = pneg %p9428_p11 }
 0x423   : > { %p9436_p10 = pnand %p9435_p9, %p9429_p12 }
 0x425   : > { %9439 = shalt.err (!%p9436_p10)
}
 0x426   : > { %8096 = dma.hbm_to_vmem [thread:$0]  (%p11619_p4), %s10084_s13, 128, %s1944_s20, [#allocation60]  }
 0x427 PF: > { %s11713_s6 = sld [smem:[#allocation89_spill]]  ;;  %s11714_s1 = sld [smem:[#allocation91_spill]] }
 0x428   : > { %p8230_p1 = scmp.lt.s32.totalorder %s9678_s26, 2  ;;  %s1962_s2 = sand.u32 1, %s9674_s23  }
 0x429   : > { %s7161_s11 = sshll.u32 %s9678_s26, 7  ;;  %s10648_s9 = sshll.u32 %s1962_s2, 3 }
 0x42a   : > { %s1966_s20 = scalar_lea.vmem [#allocation2], %s10648_s9  ;;  %p10656_p2 = pnand %p8230_p1, %p10135_p5 }
 0x42b   : > { %s1973_s5 = sshll.u32 %s1966_s20, 4  ;;  %s1963_s4 = scalar_lea.sflag [#allocation3], %s1962_s2  ;;  %s10660_s5 = int_to_ptr.vmem [resolvable:$true] %s1973_s5 }
 0x42c   : > { %p9442_p7 = pneg %p10656_p2 }
 0x42d   : > { %s10651_s0 = scalar_lea.hbm %s11713_s6, %s7161_s11  ;;  %s10663_s3 = scalar_lea.hbm %s11714_s1, %s7161_s11 }
 0x42e   : > { %s9440_s8 = scalar_lea.hbm %s10651_s0, 128  ;;  %s9445_s15 = scalar_lea.hbm %s11713_s6, 256 }
 0x42f   : > { %p9441_p3 = scmp.ne.s32.totalorder %s10651_s0, %s9440_s8  ;;  %p9446_p5 = scmp.lt.u32.totalorder %s10651_s0, %s11713_s6 }
 0x430   : > { %p9447_p12 = scmp.lt.u32.totalorder %s9445_s15, %s9440_s8  ;;  %p9449_p8 = scmp.lt.u32.totalorder %s9440_s8, %s10651_s0 }
 0x431   : > { %p9443_p6 = pnand %p9442_p7, %p9441_p3 }
 0x432   : > { %p9448_p13 = por %p9447_p12, %p9446_p5 }
 0x433   : > { %p9444_p11 = pneg %p9443_p6 }
 0x434   : > { %p9450_p9 = por %p9449_p8, %p9448_p13 }
 0x436   : > { %p9451_p10 = pnand %p9450_p9, %p9444_p11 }
 0x438   : > { %9454 = shalt.err (!%p9451_p10)
}
 0x439   : > { %s9455_s2 = scalar_lea.vmem %s10660_s5, 128  ;;  %s9778_s11 = smov [#allocation2]  }
 0x43a   : > { %p9456_p1 = scmp.ne.s32.totalorder %s10660_s5, %s9455_s2  ;;  %s9460_s20 = sshll.u32 %s9778_s11, 4  ;;  %s9461_s20 = int_to_ptr.vmem [resolvable:$false] %s9460_s20 }
 0x43b   : > { %s9462_s6 = scalar_lea.vmem %s9461_s20, 256  ;;  %p9463_p3 = scmp.lt.s32.totalorder %s10660_s5, %s9461_s20 }
 0x43c   : > { %p9458_p0 = pnand %p9456_p1, %p9442_p7  ;;  %p9464_p6 = scmp.lt.s32.totalorder %s9462_s6, %s9455_s2 }
 0x43e   : > { %p9459_p4 = pneg %p9458_p0  ;;  %p9465_p5 = por %p9464_p6, %p9463_p3 }
 0x440   : > { %p9466_p12 = pnand %p9465_p5, %p9459_p4 }
 0x442   : > { %9469 = shalt.err (!%p9466_p12)
}
 0x443   : > { %8182 = dma.hbm_to_vmem [thread:$0]  (!%p10656_p2), %s10651_s0, 128, %s10660_s5, %s1963_s4  }
 0x444   : > { %s1991_s8 = scalar_lea.vmem [#allocation5], %s10648_s9  ;;  %s1987_s6 = sand.u32 1, %s9678_s26  }
 0x445   : > { %s1998_s15 = sshll.u32 %s1991_s8, 4  ;;  %s10690_s2 = scalar_lea.sflag [#allocation6], %s1987_s6  ;;  %s10688_s15 = int_to_ptr.vmem [resolvable:$true] %s1998_s15 }
 0x446   : > { %s9470_s11 = scalar_lea.hbm %s10663_s3, 128  ;;  %s9475_s20 = scalar_lea.hbm %s11714_s1, 256 }
 0x447   : > { %p9471_p4 = scmp.ne.s32.totalorder %s10663_s3, %s9470_s11  ;;  %p9476_p13 = scmp.lt.u32.totalorder %s10663_s3, %s11714_s1 }
 0x448   : > { %p9477_p8 = scmp.lt.u32.totalorder %s9475_s20, %s9470_s11  ;;  %p9479_p10 = scmp.lt.u32.totalorder %s9470_s11, %s10663_s3 }
 0x449   : > { %p9473_p0 = pnand %p9471_p4, %p9442_p7 }
 0x44a   : > { %p9478_p9 = por %p9477_p8, %p9476_p13 }
 0x44b   : > { %p9474_p11 = pneg %p9473_p0 }
 0x44c   : > { %p9480_p1 = por %p9479_p10, %p9478_p9 }
 0x44e   : > { %p9481_p3 = pnand %p9480_p1, %p9474_p11 }
 0x450   : > { %9484 = shalt.err (!%p9481_p3)
}
 0x451   : > { %s9485_s4 = scalar_lea.vmem %s10688_s15, 128  ;;  %s9779_s9 = smov [#allocation5]  }
 0x452   : > { %p9486_p6 = scmp.ne.s32.totalorder %s10688_s15, %s9485_s4  ;;  %s9490_s0 = sshll.u32 %s9779_s9, 4  ;;  %s9491_s0 = int_to_ptr.vmem [resolvable:$false] %s9490_s0 }
 0x453   : > { %s9492_s5 = scalar_lea.vmem %s9491_s0, 256  ;;  %p9493_p4 = scmp.lt.s32.totalorder %s10688_s15, %s9491_s0 }
 0x454   : > { %p9488_p5 = pnand %p9486_p6, %p9442_p7  ;;  %p9494_p0 = scmp.lt.s32.totalorder %s9492_s5, %s9485_s4 }
 0x456   : > { %p9489_p12 = pneg %p9488_p5  ;;  %p9495_p13 = por %p9494_p0, %p9493_p4 }
 0x458   : > { %p9496_p8 = pnand %p9495_p13, %p9489_p12 }
 0x45a   : > { %9499 = shalt.err (!%p9496_p8)
}
 0x45b   : > { %s9780_s8 = smov 16   ;;  %s9781_s6 = smov 1  }
 0x45c   : > { %8185 = dma.hbm_to_vmem [thread:$0]  (!%p10656_p2), %s10663_s3, 128, %s10688_s15, %s10690_s2, %s9780_s8, %s9780_s8, %s9781_s6  }
 0x45d   : > { %p11716_p7 = scmp.ne.s32.totalorder %s11689_s10, 0 }
 0x45e   : > { %s10715_s11 = sand.u32 (!%p11716_p7), 1, %s9670_s22   ;;  %p11717_p11 = scmp.ne.s32.totalorder (!%p11716_p7), %s11685_s16, 0 }
 0x45f   : > { %2010 = sbr.rel (%p11716_p7) target bundleno = 8929 (0x22e1), region = 252  ;;  %s10718_s20 = sshll.u32 (!%p11716_p7), %s10715_s11, 3 }
 0x460   : > { %s2013_s4 = scalar_lea.sflag (!%p11716_p7), [#allocation3], %s10715_s11  ;;  %s2016_s9 = scalar_lea.vmem (!%p11716_p7), [#allocation2], %s10718_s20 }
 0x466   : > { %9573 = dma.done.wait (%p11717_p11), %s2013_s4, 128  }
 0x467   : > { %9575 = vsyncadd (%p11717_p11), %s2013_s4, 4294967168  ;;  %s2021_s10 = sand.u32 1, %s10117_s28   ;;  %s10728_s7 = scalar_lea.vmem [#allocation5], %s10718_s20 }
 0x468   : > { %s2022_s3 = scalar_lea.sflag [#allocation6], %s2021_s10 }
 0x469   : > { %9577 = dma.done.wait (%p11717_p11), %s2022_s3, 128  }
 0x46a   : > { %9579 = vsyncadd (%p11717_p11), %s2022_s3, 4294967168  ;;  %p11718_p2 = scmp.eq.s32.totalorder %s10117_s28, 0 }
 0x46c   : > { %9581 = dma.done.wait (%p11718_p2), [#allocation6], 512   ;;  %p11719_p9 = pmov %p11718_p2 }
 0x46d   : > { %p11720_p10 = pmov %p11718_p2 }
 0x46e   : > { %9583 = vsyncadd (%p11719_p9), [#allocation6], 4294966784 }
 0x46f   : > { %9585 = dma.done.wait (%p11720_p10), [#allocation9], 32   ;;  %p11721_p1 = pmov %p11718_p2 }
 0x471   : > { %9587 = vsyncadd (%p11721_p1), [#allocation9], 4294967264  ;;  %p11722_p3 = pmov %p11721_p1 }
 0x472   : > { %p11723_p6 = pmov %p11721_p1 }
 0x473   : > { %9589 = dma.done.wait (%p11722_p3), [#allocation12], 528  }
 0x474   : > { %9591 = vsyncadd (%p11723_p6), [#allocation12], 4294966768  ;;  %p11724_p5 = pmov %p11721_p1 }
 0x475   : > { %p11725_p12 = pmov %p11721_p1 }
 0x476   : > { %9593 = dma.done.wait (%p11724_p5), [#allocation15], 1024  }
 0x477   : > { %9595 = vsyncadd (%p11725_p12), [#allocation15], 4294966272  ;;  %p11726_p4 = pmov %p11721_p1 }
 0x478   : > { %p11727_p0 = pmov %p11721_p1 }
 0x479   : > { %9597 = dma.done.wait (%p11726_p4), [#allocation18], 768  }
 0x47a   : > { %9599 = vsyncadd (%p11727_p0), [#allocation18], 4294966528  ;;  %p11728_p13 = pmov %p11727_p0 }
 0x47b   : > { %p11729_p8 = pmov %p11727_p0 }
 0x47c   : > { %9601 = dma.done.wait (%p11728_p13), [#allocation21], 32  }
 0x47d   : > { %9603 = vsyncadd (%p11729_p8), [#allocation21], 4294967264  ;;  %p11730_p7 = pmov %p11727_p0 }
 0x47e   : > { %p11731_p11 = pmov %p11727_p0 }
 0x47f   : > { %9605 = dma.done.wait (%p11730_p7), [#allocation24], 32  }
 0x480   : > { %9607 = vsyncadd (%p11731_p11), [#allocation24], 4294967264  ;;  %p11732_p2 = pmov %p11727_p0 }
 0x481   : > { %p11733_p9 = pmov %p11727_p0 }
 0x482   : > { %9609 = dma.done.wait (%p11732_p2), [#allocation27], 528  }
 0x483   : > { %9611 = vsyncadd (%p11733_p9), [#allocation27], 4294966768  ;;  %p11734_p10 = pmov %p11727_p0 }
 0x484   : > { %p11735_p1 = pmov %p11727_p0 }
 0x485   : > { %9613 = dma.done.wait (%p11734_p10), [#allocation30], 32  }
 0x486   : > { %9615 = vsyncadd (%p11735_p1), [#allocation30], 4294967264  ;;  %p11736_p3 = pmov %p11727_p0 }
 0x487   : > { %p11737_p6 = pmov %p11727_p0 }
 0x488   : > { %9617 = dma.done.wait (%p11736_p3), [#allocation33], 528  }
 0x489   : > { %9619 = vsyncadd (%p11737_p6), [#allocation33], 4294966768  ;;  %p11738_p5 = pmov %p11727_p0 }
 0x48a   : > { %p11739_p12 = pmov %p11727_p0 }
 0x48b   : > { %9621 = dma.done.wait (%p11738_p5), [#allocation36], 32  }
 0x48c   : > { %9623 = vsyncadd (%p11739_p12), [#allocation36], 4294967264  ;;  %p11740_p4 = pmov %p11727_p0 }
 0x48e   : > { %9625 = dma.done.wait (%p11740_p4), [#allocation39], 32  }
 0x48f   : > { %9627 = vsyncadd (%p11727_p0), [#allocation39], 4294967264  ;;  %p11741_p13 = pmov %p11727_p0 }
 0x490   : > { %p11742_p8 = pmov %p11727_p0 }
 0x491   : > { %9629 = dma.done.wait (%p11741_p13), [#allocation42], 32  }
 0x492   : > { %9631 = vsyncadd (%p11742_p8), [#allocation42], 4294967264  ;;  %p11743_p7 = pmov %p11727_p0 }
 0x493   : > { %p11744_p11 = pmov %p11727_p0 }
 0x494   : > { %9633 = dma.done.wait (%p11743_p7), [#allocation45], 528  }
 0x495   : > { %9635 = vsyncadd (%p11744_p11), [#allocation45], 4294966768  ;;  %p11745_p2 = pmov %p11727_p0 }
 0x496   : > { %p11746_p9 = pmov %p11727_p0 }
 0x497   : > { %9637 = dma.done.wait (%p11745_p2), [#allocation48], 1024  }
 0x498   : > { %9639 = vsyncadd (%p11746_p9), [#allocation48], 4294966272  ;;  %p11747_p10 = pmov %p11727_p0 }
 0x499   : > { %p11748_p1 = pmov %p11727_p0 }
 0x49a   : > { %9641 = dma.done.wait (%p11747_p10), [#allocation51], 528  }
 0x49b   : > { %9643 = vsyncadd (%p11748_p1), [#allocation51], 4294966768  ;;  %p11749_p3 = pmov %p11727_p0 }
 0x49c   : > { %p11750_p6 = pmov %p11727_p0 }
 0x49d   : > { %9645 = dma.done.wait (%p11749_p3), [#allocation54], 528  }
 0x49e   : > { %9647 = vsyncadd (%p11750_p6), [#allocation54], 4294966768  ;;  %p11751_p5 = pmov %p11727_p0 }
 0x49f   : > { %p11752_p12 = pmov %p11727_p0 }
 0x4a0   : > { %9649 = dma.done.wait (%p11751_p5), [#allocation57], 528  }
 0x4a1   : > { %9651 = vsyncadd (%p11752_p12), [#allocation57], 4294966768  ;;  %p11753_p4 = pmov %p11727_p0 }
 0x4a3   : > { %9653 = dma.done.wait (%p11753_p4), [#allocation60], 144  }
 0x4a4   : > { %9655 = vsyncadd (%p11727_p0), [#allocation60], 4294967152  ;;  %s11754_s16 = sld [smem:[#allocation90_spill]]  ;;  %s11755_s15 = sld [smem:[#allocation88_spill]]  ;;  %v2370_v0 = vlaneseq  ;;  %v9782_v1 = vmov 1966171168  }
 0x4a5   : > { %p2327_p13 = scmp.lt.s32.totalorder %s10117_s28, 1  ;;  %v2368_v2 = vunpack.c.l.s4 %v9782_v1  ;;  %vm2416_vm0 = vcmask 261120   ;;  %v10831_v28 = vld [vmem:[%s2016_s9] sm:$0xff]  ;;  %v2507_v49 = vld [vmem:[#allocation49] sm:$0xff]  ;;  %s11756_s4 = sld [smem:[#allocation97_spill]]  ;;  %vm9784_vm2 = vmmov 0  }
 0x4a6   : > { %v10812_v3 = vshrl.u32 %v2370_v0, 7  ;;  %7518 = vmatprep.mubr.msk.f32.mxu1 %vm2416_vm0, %v2507_v49  ;;  %s11757_s9 = sld [smem:[#allocation94_spill]]  ;;  %v7210_v60 = vld [vmem:[#allocation43] ss:$0 sm:$0xff]  ;;  %v7211_v62 = vld [vmem:[#allocation38] ss:$0 sm:$0xff]  ;;  %vm10852_vm1 = vmpackc.low %vm2416_vm0, %vm2416_vm0 }
 0x4a7   : > { %s2328_s2 = scalar_select %p2327_p13, %s10117_s28, 1  ;;  %v2369_v4 = vunpack.c.0.s8 %v2368_v2  ;;  %v7212_v1 = vld [vmem:[#allocation41] ss:$0 sm:$0xff]  ;;  %v7214_v2 = vld [vmem:[#allocation44] ss:$0 sm:$0xff]  ;;  %vm2930_vm3 = vcmask 130048  }
 0x4a8   : > { %s11760_s10 = sld [smem:[#allocation101_spill]]  ;;  %vm3189_vm4 = vcmask 64512   ;;  %s9786_s3 = smov 16   ;;  %vm7964_vm6 = vmpackc.low %vm2930_vm3, %vm2930_vm3 }
 0x4a9   : > { %s7209_s0 = sshll.u32 %s2328_s2, 3  ;;  %s7344_s5 = sshll.u32 %s2328_s2, 4  ;;  %v10816_v5 = vsub.s32 %v2369_v4, %v10812_v3  ;;  %vm7878_vm5 = vmpackc.low %vm3189_vm4, %vm3189_vm4 }
 0x4aa   : > { %s2335_s8 = scalar_lea.vmem %s11754_s16, %s7209_s0  ;;  %s2331_s6 = scalar_lea.vmem %s11755_s15, %s7344_s5 }
 0x4ab   : > { %v2339_v6 = vld [vmem:[%s2335_s8] sm:$0x1]  ;;  %v2340_v7 = vld [vmem:[%s2335_s8 + $0x1] sm:$0x1]  ;;  %v2341_v8 = vld [vmem:[%s2335_s8 + $0x2] sm:$0x1] }
 0x4ac   : > { %v2342_v9 = vld [vmem:[%s2335_s8 + $0x3] sm:$0x1]  ;;  %v2343_v10 = vld [vmem:[%s2335_s8 + $0x4] sm:$0x1]  ;;  %v2363_v11 = vcombine.low %v2339_v6, %v2340_v7  ;;  %v2344_v12 = vld [vmem:[%s2335_s8 + $0x5] sm:$0x1] }
 0x4ad   : > { %v2345_v13 = vld [vmem:[%s2335_s8 + $0x6] sm:$0x1]  ;;  %v2346_v14 = vld [vmem:[%s2335_s8 + $0x7] sm:$0x1]  ;;  %v2364_v15 = vcombine.low %v2341_v8, %v2342_v9  ;;  %v2365_v16 = vcombine.low %v2343_v10, %v2344_v12  ;;  %v10820_v19 = vld [vmem:[%s2331_s6 + $0x8] sm:$0xff]  ;;  %s2319_s16 = scalar_lea.vmem [#allocation62], %s10718_s20 }
 0x4ae   : > { %v2366_v17 = vcombine.low %v2345_v13, %v2346_v14  ;;  %v2373_v18 = vrot.slane %v2363_v11, %v10816_v5  ;;  %v2450_v21 = vsel %vm2416_vm0, %v10820_v19, 0.0  ;;  %v10834_v31 = vld [vmem:[%s2331_s6] sm:$0xff]  ;;  %v7215_v13 = vld [vmem:[#allocation40] ss:$0 sm:$0xff]  ;;  %s11762_s15 = sld [smem:[#allocation96_spill]]  ;;  %s11763_s2 = sld [smem:[#allocation92_spill]] }
 0x4af   : > { %v2380_v20 = vrot.slane %v2364_v15, %v10816_v5  ;;  %v2387_v22 = vrot.slane %v2365_v16, %v10816_v5  ;;  %2451 = vadd.xlane.f32.xlu1 %v2450_v21  ;;  %v2447_v33 = vsel %vm2416_vm0, %v10834_v31, 0.0  ;;  %v7248_v4 = vld [vmem:[%s11756_s4] ss:$0 sm:$0xff]  ;;  %v7213_v10 = vld [vmem:[#allocation35] ss:$0 sm:$0xff]  ;;  %s11764_s0 = sld [smem:[#allocation98_spill]] }
 0x4b0   : > { %v2394_v23 = vrot.slane %v2366_v17, %v10816_v5  ;;  %v7249_v11 = vld [vmem:[%s11757_s9] ss:$0 sm:$0xff]  ;;  %s11765_s5 = sld [smem:[#allocation95_spill]]  ;;  %s11766_s8 = sld [smem:[#allocation100_spill]] }
 0x4b1   : > { %v2395_v24 = vcombine.low %v2373_v18, %v2380_v20  ;;  %v2508_v16 = vld [vmem:[#allocation49 + $0x8] sm:$0xff]  ;;  %s11767_s6 = sld [smem:[#allocation93_spill]]  ;;  %s11768_s4 = sld [smem:[#allocation118_spill]] }
 0x4b2   : > { %v2396_v25 = vcombine.low %v2387_v22, %v2394_v23  ;;  %v2509_v22 = vld [vmem:[#allocation49 + $0x10] sm:$0xff]  ;;  %s11769_s9 = sld [smem:[#allocation105_spill]]  ;;  %p11775_p7 = scmp.ne.s32.totalorder %s11686_s18, 0 }
 0x4b3   : > { %v2403_v26 = vrot.slane %v2395_v24, %v10816_v5  ;;  %s9787_s1 = smov [#allocation62]  }
 0x4b4   : > { %v2410_v27 = vrot.slane %v2396_v25, %v10816_v5 }
 0x4b6   : > { %v2411_v29 = vcombine.low %v2403_v26, %v2410_v27 }
 0x4b8   : > { %v2413_v30 = vadd.f32 %v2411_v29, %v10831_v28  ;;  %v11081_v29 = vsub.s32 7, %v10812_v3 }
 0x4ba   : > { %v2417_v32 = vsel %vm2416_vm0, %v2413_v30, 0.0 }
 0x4bb   : > { %2418 = vadd.xlane.f32.xlu0 %v2417_v32 }
 0x4bf   : > { %2448 = vadd.xlane.f32.xlu0 %v2447_v33  ;;  %v2510_v33 = vld [vmem:[#allocation49 + $0x18] sm:$0xff] }
 0x53c   : > { %v2452_v34 = vpop.xlane.xlu1 %2451 }
 0x53d   : > { %v2454_v35 = vmul.f32 0.03125, %v2452_v34 }
 0x53f   : > { %v2456_v38 = vsub.f32 %v10820_v19, %v2454_v35  ;;  %v2611_v35 = vld [vmem:[#allocation46] sm:$0xff] }
 0x541   : > { %v2458_v43 = vmul.f32 %v2456_v38, %v2456_v38 }
 0x543   : > { %v2462_v46 = vsel %vm2416_vm0, %v2458_v43, 0.0  ;;  %v2721_v43 = vld [vmem:[#allocation50 + $0x18] sm:$0xff] }
 0x548   : > { %v2419_v36 = vpop.xlane.xlu0 %2418 }
 0x549   : > { %v2421_v37 = vmul.f32 0.03125, %v2419_v36  ;;  %v2612_v36 = vld [vmem:[#allocation46 + $0x8] sm:$0xff] }
 0x54b   : > { %v2422_v39 = vsub.f32 %v2413_v30, %v2421_v37  ;;  %v2613_v37 = vld [vmem:[#allocation46 + $0x10] sm:$0xff] }
 0x54c   : > { %v2449_v40 = vpop.xlane.xlu0 %2448 }
 0x54d   : > { %v2453_v41 = vmul.f32 0.03125, %v2449_v40  ;;  %v2423_v42 = vmul.f32 %v2422_v39, %v2422_v39  ;;  %v2719_v40 = vld [vmem:[#allocation50 + $0x8] sm:$0xff] }
 0x54f   : > { %v2455_v44 = vsub.f32 %v10834_v31, %v2453_v41  ;;  %v2424_v45 = vsel %vm2416_vm0, %v2423_v42, 0.0  ;;  %v9783_v41 = vmov 0.0|0.0   ;;  %v2720_v42 = vld [vmem:[#allocation50 + $0x10] sm:$0xff] }
 0x550   : > { %2425 = vadd.xlane.f32.xlu1 %v2424_v45 }
 0x551   : > { %v2457_v47 = vmul.f32 %v2455_v44, %v2455_v44 }
 0x553   : > { %v2459_v48 = vsel %vm2416_vm0, %v2457_v47, 0.0 }
 0x554   : > { %2463 = vadd.xlane.f32.xlu1 %v2462_v46  ;;  %2460 = vadd.xlane.f32.xlu0 %v2459_v48 }
 0x5dd   : > { %v2426_v50 = vpop.xlane.xlu1 %2425 }
 0x5de   : > { %v2427_v51 = vmul.f32 0.03125, %v2426_v50 }
 0x5e0   : > { %v2428_v52 = vadd.f32 1e-05, %v2427_v51 }
 0x5e1   : > { %v2464_v53 = vpop.xlane.xlu1 %2463  ;;  %v2461_v54 = vpop.xlane.xlu0 %2460 }
 0x5e2   : > { %8408 = vrsqrt.f32 %v2428_v52  ;;  %v2466_v55 = vmul.f32 0.03125, %v2464_v53  ;;  %v2465_v56 = vmul.f32 0.03125, %v2461_v54 }
 0x5e4   : > { %v2468_v57 = vadd.f32 1e-05, %v2466_v55  ;;  %v2467_v58 = vadd.f32 1e-05, %v2465_v56 }
 0x5e6   : > { %8410 = vrsqrt.f32 %v2468_v57 }
 0x5e7   : > { %8412 = vrsqrt.f32 %v2467_v58 }
 0x5ec   : > { %v8409_v59 = vpop.eup %8408 }
 0x5ed   : > { %v2430_v61 = vmul.f32 %v8409_v59, %v2422_v39  ;;  %v2718_v39 = vld [vmem:[#allocation50] sm:$0xff] }
 0x5ef   : > { %v2437_v63 = vmul.f32 %v7210_v60, %v2430_v61 }
 0x5f0   : > { %v8411_v0 = vpop.eup %8410 }
 0x5f1   : > { %v8413_v6 = vpop.eup %8412  ;;  %v2472_v7 = vmul.f32 %v8411_v0, %v2456_v38  ;;  %v2444_v8 = vadd.f32 %v7211_v62, %v2437_v63  ;;  %v2614_v38 = vld [vmem:[#allocation46 + $0x18] sm:$0xff] }
 0x5f2   : > { %v2471_v9 = vmul.f32 %v8413_v6, %v2455_v44  ;;  %v9785_v44 = vmov 0.0  }
 0x5f3   : > { %7516 = vmatprep.subr.msk.mxu1 %vm2416_vm0, %v2444_v8  ;;  %v2480_v12 = vmul.f32 %v7212_v1, %v2472_v7  ;;  %v2498_v14 = vmul.f32 %v7214_v2, %v2472_v7  ;;  %v3515_v15 = vmul.f32 %v7248_v4, %v2472_v7 }
 0x5f4   : > { %7517 = vmatpush3.xpose.msk.msra.mxu1 %vm2416_vm0, %v2444_v8  ;;  %v2479_v17 = vmul.f32 %v7212_v1, %v2471_v9  ;;  %v2497_v18 = vmul.f32 %v7214_v2, %v2471_v9  ;;  %v3514_v20 = vmul.f32 %v7248_v4, %v2471_v9  ;;  %v3042_v9 = vld [vmem:[#allocation47] sm:$0xff] }
 0x5f5   : > { %v2488_v21 = vadd.f32 %v7213_v10, %v2480_v12  ;;  %v3523_v23 = vadd.f32 %v7249_v11, %v3515_v15  ;;  %v2506_v26 = vadd.f32 %v7215_v13, %v2498_v14 }
 0x5f6   : > { %v2487_v24 = vadd.f32 %v7213_v10, %v2479_v17  ;;  %v2505_v25 = vadd.f32 %v7215_v13, %v2497_v18  ;;  %v3522_v27 = vadd.f32 %v7249_v11, %v3514_v20  ;;  %v3043_v10 = vld [vmem:[#allocation47 + $0x8] sm:$0xff]  ;;  %v3044_v11 = vld [vmem:[#allocation47 + $0x10] sm:$0xff]  ;;  %v3045_v13 = vld [vmem:[#allocation47 + $0x18] sm:$0xff] }
 0x5f7   : > { %7519 = vmatmul.mubr.msk.f32.vlgmr.msra.gmra.mrb[0].mxu1 %vm2416_vm0, %v2508_v16  ;;  %v7846_v12 = vpack.c.bf16 %v3043_v10, %v3042_v9  ;;  %v7849_v14 = vpack.c.bf16 %v3045_v13, %v3044_v11  ;;  %v3264_v20 = vld [vmem:[#allocation55] sm:$0xff] }
 0x5f8   : > { %v7827_v30 = vpack.c.bf16 %v2488_v21, %v2487_v24  ;;  %7521 = vmatprep.mubr.msk.f32.mxu1 %vm2416_vm0, %v2509_v22  ;;  %v10857_v32 = vpack.c.bf16 %v3523_v23, %v3522_v27  ;;  %v7833_v34 = vpack.c.bf16 %v2506_v26, %v2505_v25  ;;  %v3265_v21 = vld [vmem:[#allocation55 + $0x8] sm:$0xff]  ;;  %v3266_v23 = vld [vmem:[#allocation55 + $0x10] sm:$0xff]  ;;  %v3267_v24 = vld [vmem:[#allocation55 + $0x18] sm:$0xff] }
 0x5f9   : > { %v7852_v22 = vpack.c.bf16 %v3265_v21, %v3264_v20  ;;  %v7855_v26 = vpack.c.bf16 %v3267_v24, %v3266_v23  ;;  %v7239_v27 = vld [vmem:[#allocation37] ss:$0 sm:$0xff]  ;;  %v2353_v9 = vld [vmem:[%s10728_s7 + $0x6] sm:$0x1]  ;;  %v2354_v10 = vld [vmem:[%s10728_s7 + $0x7] sm:$0x1] }
 0x5fa   : > { %7829 = vmatprep.subr.msk.bf16.mxu1 %vm10852_vm1, %v7827_v30  ;;  %v3454_v13 = vcombine.low %v2353_v9, %v2354_v10  ;;  %v7244_v23 = vld [vmem:[#allocation52] ss:$0 sm:$0xff]  ;;  %v7251_v9 = vld [vmem:[%s11763_s2] ss:$0 sm:$0xff]  ;;  %s11772_s2 = sld [smem:[#allocation124_spill]] }
 0x5fb   : > { %7832 = vmatpush3.bf16.xpose.msk.msra.mxu1 %vm10852_vm1, %v7827_v30 }
 0x5fc   : > { %7835 = vmatprep.subr.msk.bf16.mxu1 %vm10852_vm1, %v7833_v34  ;;  %7522 = vmatmul.mubr.msk.f32.gmra.mrb[2].mxu1 %vm2416_vm0, %v2510_v33 }
 0x5fd   : > { %7528 = vmatprep.mubr.msk.f32.mxu1 %vm2416_vm0, %v2611_v35 }
 0x602   : > { %7529 = vmatmul.mubr.msk.f32.vlgmr.msra.gmra.mrb[4].mxu1 %vm2416_vm0, %v2612_v36 }
 0x603   : > { %7838 = vmatpush3.bf16.xpose.msk.msra.mxu1 %vm10852_vm1, %v7833_v34  ;;  %7531 = vmatprep.mubr.msk.f32.mxu1 %vm2416_vm0, %v2613_v37 }
 0x604   : > { %7839 = vmatprep.subr.bf16.mxu1 %v9783_v41 }
 0x606   : > { %7532 = vmatmul.mubr.msk.f32.gmra.mrb[6].mxu1 %vm2416_vm0, %v2614_v38 }
 0x607   : > { %7538 = vmatprep.mubr.msk.f32.mxu1 %vm2416_vm0, %v2718_v39 }
 0x60a   : > { %7539 = vmatmul.mubr.msk.f32.vlgmr.msra.gmra.mrb[8].mxu1 %vm2416_vm0, %v2719_v40 }
 0x60b   : > { %7541 = vmatprep.mubr.msk.f32.mxu1 %vm2416_vm0, %v2720_v42 }
 0x60e   : > { %7542 = vmatmul.mubr.msk.f32.gmra.mrb[10].mxu1 %vm2416_vm0, %v2721_v43 }
 0x60f   : > { %7552 = vmatprep.mubr.msk.f32.mxu1 %vm9784_vm2, %v9785_v44 }
 0x6ca   : > { %v7520_v45 = vpop.f32.mrb[0].mxu1 }
 0x6cb   : > { %v2592_v46 = vpop.f32.mrb[1].mxu1 }
 0x6cc   : > { %2825 = vxpose.xlu0.b32.start [1/4] (short) (narrow) %v2592_v46, 8 }
 0x6cf   : > { %v7523_v47 = vpop.f32.mrb[2].mxu1 }
 0x6d0   : > { %2826 = vxpose.xlu0.b32.cont [2/4] (short) (narrow) %v7520_v45, 8  ;;  %v2602_v48 = vpop.f32.mrb[3].mxu1 }
 0x6d4   : > { %2827 = vxpose.xlu0.b32.cont [3/4] (short) (narrow) %v2602_v48, 8  ;;  %v7241_v48 = vld [vmem:[#allocation59] ss:$0 sm:$0xff] }
 0x6d5   : > { %v7530_v49 = vpop.f32.mrb[4].mxu1 }
 0x6d6   : > { %v2699_v50 = vpop.f32.mrb[5].mxu1 }
 0x6d7   : > { %v7840_v51 = vpack.c.bf16 %v7530_v49, %v2699_v50  ;;  %v7242_v50 = vld [vmem:[#allocation58] ss:$0 sm:$0xff] }
 0x6d8   : > { %2828 = vxpose.xlu0.b32.end [4/4] (short) (narrow) %v7523_v47, 8 }
 0x6d9   : > { %v7533_v52 = vpop.f32.mrb[6].mxu1  ;;  %7841 = vmatpush3.bf16.msra.mxu1 %v7840_v51 }
 0x6da   : > { %v2709_v53 = vpop.f32.mrb[7].mxu1  ;;  %7842 = vmatprep.subr.bf16.mxu1 %v9783_v41 }
 0x6db   : > { %v7843_v54 = vpack.c.bf16 %v7533_v52, %v2709_v53  ;;  %v3188_v52 = vld [vmem:[#allocation61] sm:$0xff] }
 0x6dd   : > { %7844 = vmatpush3.bf16.msra.mxu1 %v7843_v54  ;;  %v7540_v55 = vpop.f32.mrb[8].mxu1 }
 0x6de   : > { %7845 = vmatprep.subr.bf16.mxu1 %v9783_v41  ;;  %v2806_v56 = vpop.f32.mrb[9].mxu1 }
 0x6df   : > { %7557 = vmatprep.mubr.msk.f32.mxu0 %vm2930_vm3, %v2806_v56  ;;  %v3582_v56 = vld [vmem:[%s11760_s10] sm:$0xff] }
 0x6e1   : > { %v7543_v57 = vpop.f32.mrb[10].mxu1 }
 0x6e2   : > { %v2816_v58 = vpop.f32.mrb[11].mxu1 }
 0x74c   : > { %v2841_v59 = vpop.trf.xlu0 }
 0x74d   : > { %7553 = vmatmul.mubr.msk.f32.vlgmr.msra.gmra.mrb[12].mxu1 %vm2416_vm0, %v2841_v59  ;;  %v3357_v59 = vld [vmem:[#allocation56] sm:$0xff] }
 0x74e   : > { %7571 = vmatprep.mubr.msk.f32.mxu1 %vm9784_vm2, %v9785_v44  ;;  %7847 = vmatpush3.bf16.msra.mxu1 %v7846_v12 }
 0x74f   : > { %7848 = vmatprep.subr.bf16.mxu1 %v9783_v41 }
 0x752   : > { %7850 = vmatpush3.bf16.msra.mxu1 %v7849_v14 }
 0x753   : > { %7851 = vmatprep.subr.bf16.mxu1 %v9783_v41 }
 0x820   : > { %v2926_v60 = vpop.f32.mrb[12].mxu1 }
 0x821   : > { %v7554_v61 = vpop.f32.mrb[13].mxu1  ;;  %v2931_v62 = vsel %vm2930_vm3, %v2926_v60, -inf }
 0x822   : > { %2932 = vmax.xlane.f32.xlu1 %v2931_v62  ;;  %v3359_v61 = vld [vmem:[#allocation56 + $0x10] sm:$0xff]  ;;  %v3360_v62 = vld [vmem:[#allocation56 + $0x18] sm:$0xff] }
 0x8af   : > { %v2933_v63 = vpop.xlane.xlu1 %2932 }
 0x8b0   : > { %v2934_v0 = vsub.f32 %v2926_v60, %v2933_v63  ;;  %v7861_v63 = vpack.c.bf16 %v3360_v62, %v3359_v61 }
 0x8b2   : > { %v2935_v1 = vmul.f32 1.442695, %v2934_v0  ;;  %v2347_v0 = vld [vmem:[%s10728_s7] sm:$0x1] }
 0x8b4   : > { %8414 = vpow2.f32 %v2935_v1  ;;  %v2348_v1 = vld [vmem:[%s10728_s7 + $0x1] sm:$0x1] }
 0x8be   : > { %v8415_v2 = vpop.eup %8414 }
 0x8bf   : > { %v2937_v4 = vsel %vm2930_vm3, %v8415_v2, 0.0 }
 0x8c0   : > { %2938 = vadd.xlane.f32.xlu1 %v2937_v4  ;;  %v2350_v4 = vld [vmem:[%s10728_s7 + $0x3] sm:$0x1] }
 0x94d   : > { %v2939_v6 = vpop.xlane.xlu1 %2938 }
 0x94e   : > { %8416 = vrcp.f32 %v2939_v6  ;;  %v2351_v6 = vld [vmem:[%s10728_s7 + $0x4] sm:$0x1] }
 0x958   : > { %v8417_v7 = vpop.eup %8416 }
 0x959   : > { %v2941_v8 = vmul.f32 %v8417_v7, %v8415_v2  ;;  %v2349_v2 = vld [vmem:[%s10728_s7 + $0x2] sm:$0x1]  ;;  %v2352_v7 = vld [vmem:[%s10728_s7 + $0x5] sm:$0x1]  ;;  %s11761_s7 = sld [smem:[#allocation99_spill]] }
 0x95a   : > { %v3452_v11 = vcombine.low %v2349_v2, %v2350_v4  ;;  %v3453_v12 = vcombine.low %v2351_v6, %v2352_v7  ;;  %v7250_v7 = vld [vmem:[%s11762_s15] ss:$0 sm:$0xff]  ;;  %s11771_s15 = sld [smem:[#allocation106_spill]] }
 0x95b   : > { %7555 = vmatprep.subr.msk.mxu0 %vm2930_vm3, %v2941_v8 }
 0x95c   : > { %7556 = vmatpush3.xpose.msk.msra.mxu0 %vm2930_vm3, %v2941_v8  ;;  %v3451_v8 = vcombine.low %v2347_v0, %v2348_v1 }
 0x95d   : > { %7574 = vmatprep.subr.mxu0 %v9785_v44 }
 0x95e   : > { %v3461_v14 = vrot.slane %v3451_v8, %v10816_v5 }
 0x95f   : > { %7558 = vmatmul.mubr.msk.f32.vlgmr.msra.gmra.mrb[0].mxu0 %vm2930_vm3, %v7540_v55 }
 0x960   : > { %7560 = vmatprep.mubr.msk.f32.mxu0 %vm2930_vm3, %v2816_v58  ;;  %v3584_v58 = vld [vmem:[%s11760_s10 + $0x10] sm:$0xff] }
 0x963   : > { %7561 = vmatmul.mubr.msk.f32.gmra.mrb[2].mxu0 %vm2930_vm3, %v7543_v57  ;;  %v3583_v57 = vld [vmem:[%s11760_s10 + $0x8] sm:$0xff] }
 0x964   : > { %7576 = vmatprep.mubr.msk.f32.mxu0 %vm9784_vm2, %v9785_v44 }
 0xa32   : > { %v7559_v15 = vpop.f32.mrb[0].mxu0 }
 0xa33   : > { %v3023_v16 = vpop.f32.mrb[1].mxu0 }
 0xa34   : > { %3053 = vxpose.xlu1.b32.start [1/4] (short) (narrow) %v3023_v16, 8  ;;  %v3482_v16 = vrot.slane %v3454_v13, %v10816_v5  ;;  %v3691_v13 = vld [vmem:[%s11761_s7 + $0x10] sm:$0xff] }
 0xa36   : > { %v7562_v17 = vpop.f32.mrb[2].mxu0 }
 0xa37   : > { %v3033_v18 = vpop.f32.mrb[3].mxu0 }
 0xa38   : > { %3054 = vxpose.xlu1.b32.cont [2/4] (short) (narrow) %v7559_v15, 8  ;;  %v3475_v15 = vrot.slane %v3453_v12, %v10816_v5  ;;  %v3690_v12 = vld [vmem:[%s11761_s7 + $0x8] sm:$0xff] }
 0xa3c   : > { %3055 = vxpose.xlu1.b32.cont [3/4] (short) (narrow) %v3033_v18, 8  ;;  %v3484_v18 = vcombine.low %v3475_v15, %v3482_v16 }
 0xa3e   : > { %v3498_v21 = vrot.slane %v3484_v18, %v10816_v5 }
 0xa40   : > { %3056 = vxpose.xlu1.b32.end [4/4] (short) (narrow) %v7562_v17, 8 }
 0xab4   : > { %v3069_v25 = vpop.trf.xlu1 }
 0xab5   : > { %7572 = vmatmul.mubr.msk.f32.vlgmr.msra.gmra.mrb[14].mxu1 %vm2416_vm0, %v3069_v25 }
 0xab6   : > { %7853 = vmatpush3.bf16.msra.mxu1 %v7852_v22  ;;  %7587 = vmatprep.mubr.msk.f32.mxu1 %vm9784_vm2, %v9785_v44 }
 0xab7   : > { %7854 = vmatprep.subr.bf16.mxu1 %v9783_v41 }
 0xaba   : > { %7856 = vmatpush3.bf16.msra.mxu1 %v7855_v26 }
 0xabb   : > { %7865 = vmatprep.subr.msk.bf16.mxu1 %vm10852_vm1, %v10857_v32 }
 0xb88   : > { %v3154_v30 = vpop.f32.mrb[14].mxu1 }
 0xb89   : > { %v3155_v33 = vadd.f32 %v7239_v27, %v3154_v30  ;;  %v7573_v34 = vpop.f32.mrb[15].mxu1 }
 0xb8b   : > { %v3158_v35 = vadd.f32 %v3155_v33, %v10831_v28 }
 0xb8d   : > { %v3161_v36 = vsel %vm2416_vm0, %v3158_v35, 0.0 }
 0xb8e   : > { %3162 = vadd.xlane.f32.xlu0 %v3161_v36 }
 0xc1b   : > { %v3163_v37 = vpop.xlane.xlu0 %3162 }
 0xc1c   : > { %v3164_v38 = vmul.f32 0.03125, %v3163_v37 }
 0xc1e   : > { %v3165_v39 = vsub.f32 %v3158_v35, %v3164_v38 }
 0xc20   : > { %v3166_v40 = vmul.f32 %v3165_v39, %v3165_v39 }
 0xc22   : > { %v3167_v42 = vsel %vm2416_vm0, %v3166_v40, 0.0 }
 0xc23   : > { %3168 = vadd.xlane.f32.xlu1 %v3167_v42 }
 0xcb0   : > { %v3169_v43 = vpop.xlane.xlu1 %3168 }
 0xcb1   : > { %v3170_v45 = vmul.f32 0.03125, %v3169_v43 }
 0xcb3   : > { %v3171_v46 = vadd.f32 1e-05, %v3170_v45  ;;  %v7246_v45 = vld [vmem:[#allocation53] ss:$0 sm:$0xff] }
 0xcb5   : > { %8418 = vrsqrt.f32 %v3171_v46 }
 0xcbf   : > { %v8419_v47 = vpop.eup %8418 }
 0xcc0   : > { %v3173_v49 = vmul.f32 %v8419_v47, %v3165_v39 }
 0xcc2   : > { %v3180_v28 = vmul.f32 %v7241_v48, %v3173_v49 }
 0xcc4   : > { %v3187_v51 = vadd.f32 %v7242_v50, %v3180_v28 }
 0xcc6   : > { %7575 = vmatpush3.msra.mxu0 %v3187_v51 }
 0xcc7   : > { %7577 = vmatmul.mubr.msk.f32.vlgmr.msra.gmra.mrb[4].mxu0 %vm3189_vm4, %v3188_v52  ;;  %7857 = vmatprep.subr.bf16.mxu0 %v9783_v41 }
 0xcc8   : > { %7598 = vmatprep.mubr.msk.f32.mxu0 %vm9784_vm2, %v9785_v44  ;;  %v3585_v44 = vld [vmem:[%s11760_s10 + $0x18] sm:$0xff] }
 0xd9a   : > { %v3259_v53 = vpop.f32.mrb[4].mxu0 }
 0xd9b   : > { %v10911_v54 = vadd.f32 %v3259_v53, %v3158_v35  ;;  %v7578_v55 = vpop.f32.mrb[5].mxu0 }
 0xd9d   : > { %7588 = vmatmul.mubr.msk.f32.vlgmr.msra.gmra.mrb[16].mxu1 %vm2416_vm0, %v10911_v54 }
 0xd9e   : > { %7868 = vmatpush3.bf16.xpose.msk.msra.mxu1 %vm10852_vm1, %v10857_v32  ;;  %7605 = vmatprep.mubr.msk.f32.mxu1 %vm2416_vm0, %v3582_v56  ;;  %v3358_v32 = vld [vmem:[#allocation56 + $0x8] sm:$0xff] }
 0xd9f   : > { %v7858_v60 = vpack.c.bf16 %v3358_v32, %v3357_v59  ;;  %v3689_v59 = vld [vmem:[%s11761_s7] sm:$0xff] }
 0xda1   : > { %7859 = vmatpush3.bf16.msra.mxu0 %v7858_v60 }
 0xda2   : > { %7860 = vmatprep.subr.bf16.mxu0 %v9783_v41  ;;  %v3468_v41 = vrot.slane %v3452_v11, %v10816_v5 }
 0xda4   : > { %v3483_v17 = vcombine.low %v3461_v14, %v3468_v41  ;;  %v3692_v14 = vld [vmem:[%s11761_s7 + $0x18] sm:$0xff] }
 0xda5   : > { %7606 = vmatmul.mubr.msk.f32.vlgmr.msra.gmra.mrb[18].mxu1 %vm2416_vm0, %v3583_v57  ;;  %7862 = vmatpush3.bf16.msra.mxu0 %v7861_v63 }
 0xda6   : > { %7608 = vmatprep.mubr.msk.f32.mxu1 %vm2416_vm0, %v3584_v58  ;;  %v3491_v20 = vrot.slane %v3483_v17, %v10816_v5 }
 0xda8   : > { %v3499_v22 = vcombine.low %v3491_v20, %v3498_v21  ;;  %v7252_v21 = vld [vmem:[%s11764_s0] ss:$0 sm:$0xff]  ;;  %s11773_s0 = sld [smem:[#allocation104_spill]] }
 0xda9   : > { %7609 = vmatmul.mubr.msk.f32.gmra.mrb[20].mxu1 %vm2416_vm0, %v3585_v44 }
 0xdaa   : > { %3501 = vrot.lane.b32.xlu0 %v3499_v22, %s9786_s3  ;;  %s11770_s3 = sld [smem:[#allocation103_spill]] }
 0xe1c   : > { %v3502_v46 = vpop.permute.xlu0 %3501 }
 0xe1d   : > { %v3504_v50 = vsel %vm2930_vm3, %v3499_v22, %v3502_v46 }
 0xe70   : > { %v3344_v24 = vpop.f32.mrb[16].mxu1 }
 0xe71   : > { %v3345_v25 = vadd.f32 %v7244_v23, %v3344_v24  ;;  %v7589_v26 = vpop.f32.mrb[17].mxu1  ;;  %v7253_v23 = vld [vmem:[%s11765_s5] ss:$0 sm:$0xff]  ;;  %s11774_s5 = sld [smem:[#allocation123_spill]] }
 0xe73   : > { %v3348_v27 = vmul.f32 %v3345_v25, %v3345_v25 }
 0xe75   : > { %v3349_v30 = vmul.f32 %v3348_v27, %v3345_v25 }
 0xe77   : > { %v3350_v33 = vmul.f32 0.044715, %v3349_v30 }
 0xe78   : > { %v7607_v34 = vpop.f32.mrb[18].mxu1 }
 0xe79   : > { %v3351_v35 = vadd.f32 %v3350_v33, %v3345_v25  ;;  %v3670_v36 = vpop.f32.mrb[19].mxu1 }
 0xe7b   : > { %v3352_v37 = vmul.f32 0.7978846, %v3351_v35 }
 0xe7c   : > { %v7610_v38 = vpop.f32.mrb[20].mxu1 }
 0xe7d   : > { %8420 = vtanh.f32 %v3352_v37  ;;  %v3680_v39 = vpop.f32.mrb[21].mxu1  ;;  %v3794_v37 = vld [vmem:[#allocation7 + $0x8] sm:$0xff] }
 0xe7e   : > { %4010 = vxpose.xlu0.b32.start [1/2] (short) (narrow) %v3680_v39, 16  ;;  %v3796_v39 = vld [vmem:[#allocation7 + $0x18] sm:$0xff] }
 0xe82   : > { %4011 = vxpose.xlu0.b32.end [2/2] (short) (narrow) %v7610_v38, 16  ;;  %v3795_v38 = vld [vmem:[#allocation7 + $0x10] sm:$0xff] }
 0xe87   : > { %v8421_v5 = vpop.eup %8420 }
 0xe88   : > { %v3354_v40 = vadd.f32 1.0, %v8421_v5 }
 0xe8a   : > { %v3355_v42 = vmul.f32 0.5, %v3354_v40 }
 0xe8c   : > { %v3356_v43 = vmul.f32 %v3355_v42, %v3345_v25 }
 0xe8e   : > { %7599 = vmatmul.mubr.msk.f32.vlgmr.msra.gmra.mrb[6].mxu0 %vm2416_vm0, %v3356_v43 }
 0xe8f   : > { %7613 = vmatprep.mubr.msk.f32.mxu0 %vm2416_vm0, %v3689_v59 }
 0xf61   : > { %v3437_v47 = vpop.f32.mrb[6].mxu0 }
 0xf62   : > { %v3438_v48 = vadd.f32 %v7246_v45, %v3437_v47  ;;  %v7600_v49 = vpop.f32.mrb[7].mxu0 }
 0xf64   : > { %v3441_v28 = vadd.f32 %v3438_v48, %v10911_v54  ;;  %v4026_v54 = vpop.trf.xlu0 }
 0xf66   : > { %v3555_v51 = vsel %vm2416_vm0, %v3441_v28, 0.0  ;;  %v3505_v52 = vadd.f32 %v3504_v50, %v3441_v28  ;;  %3442 = vst.msk [vmem:[%s2319_s16] sm:$0xff] %vm2416_vm0, %v3441_v28 }
 0xf67   : > { %3556 = vadd.xlane.f32.xlu0 %v3555_v51 }
 0xf68   : > { %v3526_v53 = vsel %vm2416_vm0, %v3505_v52, 0.0  ;;  %v4027_v32 = vpop.trf.xlu0 }
 0xf69   : > { %3527 = vadd.xlane.f32.xlu1 %v3526_v53 }
 0xff4   : > { %v3557_v60 = vpop.xlane.xlu0 %3556 }
 0xff5   : > { %v3558_v61 = vmul.f32 0.03125, %v3557_v60 }
 0xff6   : > { %v3528_v55 = vpop.xlane.xlu1 %3527 }
 0xff7   : > { %v3529_v56 = vmul.f32 0.03125, %v3528_v55  ;;  %v3559_v62 = vsub.f32 %v3441_v28, %v3558_v61 }
 0xff9   : > { %v3530_v57 = vsub.f32 %v3505_v52, %v3529_v56  ;;  %v3560_v63 = vmul.f32 %v3559_v62, %v3559_v62 }
 0xffb   : > { %v3531_v58 = vmul.f32 %v3530_v57, %v3530_v57  ;;  %v3561_v0 = vsel %vm2416_vm0, %v3560_v63, 0.0 }
 0xffd   : > { %v3532_v44 = vsel %vm2416_vm0, %v3531_v58, 0.0 }
 0xffe   : > { %3533 = vadd.xlane.f32.xlu1 %v3532_v44 }
0x1031   : > { %3897 = vxpose.xlu1.b32.start [1/2] (short) (narrow) %v3670_v36, 16  ;;  %v3793_v36 = vld [vmem:[#allocation7] sm:$0xff] }
0x1035   : > { %3898 = vxpose.xlu1.b32.end [2/2] (short) (narrow) %v7607_v34, 16 }
0x105c   : > { %3562 = vadd.xlane.f32.xlu1 %v3561_v0 }
0x108b   : > { %v3534_v1 = vpop.xlane.xlu1 %3533 }
0x108c   : > { %v3535_v2 = vmul.f32 0.03125, %v3534_v1 }
0x108e   : > { %v3536_v4 = vadd.f32 1e-05, %v3535_v2 }
0x1090   : > { %8422 = vrsqrt.f32 %v3536_v4 }
0x109a   : > { %v8423_v6 = vpop.eup %8422 }
0x109b   : > { %v3538_v8 = vmul.f32 %v8423_v6, %v3530_v57 }
0x109d   : > { %v3545_v10 = vmul.f32 %v7250_v7, %v3538_v8 }
0x109f   : > { %v3552_v11 = vadd.f32 %v7251_v9, %v3545_v10 }
0x10a1   : > { %7611 = vmatprep.subr.msk.mxu0 %vm2416_vm0, %v3552_v11 }
0x10a2   : > { %7612 = vmatpush3.xpose.msk.msra.mxu0 %vm2416_vm0, %v3552_v11 }
0x10a5   : > { %7614 = vmatmul.mubr.msk.f32.vlgmr.msra.gmra.mrb[8].mxu0 %vm2416_vm0, %v3690_v12 }
0x10a6   : > { %7616 = vmatprep.mubr.msk.f32.mxu0 %vm2416_vm0, %v3691_v13 }
0x10a9   : > { %7617 = vmatmul.mubr.msk.f32.gmra.mrb[10].mxu0 %vm2416_vm0, %v3692_v14 }
0x10aa   : > { %7621 = vmatprep.mubr.msk.f32.mxu0 %vm2416_vm0, %v3793_v36 }
0x10b1   : > { %v3913_v41 = vpop.trf.xlu1 }
0x10b2   : > { %7631 = vmatprep.mubr.msk.f32.mxu1 %vm2930_vm3, %v3913_v41 }
0x10b5   : > { %v3914_v15 = vpop.trf.xlu1 }
0x10e9   : > { %v3563_v16 = vpop.xlane.xlu1 %3562 }
0x10ea   : > { %v3564_v17 = vmul.f32 0.03125, %v3563_v16 }
0x10ec   : > { %v3565_v18 = vadd.f32 1e-05, %v3564_v17 }
0x10ee   : > { %8424 = vrsqrt.f32 %v3565_v18 }
0x10f8   : > { %v8425_v20 = vpop.eup %8424 }
0x10f9   : > { %v3567_v22 = vmul.f32 %v8425_v20, %v3559_v62 }
0x10fb   : > { %v3574_v24 = vmul.f32 %v7252_v21, %v3567_v22  ;;  %v4341_v22 = vld [vmem:[%s11766_s8] sm:$0xff] }
0x10fd   : > { %v3581_v25 = vadd.f32 %v7253_v23, %v3574_v24  ;;  %v4342_v23 = vld [vmem:[%s11766_s8 + $0x8] sm:$0xff] }
0x10fe   : > { %v7889_v24 = vpack.c.bf16 %v4342_v23, %v4341_v22  ;;  %v4627_v22 = vld [vmem:[%s11768_s4 + $0x30] sm:$0xff]  ;;  %v4628_v23 = vld [vmem:[%s11768_s4 + $0x38] sm:$0xff] }
0x10ff   : > { %7619 = vmatprep.subr.msk.mxu0 %vm2416_vm0, %v3581_v25 }
0x1100   : > { %7620 = vmatpush3.xpose.msk.msra.mxu0 %vm2416_vm0, %v3581_v25 }
0x1103   : > { %7622 = vmatmul.mubr.msk.f32.vlgmr.msra.gmra.mrb[12].mxu0 %vm2416_vm0, %v3794_v37 }
0x1104   : > { %7624 = vmatprep.mubr.msk.f32.mxu0 %vm2416_vm0, %v3795_v38  ;;  %v7282_v38 = vld [vmem:[%s11767_s6] ss:$0 sm:$0xff]  ;;  %s7338_s6 = sshll.u32 %s10117_s28, 7 }
0x1107   : > { %7625 = vmatmul.mubr.msk.f32.gmra.mrb[14].mxu0 %vm2416_vm0, %v3796_v39 }
0x1178   : > { %v7615_v26 = vpop.f32.mrb[8].mxu0 }
0x1179   : > { %v3774_v27 = vpop.f32.mrb[9].mxu0 }
0x117a   : > { %v7869_v30 = vpack.c.bf16 %v7615_v26, %v3774_v27  ;;  %v4343_v27 = vld [vmem:[%s11766_s8 + $0x10] sm:$0xff] }
0x117c   : > { %v7618_v33 = vpop.f32.mrb[10].mxu0  ;;  %7870 = vmatprep.subr.bf16.mxu1 %v7869_v30 }
0x117d   : > { %v3784_v34 = vpop.f32.mrb[11].mxu0  ;;  %7872 = vmatpush3.bf16.msra.mxu1 %v7869_v30  ;;  %v4344_v30 = vld [vmem:[%s11766_s8 + $0x18] sm:$0xff] }
0x117e   : > { %v7873_v35 = vpack.c.bf16 %v7618_v33, %v3784_v34  ;;  %v7893_v33 = vpack.c.bf16 %v4344_v30, %v4343_v27  ;;  %v4631_v27 = vld [vmem:[%s11768_s4 + $0x50] sm:$0xff] }
0x1180   : > { %7632 = vmatmul.mubr.msk.f32.vlgmr.msra.gmra.mrb[22].mxu1 %vm2930_vm3, %v3914_v15  ;;  %7874 = vmatprep.subr.bf16.mxu1 %v7873_v35 }
0x1181   : > { %7876 = vmatpush3.bf16.msra.mxu1 %v7873_v35  ;;  %7638 = vmatprep.mubr.msk.f32.mxu1 %vm2930_vm3, %v4026_v54 }
0x1184   : > { %7639 = vmatmul.mubr.msk.f32.vlgmr.msra.gmra.mrb[24].mxu1 %vm2930_vm3, %v4027_v32 }
0x11d6   : > { %v7623_v2 = vpop.f32.mrb[12].mxu0 }
0x11d7   : > { %v3878_v4 = vpop.f32.mrb[13].mxu0 }
0x11d8   : > { %7645 = vmatprep.mubr.msk.f32.mxu0 %vm3189_vm4, %v3878_v4 }
0x11da   : > { %v7626_v6 = vpop.f32.mrb[14].mxu0 }
0x11db   : > { %v3888_v7 = vpop.f32.mrb[15].mxu0 }
0x11dc   : > { %7652 = vmatprep.mubr.msk.f32.mxu1 %vm3189_vm4, %v3888_v7 }
0x1253   : > { %v7633_v5 = vpop.f32.mrb[22].mxu1 }
0x1254   : > { %v4126_v40 = vsel %vm3189_vm4, %v7633_v5, -inf  ;;  %v4001_v42 = vpop.f32.mrb[23].mxu1 }
0x1255   : > { %4127 = vmax.xlane.f32.xlu0 %v4126_v40  ;;  %v4123_v45 = vsel %vm3189_vm4, %v4001_v42, -inf }
0x1257   : > { %v7640_v43 = vpop.f32.mrb[24].mxu1 }
0x1258   : > { %v4132_v46 = vsel %vm3189_vm4, %v7640_v43, -inf  ;;  %v4114_v47 = vpop.f32.mrb[25].mxu1 }
0x1259   : > { %4124 = vmax.xlane.f32.xlu0 %v4123_v45  ;;  %4133 = vmax.xlane.f32.xlu1 %v4132_v46  ;;  %v4129_v48 = vsel %vm3189_vm4, %v4114_v47, -inf }
0x125d   : > { %4130 = vmax.xlane.f32.xlu0 %v4129_v48 }
0x12e2   : > { %v4128_v49 = vpop.xlane.xlu0 %4127 }
0x12e3   : > { %v4136_v50 = vsub.f32 %v7633_v5, %v4128_v49 }
0x12e5   : > { %v4141_v28 = vmul.f32 1.442695, %v4136_v50 }
0x12e6   : > { %v4125_v51 = vpop.xlane.xlu0 %4124  ;;  %v4134_v52 = vpop.xlane.xlu1 %4133 }
0x12e7   : > { %8426 = vpow2.f32 %v4141_v28  ;;  %v4135_v53 = vsub.f32 %v4001_v42, %v4125_v51  ;;  %v4138_v55 = vsub.f32 %v7640_v43, %v4134_v52 }
0x12e9   : > { %v4139_v56 = vmul.f32 1.442695, %v4135_v53  ;;  %v4145_v57 = vmul.f32 1.442695, %v4138_v55 }
0x12ea   : > { %v4131_v58 = vpop.xlane.xlu0 %4130 }
0x12eb   : > { %8428 = vpow2.f32 %v4139_v56  ;;  %v4137_v44 = vsub.f32 %v4114_v47, %v4131_v58  ;;  %v4511_v56 = vld [vmem:[#allocation26] sm:$0xff] }
0x12ec   : > { %8430 = vpow2.f32 %v4145_v57  ;;  %v4512_v57 = vld [vmem:[#allocation26 + $0x8] sm:$0xff] }
0x12ed   : > { %v4143_v59 = vmul.f32 1.442695, %v4137_v44  ;;  %v7897_v58 = vpack.c.bf16 %v4512_v57, %v4511_v56  ;;  %v4513_v44 = vld [vmem:[#allocation26 + $0x10] sm:$0xff] }
0x12ef   : > { %8432 = vpow2.f32 %v4143_v59  ;;  %v4514_v59 = vld [vmem:[#allocation26 + $0x18] sm:$0xff] }
0x12f1   : > { %v8427_v54 = vpop.eup %8426 }
0x12f2   : > { %v4150_v32 = vsel %vm3189_vm4, %v8427_v54, 0.0 }
0x12f3   : > { %4151 = vadd.xlane.f32.xlu1 %v4150_v32 }
0x12f5   : > { %v8429_v60 = vpop.eup %8428 }
0x12f6   : > { %v8431_v61 = vpop.eup %8430  ;;  %v4147_v62 = vsel %vm3189_vm4, %v8429_v60, 0.0 }
0x12f7   : > { %v4156_v63 = vsel %vm3189_vm4, %v8431_v61, 0.0  ;;  %4148 = vadd.xlane.f32.xlu0 %v4147_v62 }
0x12f8   : > { %4157 = vadd.xlane.f32.xlu1 %v4156_v63 }
0x12f9   : > { %v8433_v0 = vpop.eup %8432 }
0x12fa   : > { %v4153_v1 = vsel %vm3189_vm4, %v8433_v0, 0.0 }
0x12fb   : > { %4154 = vadd.xlane.f32.xlu0 %v4153_v1 }
0x1380   : > { %v4152_v8 = vpop.xlane.xlu1 %4151 }
0x1381   : > { %8434 = vrcp.f32 %v4152_v8 }
0x1384   : > { %v4149_v9 = vpop.xlane.xlu0 %4148 }
0x1385   : > { %v4158_v10 = vpop.xlane.xlu1 %4157  ;;  %8436 = vrcp.f32 %v4149_v9 }
0x1386   : > { %8438 = vrcp.f32 %v4158_v10 }
0x1388   : > { %v4155_v11 = vpop.xlane.xlu0 %4154 }
0x1389   : > { %8440 = vrcp.f32 %v4155_v11 }
0x138b   : > { %v8435_v12 = vpop.eup %8434 }
0x138c   : > { %v4164_v41 = vmul.f32 %v8435_v12, %v8427_v54  ;;  %v7901_v54 = vpack.c.bf16 %v4514_v59, %v4513_v44 }
0x138f   : > { %v8437_v13 = vpop.eup %8436 }
0x1390   : > { %v4163_v14 = vmul.f32 %v8437_v13, %v8429_v60  ;;  %v8439_v15 = vpop.eup %8438  ;;  %v4621_v13 = vld [vmem:[%s11768_s4] sm:$0xff] }
0x1391   : > { %v4166_v20 = vmul.f32 %v8439_v15, %v8431_v61  ;;  %v4623_v15 = vld [vmem:[%s11768_s4 + $0x10] sm:$0xff] }
0x1392   : > { %v7877_v16 = vpack.c.bf16 %v4164_v41, %v4163_v14  ;;  %v4622_v14 = vld [vmem:[%s11768_s4 + $0x8] sm:$0xff] }
0x1393   : > { %v8441_v17 = vpop.eup %8440  ;;  %v7905_v41 = vpack.c.bf16 %v4622_v14, %v4621_v13 }
0x1394   : > { %7879 = vmatprep.subr.msk.bf16.mxu0 %vm7878_vm5, %v7877_v16  ;;  %v4165_v18 = vmul.f32 %v8441_v17, %v8433_v0 }
0x1395   : > { %7882 = vmatpush3.bf16.xpose.msk.msra.mxu0 %vm7878_vm5, %v7877_v16  ;;  %v4624_v16 = vld [vmem:[%s11768_s4 + $0x18] sm:$0xff] }
0x1396   : > { %v7883_v21 = vpack.c.bf16 %v4166_v20, %v4165_v18  ;;  %7890 = vmatprep.subr.bf16.mxu0 %v7889_v24  ;;  %v7909_v17 = vpack.c.bf16 %v4624_v16, %v4623_v15  ;;  %v4625_v18 = vld [vmem:[%s11768_s4 + $0x20] sm:$0xff]  ;;  %v4626_v20 = vld [vmem:[%s11768_s4 + $0x28] sm:$0xff] }
0x1397   : > { %v4835_v16 = vld [vmem:[#allocation16] sm:$0xff] }
0x1398   : > { %7885 = vmatprep.subr.msk.bf16.mxu1 %vm7878_vm5, %v7883_v21 }
0x1399   : > { %7888 = vmatpush3.bf16.xpose.msk.msra.mxu1 %vm7878_vm5, %v7883_v21  ;;  %v7913_v21 = vpack.c.bf16 %v4626_v20, %v4625_v18 }
0x139a   : > { %7898 = vmatprep.subr.bf16.mxu1 %v7897_v58 }
0x139c   : > { %7646 = vmatmul.mubr.msk.f32.vlgmr.msra.gmra.mrb[16].mxu0 %vm3189_vm4, %v7623_v2  ;;  %v7285_v2 = vld [vmem:[#allocation25] ss:$0 sm:$0xff] }
0x139d   : > { %7892 = vmatpush3.bf16.msra.mxu0 %v7889_v24  ;;  %v7917_v24 = vpack.c.bf16 %v4628_v23, %v4627_v22 }
0x139e   : > { %7894 = vmatprep.subr.bf16.mxu0 %v7893_v33 }
0x13a0   : > { %7653 = vmatmul.mubr.msk.f32.vlgmr.msra.gmra.mrb[26].mxu1 %vm3189_vm4, %v7626_v6  ;;  %v7286_v6 = vld [vmem:[#allocation23] ss:$0 sm:$0xff] }
0x13a1   : > { %7896 = vmatpush3.bf16.msra.mxu0 %v7893_v33  ;;  %7900 = vmatpush3.bf16.msra.mxu1 %v7897_v58  ;;  %v4632_v33 = vld [vmem:[%s11768_s4 + $0x58] sm:$0xff] }
0x13a2   : > { %7902 = vmatprep.subr.bf16.mxu1 %v7901_v54  ;;  %7906 = vmatprep.subr.bf16.mxu0 %v7905_v41 }
0x13a5   : > { %7904 = vmatpush3.bf16.msra.mxu1 %v7901_v54 }
0x146f   : > { %v7647_v25 = vpop.f32.mrb[16].mxu0 }
0x1470   : > { %v4245_v26 = vpop.f32.mrb[17].mxu0 }
0x1471   : > { %4352 = vxpose.xlu0.b32.start [1/4] (short) (narrow) %v4245_v26, 16  ;;  %v4630_v26 = vld [vmem:[%s11768_s4 + $0x48] sm:$0xff] }
0x1473   : > { %v7654_v34 = vpop.f32.mrb[26].mxu1 }
0x1474   : > { %v4332_v35 = vpop.f32.mrb[27].mxu1 }
0x1475   : > { %4353 = vxpose.xlu0.b32.cont [2/4] (short) (narrow) %v7647_v25, 16  ;;  %v4629_v25 = vld [vmem:[%s11768_s4 + $0x40] sm:$0xff] }
0x1476   : > { %v7921_v30 = vpack.c.bf16 %v4630_v26, %v4629_v25  ;;  %v7291_v26 = vld [vmem:[#allocation10] ss:$0 sm:$0xff] }
0x1479   : > { %4354 = vxpose.xlu0.b32.cont [3/4] (short) (narrow) %v4332_v35, 16  ;;  %v4633_v35 = vld [vmem:[%s11768_s4 + $0x60] sm:$0xff] }
0x147d   : > { %4355 = vxpose.xlu0.b32.end [4/4] (short) (narrow) %v7654_v34, 16  ;;  %v7925_v34 = vpack.c.bf16 %v4632_v33, %v4631_v27 }
0x14f1   : > { %v4368_v36 = vpop.trf.xlu0 }
0x14f2   : > { %7663 = vmatprep.mubr.msk.f32.mxu0 %vm2416_vm0, %v4368_v36  ;;  %v4634_v36 = vld [vmem:[%s11768_s4 + $0x68] sm:$0xff] }
0x14f5   : > { %v4369_v37 = vpop.trf.xlu0 }
0x14f6   : > { %7664 = vmatmul.mubr.msk.f32.vlgmr.msra.gmra.mrb[18].mxu0 %vm2416_vm0, %v4369_v37  ;;  %v7929_v37 = vpack.c.bf16 %v4634_v36, %v4633_v35  ;;  %v7292_v35 = vld [vmem:[%s11769_s9] ss:$0 sm:$0xff]  ;;  %s11483_s9 = scalar_lea.hbm %s10089_s27, %s7338_s6 }
0x14f7   : > { %7908 = vmatpush3.bf16.msra.mxu0 %v7905_v41 }
0x14f8   : > { %7910 = vmatprep.subr.bf16.mxu0 %v7909_v17 }
0x14fb   : > { %7912 = vmatpush3.bf16.msra.mxu0 %v7909_v17 }
0x14fc   : > { %7914 = vmatprep.subr.bf16.mxu0 %v7913_v21 }
0x14ff   : > { %7916 = vmatpush3.bf16.msra.mxu0 %v7913_v21 }
0x1500   : > { %7918 = vmatprep.subr.bf16.mxu0 %v7917_v24 }
0x1503   : > { %7920 = vmatpush3.bf16.msra.mxu0 %v7917_v24 }
0x1504   : > { %7922 = vmatprep.subr.bf16.mxu0 %v7921_v30 }
0x1507   : > { %7924 = vmatpush3.bf16.msra.mxu0 %v7921_v30  ;;  %v7293_v30 = vld [vmem:[#allocation8] ss:$0 sm:$0xff] }
0x1508   : > { %7926 = vmatprep.subr.bf16.mxu0 %v7925_v34 }
0x150b   : > { %7928 = vmatpush3.bf16.msra.mxu0 %v7925_v34 }
0x150c   : > { %7930 = vmatprep.subr.bf16.mxu0 %v7929_v37 }
0x150f   : > { %7932 = vmatpush3.bf16.msra.mxu0 %v7929_v37 }
0x15c9   : > { %v7665_v39 = vpop.f32.mrb[18].mxu0 }
0x15ca   : > { %v4456_v5 = vpop.f32.mrb[19].mxu0  ;;  %v4462_v40 = vadd.f32 %v7665_v39, %v7282_v38  ;;  %v4636_v39 = vld [vmem:[%s11768_s4 + $0x78] sm:$0xff] }
0x15cb   : > { %v4457_v42 = vadd.f32 %v7282_v38, %v4456_v5  ;;  %v4635_v38 = vld [vmem:[%s11768_s4 + $0x70] sm:$0xff] }
0x15cc   : > { %v11001_v45 = vadd.f32 %v4462_v40, %v10820_v19  ;;  %v7933_v5 = vpack.c.bf16 %v4636_v39, %v4635_v38  ;;  %v7287_v40 = vld [vmem:[#allocation20] ss:$0 sm:$0xff]  ;;  %v7294_v39 = vld [vmem:[%s11770_s3] ss:$0 sm:$0xff]  ;;  %s6545_s3 = sshll.u32 %s2319_s16, 4  ;;  %s6546_s3 = int_to_ptr.vmem [resolvable:$true] %s6545_s3 }
0x15cd   : > { %v10998_v43 = vadd.f32 %v4457_v42, %v10834_v31 }
0x15ce   : > { %v4472_v47 = vsel %vm2416_vm0, %v11001_v45, 0.0  ;;  %7934 = vmatprep.subr.bf16.mxu0 %v7933_v5 }
0x15cf   : > { %v4469_v46 = vsel %vm2416_vm0, %v10998_v43, 0.0  ;;  %7936 = vmatpush3.bf16.msra.mxu0 %v7933_v5 }
0x15d0   : > { %4470 = vadd.xlane.f32.xlu1 %v4469_v46 }
0x15d4   : > { %4473 = vadd.xlane.f32.xlu1 %v4472_v47 }
0x165d   : > { %v4471_v48 = vpop.xlane.xlu1 %4470 }
0x165e   : > { %v4475_v49 = vmul.f32 0.03125, %v4471_v48 }
0x1660   : > { %v4477_v50 = vsub.f32 %v10998_v43, %v4475_v49 }
0x1661   : > { %v4474_v28 = vpop.xlane.xlu1 %4473 }
0x1662   : > { %v4476_v51 = vmul.f32 0.03125, %v4474_v28  ;;  %v4479_v52 = vmul.f32 %v4477_v50, %v4477_v50 }
0x1664   : > { %v4478_v31 = vsub.f32 %v11001_v45, %v4476_v51  ;;  %v4481_v19 = vsel %vm2416_vm0, %v4479_v52, 0.0 }
0x1665   : > { %4482 = vadd.xlane.f32.xlu1 %v4481_v19 }
0x1666   : > { %v4480_v53 = vmul.f32 %v4478_v31, %v4478_v31 }
0x1668   : > { %v4484_v55 = vsel %vm2416_vm0, %v4480_v53, 0.0 }
0x1669   : > { %4485 = vadd.xlane.f32.xlu1 %v4484_v55 }
0x16f2   : > { %v4483_v32 = vpop.xlane.xlu1 %4482 }
0x16f3   : > { %v4487_v60 = vmul.f32 0.03125, %v4483_v32 }
0x16f5   : > { %v4489_v61 = vadd.f32 1e-05, %v4487_v60 }
0x16f6   : > { %v4486_v62 = vpop.xlane.xlu1 %4485 }
0x16f7   : > { %8442 = vrsqrt.f32 %v4489_v61  ;;  %v4488_v63 = vmul.f32 0.03125, %v4486_v62  ;;  %v7290_v62 = vld [vmem:[#allocation22] ss:$0 sm:$0xff] }
0x16f9   : > { %v4490_v0 = vadd.f32 1e-05, %v4488_v63 }
0x16fb   : > { %8444 = vrsqrt.f32 %v4490_v0 }
0x1701   : > { %v8443_v1 = vpop.eup %8442 }
0x1702   : > { %v4493_v4 = vmul.f32 %v8443_v1, %v4477_v50 }
0x1704   : > { %v4501_v7 = vmul.f32 %v7285_v2, %v4493_v4 }
0x1705   : > { %v8445_v8 = vpop.eup %8444 }
0x1706   : > { %v4494_v9 = vmul.f32 %v8445_v8, %v4478_v31  ;;  %v4509_v10 = vadd.f32 %v7286_v6, %v4501_v7 }
0x1708   : > { %v4502_v11 = vmul.f32 %v7285_v2, %v4494_v9  ;;  %7674 = vmatprep.mubr.msk.f32.mxu1 %vm2416_vm0, %v4509_v10 }
0x170a   : > { %v4510_v12 = vadd.f32 %v7286_v6, %v4502_v11 }
0x170c   : > { %7675 = vmatmul.mubr.msk.f32.vlgmr.msra.gmra.mrb[28].mxu1 %vm2416_vm0, %v4510_v12 }
0x170d   : > { %7716 = vmatprep.mubr.msk.f32.mxu1 %vm2416_vm0, %v4835_v16 }
0x17df   : > { %v7676_v42 = vpop.f32.mrb[28].mxu1 }
0x17e0   : > { %v4600_v46 = vadd.f32 %v7676_v42, %v7287_v40  ;;  %v4594_v47 = vpop.f32.mrb[29].mxu1 }
0x17e1   : > { %v4595_v48 = vadd.f32 %v7287_v40, %v4594_v47 }
0x17e2   : > { %v4604_v49 = vmul.f32 %v4600_v46, %v4600_v46 }
0x17e3   : > { %v4603_v50 = vmul.f32 %v4595_v48, %v4595_v48 }
0x17e4   : > { %v4606_v28 = vmul.f32 %v4604_v49, %v4600_v46 }
0x17e5   : > { %v4605_v51 = vmul.f32 %v4603_v50, %v4595_v48 }
0x17e6   : > { %v4608_v52 = vmul.f32 0.044715, %v4606_v28 }
0x17e7   : > { %v4607_v31 = vmul.f32 0.044715, %v4605_v51  ;;  %v7296_v51 = vld [vmem:[%s11771_s15] ss:$0 sm:$0xff]  ;;  %s6527_s15 = scalar_lea.sflag [#allocation4], %s10715_s11 }
0x17e8   : > { %v4610_v19 = vadd.f32 %v4608_v52, %v4600_v46 }
0x17e9   : > { %v4609_v53 = vadd.f32 %v4607_v31, %v4595_v48  ;;  %v4836_v31 = vld [vmem:[#allocation16 + $0x8] sm:$0xff] }
0x17ea   : > { %v4612_v55 = vmul.f32 0.7978846, %v4610_v19 }
0x17eb   : > { %v4611_v56 = vmul.f32 0.7978846, %v4609_v53  ;;  %v4837_v53 = vld [vmem:[#allocation16 + $0x10] sm:$0xff] }
0x17ec   : > { %8446 = vtanh.f32 %v4612_v55 }
0x17ed   : > { %8448 = vtanh.f32 %v4611_v56  ;;  %v4838_v56 = vld [vmem:[#allocation16 + $0x18] sm:$0xff] }
0x17f6   : > { %v8447_v57 = vpop.eup %8446 }
0x17f7   : > { %v8449_v58 = vpop.eup %8448  ;;  %v4616_v44 = vadd.f32 1.0, %v8447_v57  ;;  %v4942_v57 = vld [vmem:[#allocation13] sm:$0xff] }
0x17f8   : > { %v4615_v59 = vadd.f32 1.0, %v8449_v58  ;;  %v4943_v58 = vld [vmem:[#allocation13 + $0x8] sm:$0xff] }
0x17f9   : > { %v4618_v54 = vmul.f32 0.5, %v4616_v44  ;;  %v4944_v44 = vld [vmem:[#allocation13 + $0x10] sm:$0xff] }
0x17fa   : > { %v4617_v32 = vmul.f32 0.5, %v4615_v59  ;;  %v4945_v59 = vld [vmem:[#allocation13 + $0x18] sm:$0xff] }
0x17fb   : > { %v4620_v61 = vmul.f32 %v4618_v54, %v4600_v46  ;;  %v11067_v54 = vsub.s32 3, %v10812_v3 }
0x17fc   : > { %v4619_v60 = vmul.f32 %v4617_v32, %v4595_v48  ;;  %v7295_v48 = vld [vmem:[#allocation11] ss:$0 sm:$0xff] }
0x17fe   : > { %7709 = vmatprep.mubr.f32.mxu0 %v4619_v60  ;;  %v11072_v60 = vsub.s32 4, %v10812_v3 }
0x17ff   : > { %7710 = vmatmul.mubr.f32.vlgmr.msra.gmra.mrb[20].mxu0 %v4620_v61  ;;  %v11075_v61 = vsub.s32 5, %v10812_v3 }
0x18d2   : > { %v7711_v63 = vpop.f32.mrb[20].mxu0 }
0x18d3   : > { %v4710_v0 = vpop.f32.mrb[21].mxu0  ;;  %v4716_v1 = vadd.f32 %v7711_v63, %v7290_v62  ;;  %v5049_v63 = vld [vmem:[#allocation17] sm:$0xff] }
0x18d4   : > { %v4711_v2 = vadd.f32 %v7290_v62, %v4710_v0  ;;  %v11078_v62 = vsub.s32 6, %v10812_v3 }
0x18d5   : > { %v11033_v6 = vadd.f32 %v4716_v1, %v11001_v45 }
0x18d6   : > { %v11030_v4 = vadd.f32 %v4711_v2, %v10998_v43  ;;  %v5050_v2 = vld [vmem:[#allocation17 + $0x8] sm:$0xff] }
0x18d7   : > { %v4760_v8 = vsel %vm2416_vm0, %v11033_v6, 0.0 }
0x18d8   : > { %v4757_v7 = vsel %vm2416_vm0, %v11030_v4, 0.0 }
0x18d9   : > { %4758 = vadd.xlane.f32.xlu1 %v4757_v7  ;;  %v11092_v7 = vsub.s32 0, %v10812_v3 }
0x18dd   : > { %4761 = vadd.xlane.f32.xlu1 %v4760_v8  ;;  %v11095_v8 = vsub.s32 1, %v10812_v3 }
0x1966   : > { %v4759_v9 = vpop.xlane.xlu1 %4758 }
0x1967   : > { %v4763_v10 = vmul.f32 0.03125, %v4759_v9  ;;  %v11098_v9 = vsub.s32 2, %v10812_v3 }
0x1969   : > { %v4765_v11 = vsub.f32 %v11030_v4, %v4763_v10 }
0x196a   : > { %v4762_v12 = vpop.xlane.xlu1 %4761 }
0x196b   : > { %v4764_v13 = vmul.f32 0.03125, %v4762_v12  ;;  %v4767_v14 = vmul.f32 %v4765_v11, %v4765_v11 }
0x196d   : > { %v4766_v43 = vsub.f32 %v11033_v6, %v4764_v13  ;;  %v4769_v45 = vsel %vm2416_vm0, %v4767_v14, 0.0  ;;  %v5051_v14 = vld [vmem:[#allocation17 + $0x10] sm:$0xff] }
0x196e   : > { %4770 = vadd.xlane.f32.xlu1 %v4769_v45 }
0x196f   : > { %v4768_v41 = vmul.f32 %v4766_v43, %v4766_v43 }
0x1971   : > { %v4772_v15 = vsel %vm2416_vm0, %v4768_v41, 0.0 }
0x1972   : > { %4773 = vadd.xlane.f32.xlu1 %v4772_v15 }
0x19fb   : > { %v4771_v17 = vpop.xlane.xlu1 %4770 }
0x19fc   : > { %v4775_v18 = vmul.f32 0.03125, %v4771_v17  ;;  %v5052_v17 = vld [vmem:[#allocation17 + $0x18] sm:$0xff] }
0x19fe   : > { %v4777_v20 = vadd.f32 1e-05, %v4775_v18 }
0x19ff   : > { %v4774_v21 = vpop.xlane.xlu1 %4773 }
0x1a00   : > { %8450 = vrsqrt.f32 %v4777_v20  ;;  %v4776_v22 = vmul.f32 0.03125, %v4774_v21 }
0x1a02   : > { %v4778_v23 = vadd.f32 1e-05, %v4776_v22 }
0x1a04   : > { %8452 = vrsqrt.f32 %v4778_v23 }
0x1a0a   : > { %v8451_v24 = vpop.eup %8450 }
0x1a0b   : > { %v4781_v25 = vmul.f32 %v8451_v24, %v4765_v11 }
0x1a0d   : > { %v4789_v34 = vmul.f32 %v7291_v26, %v4781_v25  ;;  %v4807_v37 = vmul.f32 %v7293_v30, %v4781_v25  ;;  %v4825_v28 = vmul.f32 %v7295_v48, %v4781_v25 }
0x1a0e   : > { %v8453_v27 = vpop.eup %8452 }
0x1a0f   : > { %v4782_v33 = vmul.f32 %v8453_v27, %v4766_v43  ;;  %v4797_v5 = vadd.f32 %v7292_v35, %v4789_v34  ;;  %v4815_v47 = vadd.f32 %v7294_v39, %v4807_v37  ;;  %v4833_v19 = vadd.f32 %v7296_v51, %v4825_v28 }
0x1a11   : > { %v4790_v36 = vmul.f32 %v7291_v26, %v4782_v33  ;;  %v4808_v38 = vmul.f32 %v7293_v30, %v4782_v33  ;;  %v4826_v50 = vmul.f32 %v7295_v48, %v4782_v33 }
0x1a13   : > { %v4798_v40 = vadd.f32 %v7292_v35, %v4790_v36  ;;  %v4816_v42 = vadd.f32 %v7294_v39, %v4808_v38  ;;  %v4834_v52 = vadd.f32 %v7296_v51, %v4826_v50 }
0x1a15   : > { %v7937_v46 = vpack.c.bf16 %v4798_v40, %v4797_v5  ;;  %v7943_v49 = vpack.c.bf16 %v4816_v42, %v4815_v47  ;;  %v7949_v55 = vpack.c.bf16 %v4834_v52, %v4833_v19 }
0x1a17   : > { %7939 = vmatprep.subr.msk.bf16.mxu1 %vm10852_vm1, %v7937_v46 }
0x1a18   : > { %7942 = vmatpush3.bf16.xpose.msk.msra.mxu1 %vm10852_vm1, %v7937_v46 }
0x1a19   : > { %7945 = vmatprep.subr.msk.bf16.mxu1 %vm10852_vm1, %v7943_v49 }
0x1a1f   : > { %7717 = vmatmul.mubr.msk.f32.vlgmr.msra.gmra.mrb[30].mxu1 %vm2416_vm0, %v4836_v31 }
0x1a20   : > { %7948 = vmatpush3.bf16.xpose.msk.msra.mxu1 %vm10852_vm1, %v7943_v49  ;;  %7719 = vmatprep.mubr.msk.f32.mxu1 %vm2416_vm0, %v4837_v53 }
0x1a21   : > { %7951 = vmatprep.subr.msk.bf16.mxu1 %vm10852_vm1, %v7949_v55 }
0x1a23   : > { %7720 = vmatmul.mubr.msk.f32.gmra.mrb[32].mxu1 %vm2416_vm0, %v4838_v56 }
0x1a24   : > { %7726 = vmatprep.mubr.msk.f32.mxu1 %vm2416_vm0, %v4942_v57 }
0x1a27   : > { %7727 = vmatmul.mubr.msk.f32.vlgmr.msra.gmra.mrb[34].mxu1 %vm2416_vm0, %v4943_v58 }
0x1a28   : > { %7954 = vmatpush3.bf16.xpose.msk.msra.mxu1 %vm10852_vm1, %v7949_v55  ;;  %7729 = vmatprep.mubr.msk.f32.mxu1 %vm2416_vm0, %v4944_v44  ;;  %v4723_v44 = vld [vmem:[%s11772_s2] sm:$0xff] }
0x1a2b   : > { %7730 = vmatmul.mubr.msk.f32.gmra.mrb[36].mxu1 %vm2416_vm0, %v4945_v59 }
0x1a2c   : > { %7736 = vmatprep.mubr.msk.f32.mxu1 %vm2416_vm0, %v5049_v63 }
0x1a2f   : > { %7737 = vmatmul.mubr.msk.f32.vlgmr.msra.gmra.mrb[38].mxu1 %vm2416_vm0, %v5050_v2 }
0x1a30   : > { %7739 = vmatprep.mubr.msk.f32.mxu1 %vm2416_vm0, %v5051_v14 }
0x1a33   : > { %7740 = vmatmul.mubr.msk.f32.gmra.mrb[40].mxu1 %vm2416_vm0, %v5052_v17 }
0x1af2   : > { %v11069_v32 = vpop.f32.mrb[30].mxu1 }
0x1af3   : > { %v11083_v0 = vpop.f32.mrb[31].mxu1  ;;  %v11087_v1 = vrot.slane %v11069_v32, %v11067_v54  ;;  %v11103_v11 = vrot.slane %v11069_v32, %v11072_v60  ;;  %v11107_v12 = vrot.slane %v11069_v32, %v11075_v61  ;;  %v11111_v13 = vrot.slane %v11069_v32, %v11078_v62 }
0x1af4   : > { %5696 = vxpose.xlu1.b32.start [1/2] (short) (narrow) %v11083_v0, 16  ;;  %v11115_v3 = vrot.slane %v11069_v32, %v11081_v29  ;;  %v5159_v33 = vrot.slane %v11083_v0, %v11092_v7  ;;  %v5192_v34 = vrot.slane %v11083_v0, %v11067_v54  ;;  %v5203_v37 = vrot.slane %v11083_v0, %v11072_v60 }
0x1af5   : > { %v5170_v38 = vrot.slane %v11083_v0, %v11095_v8  ;;  %v5214_v5 = vrot.slane %v11083_v0, %v11075_v61  ;;  %v5181_v40 = vrot.slane %v11083_v0, %v11098_v9  ;;  %v5225_v46 = vrot.slane %v11083_v0, %v11078_v62 }
0x1af6   : > { %v7721_v10 = vpop.f32.mrb[32].mxu1  ;;  %v5236_v48 = vrot.slane %v11083_v0, %v11081_v29  ;;  %v5247_v50 = vrot.slane %v11069_v32, %v11092_v7  ;;  %v5258_v51 = vrot.slane %v11069_v32, %v11095_v8  ;;  %v5269_v31 = vrot.slane %v11069_v32, %v11098_v9 }
0x1af7   : > { %v11117_v43 = vpop.f32.mrb[33].mxu1  ;;  %v11120_v45 = vrot.slane %v7721_v10, %v11092_v7  ;;  %v11123_v41 = vrot.slane %v7721_v10, %v11095_v8  ;;  %v11126_v15 = vrot.slane %v7721_v10, %v11098_v9  ;;  %v11129_v16 = vrot.slane %v7721_v10, %v11067_v54 }
0x1af8   : > { %5697 = vxpose.xlu1.b32.end [2/2] (short) (narrow) %v11069_v32, 16  ;;  %5809 = vxpose.xlu0.b32.start [1/2] (short) (narrow) %v11117_v43, 16  ;;  %v11136_v20 = vrot.slane %v7721_v10, %v11072_v60  ;;  %v11139_v21 = vrot.slane %v7721_v10, %v11075_v61  ;;  %v11142_v22 = vrot.slane %v7721_v10, %v11078_v62 }
0x1af9   : > { %v11145_v24 = vrot.slane %v7721_v10, %v11081_v29  ;;  %v5335_v35 = vrot.slane %v11117_v43, %v11092_v7  ;;  %v5346_v36 = vrot.slane %v11117_v43, %v11095_v8  ;;  %v5357_v39 = vrot.slane %v11117_v43, %v11098_v9  ;;  %v4727_v7 = vld [vmem:[%s11772_s2 + $0x20] sm:$0xff]  ;;  %v4724_v8 = vld [vmem:[%s11772_s2 + $0x8] sm:$0xff] }
0x1afa   : > { %v7728_v18 = vpop.f32.mrb[34].mxu1  ;;  %v5368_v42 = vrot.slane %v11117_v43, %v11067_v54  ;;  %v5379_v47 = vrot.slane %v11117_v43, %v11072_v60  ;;  %v5390_v49 = vrot.slane %v11117_v43, %v11075_v61  ;;  %v5401_v28 = vrot.slane %v11117_v43, %v11078_v62  ;;  %v4725_v54 = vld [vmem:[%s11772_s2 + $0x10] sm:$0xff] }
0x1afb   : > { %v5030_v23 = vpop.f32.mrb[35].mxu1  ;;  %v5412_v52 = vrot.slane %v11117_v43, %v11081_v29 }
0x1afc   : > { %5810 = vxpose.xlu0.b32.end [2/2] (short) (narrow) %v7721_v10, 16  ;;  %v7955_v25 = vpack.c.bf16 %v7728_v18, %v5030_v23  ;;  %v4729_v23 = vld [vmem:[%s11772_s2 + $0x30] sm:$0xff] }
0x1afe   : > { %v7731_v26 = vpop.f32.mrb[36].mxu1  ;;  %7956 = vmatprep.subr.bf16.mxu0 %v7955_v25 }
0x1aff   : > { %v5040_v27 = vpop.f32.mrb[37].mxu1  ;;  %7958 = vmatpush3.bf16.msra.mxu0 %v7955_v25 }
0x1b00   : > { %v7959_v30 = vpack.c.bf16 %v7731_v26, %v5040_v27  ;;  %v11227_v26 = vld [vmem:[%s11772_s2 + $0x40] sm:$0xff] }
0x1b02   : > { %7960 = vmatprep.subr.bf16.mxu1 %v7959_v30 }
0x1b03   : > { %7962 = vmatpush3.bf16.msra.mxu1 %v7959_v30 }
0x1b16   : > { %5165 = vbcast.lane.b32.xlu1 %v5159_v33, 264 }
0x1b1a   : > { %5194 = vbcast.lane.b32.xlu1 %v5192_v34, 256 }
0x1b1e   : > { %5337 = vbcast.lane.b32.xlu1 %v5335_v35, 256 }
0x1b22   : > { %5348 = vbcast.lane.b32.xlu1 %v5346_v36, 256 }
0x1b25   : > { %5161 = vbcast.lane.b32.xlu0 %v5159_v33, 256 }
0x1b26   : > { %5205 = vbcast.lane.b32.xlu1 %v5203_v37, 256 }
0x1b29   : > { %5172 = vbcast.lane.b32.xlu0 %v5170_v38, 256 }
0x1b2a   : > { %5359 = vbcast.lane.b32.xlu1 %v5357_v39, 256 }
0x1b2d   : > { %5176 = vbcast.lane.b32.xlu0 %v5170_v38, 264  ;;  %v4728_v38 = vld [vmem:[%s11772_s2 + $0x28] sm:$0xff] }
0x1b2e   : > { %5216 = vbcast.lane.b32.xlu1 %v5214_v5, 256 }
0x1b31   : > { %5183 = vbcast.lane.b32.xlu0 %v5181_v40, 256 }
0x1b32   : > { %5370 = vbcast.lane.b32.xlu1 %v5368_v42, 256 }
0x1b35   : > { %5187 = vbcast.lane.b32.xlu0 %v5181_v40, 264 }
0x1b36   : > { %5227 = vbcast.lane.b32.xlu1 %v5225_v46, 256 }
0x1b39   : > { %5198 = vbcast.lane.b32.xlu0 %v5192_v34, 264 }
0x1b3a   : > { %5381 = vbcast.lane.b32.xlu1 %v5379_v47, 256 }
0x1b3d   : > { %5341 = vbcast.lane.b32.xlu0 %v5335_v35, 264 }
0x1b3e   : > { %5238 = vbcast.lane.b32.xlu1 %v5236_v48, 256 }
0x1b41   : > { %5352 = vbcast.lane.b32.xlu0 %v5346_v36, 264  ;;  %v11230_v36 = vld [vmem:[%s11772_s2 + $0x50] sm:$0xff] }
0x1b42   : > { %5392 = vbcast.lane.b32.xlu1 %v5390_v49, 256 }
0x1b45   : > { %5209 = vbcast.lane.b32.xlu0 %v5203_v37, 264 }
0x1b46   : > { %5249 = vbcast.lane.b32.xlu1 %v5247_v50, 256 }
0x1b49   : > { %5363 = vbcast.lane.b32.xlu0 %v5357_v39, 264 }
0x1b4a   : > { %5403 = vbcast.lane.b32.xlu1 %v5401_v28, 256 }
0x1b4d   : > { %5220 = vbcast.lane.b32.xlu0 %v5214_v5, 264 }
0x1b4e   : > { %5260 = vbcast.lane.b32.xlu1 %v5258_v51, 256 }
0x1b51   : > { %5374 = vbcast.lane.b32.xlu0 %v5368_v42, 264 }
0x1b52   : > { %5414 = vbcast.lane.b32.xlu1 %v5412_v52, 256 }
0x1b55   : > { %5231 = vbcast.lane.b32.xlu0 %v5225_v46, 264 }
0x1b56   : > { %5271 = vbcast.lane.b32.xlu1 %v5269_v31, 256 }
0x1b59   : > { %5385 = vbcast.lane.b32.xlu0 %v5379_v47, 264 }
0x1b5a   : > { %5425 = vbcast.lane.b32.xlu1 %v11120_v45, 256 }
0x1b5d   : > { %5242 = vbcast.lane.b32.xlu0 %v5236_v48, 264 }
0x1b5e   : > { %5282 = vbcast.lane.b32.xlu1 %v11087_v1, 256 }
0x1b61   : > { %5396 = vbcast.lane.b32.xlu0 %v5390_v49, 264 }
0x1b62   : > { %5436 = vbcast.lane.b32.xlu1 %v11123_v41, 256 }
0x1b65   : > { %5253 = vbcast.lane.b32.xlu0 %v5247_v50, 264 }
0x1b66   : > { %5293 = vbcast.lane.b32.xlu1 %v11103_v11, 256 }
0x1b69   : > { %5407 = vbcast.lane.b32.xlu0 %v5401_v28, 264 }
0x1b6a   : > { %5447 = vbcast.lane.b32.xlu1 %v11126_v15, 256 }
0x1b6d   : > { %5264 = vbcast.lane.b32.xlu0 %v5258_v51, 264 }
0x1b6e   : > { %5304 = vbcast.lane.b32.xlu1 %v11107_v12, 256 }
0x1b71   : > { %5418 = vbcast.lane.b32.xlu0 %v5412_v52, 264 }
0x1b72   : > { %5458 = vbcast.lane.b32.xlu1 %v11129_v16, 256 }
0x1b74   : > { %v5712_v19 = vpop.trf.xlu1 }
0x1b75   : > { %5275 = vbcast.lane.b32.xlu0 %v5269_v31, 264  ;;  %7746 = vmatprep.mubr.msk.f32.mxu0 %vm2930_vm3, %v5712_v19 }
0x1b76   : > { %5315 = vbcast.lane.b32.xlu1 %v11111_v13, 256 }
0x1b78   : > { %v5713_v53 = vpop.trf.xlu1  ;;  %v5825_v55 = vpop.trf.xlu0 }
0x1b79   : > { %5429 = vbcast.lane.b32.xlu0 %v11120_v45, 264  ;;  %7747 = vmatmul.mubr.msk.f32.vlgmr.msra.gmra.mrb[22].mxu0 %vm2930_vm3, %v5713_v53 }
0x1b7a   : > { %5469 = vbcast.lane.b32.xlu1 %v11136_v20, 256  ;;  %7753 = vmatprep.mubr.msk.f32.mxu1 %vm2930_vm3, %v5825_v55 }
0x1b7c   : > { %v5826_v56 = vpop.trf.xlu0 }
0x1b7d   : > { %5286 = vbcast.lane.b32.xlu0 %v11087_v1, 264  ;;  %7754 = vmatmul.mubr.msk.f32.vlgmr.msra.gmra.mrb[42].mxu1 %vm2930_vm3, %v5826_v56 }
0x1b7e   : > { %5326 = vbcast.lane.b32.xlu1 %v11115_v3, 256 }
0x1b81   : > { %5440 = vbcast.lane.b32.xlu0 %v11123_v41, 264 }
0x1b82   : > { %5480 = vbcast.lane.b32.xlu1 %v11139_v21, 256 }
0x1b85   : > { %5297 = vbcast.lane.b32.xlu0 %v11103_v11, 264 }
0x1b86   : > { %5491 = vbcast.lane.b32.xlu1 %v11142_v22, 256 }
0x1b88   : > { %v5166_v57 = vpop.permute.xlu1 %5165 }
0x1b89   : > { %5451 = vbcast.lane.b32.xlu0 %v11126_v15, 264  ;;  %v5509_v14 = vmul.f32 %v5166_v57, %v4724_v8 }
0x1b8a   : > { %5502 = vbcast.lane.b32.xlu1 %v11145_v24, 256 }
0x1b8c   : > { %v5195_v58 = vpop.permute.xlu1 %5194 }
0x1b8d   : > { %5308 = vbcast.lane.b32.xlu0 %v11107_v12, 264  ;;  %v5514_v33 = vmul.f32 %v5195_v58, %v4729_v23 }
0x1b8f   : > { %v5577_v46 = vsel %vm2930_vm3, %v5514_v33, 0.0 }
0x1b90   : > { %v5338_v59 = vpop.permute.xlu1 %5337 }
0x1b91   : > { %5462 = vbcast.lane.b32.xlu0 %v11129_v16, 264  ;;  %v5540_v32 = vmul.f32 %v5338_v59, %v4723_v44 }
0x1b93   : > { %v5634_v62 = vsel %vm2930_vm3, %v5540_v32, 0.0  ;;  %v11250_v32 = vld [vmem:[%s11772_s2 + $0x48] sm:$0xff] }
0x1b94   : > { %v5349_v60 = vpop.permute.xlu1 %5348 }
0x1b95   : > { %v5542_v61 = vmul.f32 %v5349_v60, %v4725_v54  ;;  %5319 = vbcast.lane.b32.xlu0 %v11111_v13, 264  ;;  %v4726_v13 = vld [vmem:[%s11772_s2 + $0x18] sm:$0xff] }
0x1b97   : > { %v5635_v29 = vsel %vm2930_vm3, %v5542_v61, 0.0  ;;  %v5162_v63 = vpop.permute.xlu0 %5161 }
0x1b98   : > { %v5636_v0 = vadd.f32 %v5635_v29, %v5634_v62  ;;  %v5206_v1 = vpop.permute.xlu1 %5205  ;;  %v5508_v2 = vmul.f32 %v5162_v63, %v4723_v44 }
0x1b99   : > { %5473 = vbcast.lane.b32.xlu0 %v11136_v20, 264 }
0x1b9a   : > { %v5572_v43 = vsel %vm2930_vm3, %v5508_v2, 0.0 }
0x1b9b   : > { %v5173_v9 = vpop.permute.xlu0 %5172 }
0x1b9c   : > { %v5510_v10 = vmul.f32 %v5173_v9, %v4725_v54  ;;  %v5360_v11 = vpop.permute.xlu1 %5359  ;;  %v11257_v9 = vld [vmem:[%s11772_s2 + $0x58] sm:$0xff] }
0x1b9d   : > { %v5544_v12 = vmul.f32 %v5360_v11, %v4727_v7  ;;  %5330 = vbcast.lane.b32.xlu0 %v11115_v3, 264  ;;  %v5603_v3 = vsel %vm2930_vm3, %v5509_v14, 0.0 }
0x1b9e   : > { %v5573_v45 = vsel %vm2930_vm3, %v5510_v10, 0.0 }
0x1b9f   : > { %v5574_v41 = vadd.f32 %v5573_v45, %v5572_v43  ;;  %v5637_v15 = vsel %vm2930_vm3, %v5544_v12, 0.0  ;;  %v5177_v16 = vpop.permute.xlu0 %5176 }
0x1ba0   : > { %v5638_v17 = vadd.f32 %v5637_v15, %v5636_v0  ;;  %v5511_v18 = vmul.f32 %v5177_v16, %v4726_v13  ;;  %v5217_v20 = vpop.permute.xlu1 %5216 }
0x1ba1   : > { %5484 = vbcast.lane.b32.xlu0 %v11139_v21, 264  ;;  %v5516_v21 = vmul.f32 %v5206_v1, %v11227_v26  ;;  %v5518_v47 = vmul.f32 %v5217_v20, %v11230_v36 }
0x1ba2   : > { %v5604_v25 = vsel %vm2930_vm3, %v5511_v18, 0.0  ;;  %v11267_v18 = vpop.f32.mrb[38].mxu1 }
0x1ba3   : > { %v5605_v27 = vadd.f32 %v5604_v25, %v5603_v3  ;;  %v5184_v30 = vpop.permute.xlu0 %5183  ;;  %v5579_v28 = vsel %vm2930_vm3, %v5516_v21, 0.0  ;;  %v5581_v53 = vsel %vm2930_vm3, %v5518_v47, 0.0  ;;  %v5137_v3 = vpop.f32.mrb[39].mxu1 }
0x1ba4   : > { %v5512_v34 = vmul.f32 %v5184_v30, %v4727_v7  ;;  %v5371_v35 = vpop.permute.xlu1 %5370  ;;  %v11271_v25 = vpop.f32.mrb[40].mxu1  ;;  %7760 = vmatprep.mubr.msk.f32.mxu0 %vm2930_vm3, %v5137_v3 }
0x1ba5   : > { %v5546_v37 = vmul.f32 %v5371_v35, %v4729_v23  ;;  %5495 = vbcast.lane.b32.xlu0 %v11142_v22, 264  ;;  %v4730_v22 = vld [vmem:[%s11772_s2 + $0x38] sm:$0xff] }
0x1ba6   : > { %v5575_v39 = vsel %vm2930_vm3, %v5512_v34, 0.0 }
0x1ba7   : > { %v5576_v5 = vadd.f32 %v5575_v39, %v5574_v41  ;;  %v5639_v40 = vsel %vm2930_vm3, %v5546_v37, 0.0  ;;  %v5188_v42 = vpop.permute.xlu0 %5187 }
0x1ba8   : > { %v11239_v48 = vadd.f32 %v5639_v40, %v5638_v17  ;;  %v5513_v49 = vmul.f32 %v5188_v42, %v4728_v38  ;;  %v5228_v17 = vpop.permute.xlu1 %5227 }
0x1ba9   : > { %v5578_v50 = vadd.f32 %v5577_v46, %v5576_v5  ;;  %5506 = vbcast.lane.b32.xlu0 %v11145_v24, 264 }
0x1baa   : > { %v5606_v51 = vsel %vm2930_vm3, %v5513_v49, 0.0 }
0x1bab   : > { %v5607_v52 = vadd.f32 %v5606_v51, %v5605_v27  ;;  %v5580_v31 = vadd.f32 %v5579_v28, %v5578_v50  ;;  %v5199_v19 = vpop.permute.xlu0 %5198  ;;  %v5147_v27 = vpop.f32.mrb[41].mxu1 }
0x1bac   : > { %v5515_v55 = vmul.f32 %v5199_v19, %v4730_v22  ;;  %v5382_v23 = vpop.permute.xlu1 %5381  ;;  %7767 = vmatprep.mubr.msk.f32.mxu1 %vm2930_vm3, %v5147_v27 }
0x1bad   : > { %v11246_v56 = vadd.f32 %v5581_v53, %v5580_v31 }
0x1bae   : > { %v5608_v57 = vsel %vm2930_vm3, %v5515_v55, 0.0 }
0x1baf   : > { %v5609_v58 = vadd.f32 %v5608_v57, %v5607_v52  ;;  %v5342_v44 = vpop.permute.xlu0 %5341 }
0x1bb0   : > { %v5541_v24 = vmul.f32 %v5342_v44, %v4724_v8  ;;  %v5239_v33 = vpop.permute.xlu1 %5238 }
0x1bb2   : > { %v5665_v60 = vsel %vm2930_vm3, %v5541_v24, 0.0 }
0x1bb3   : > { %v5353_v59 = vpop.permute.xlu0 %5352 }
0x1bb4   : > { %v5543_v54 = vmul.f32 %v5353_v59, %v4726_v13  ;;  %v5393_v35 = vpop.permute.xlu1 %5392 }
0x1bb6   : > { %v5666_v61 = vsel %vm2930_vm3, %v5543_v54, 0.0  ;;  %v4735_v54 = vld [vmem:[%s11772_s2 + $0x60] sm:$0xff] }
0x1bb7   : > { %v5667_v62 = vadd.f32 %v5666_v61, %v5665_v60  ;;  %v5210_v29 = vpop.permute.xlu0 %5209  ;;  %v4737_v60 = vld [vmem:[%s11772_s2 + $0x70] sm:$0xff]  ;;  %v5520_v61 = vmul.f32 %v5228_v17, %v4735_v54 }
0x1bb8   : > { %v5517_v63 = vmul.f32 %v5210_v29, %v11250_v32 }
0x1bba   : > { %v5610_v0 = vsel %vm2930_vm3, %v5517_v63, 0.0  ;;  %v5548_v63 = vmul.f32 %v5382_v23, %v11227_v26 }
0x1bbb   : > { %v5611_v1 = vadd.f32 %v5610_v0, %v5609_v58  ;;  %v5364_v2 = vpop.permute.xlu0 %5363  ;;  %v5522_v0 = vmul.f32 %v5239_v33, %v4737_v60 }
0x1bbc   : > { %v5545_v7 = vmul.f32 %v5364_v2, %v4728_v38  ;;  %v5250_v38 = vpop.permute.xlu1 %5249  ;;  %v4741_v2 = vld [vmem:[%s11772_s2 + $0x90] sm:$0xff] }
0x1bbe   : > { %v5668_v8 = vsel %vm2930_vm3, %v5545_v7, 0.0  ;;  %v5550_v7 = vmul.f32 %v5393_v35, %v11230_v36 }
0x1bbf   : > { %v5669_v10 = vadd.f32 %v5668_v8, %v5667_v62  ;;  %v5221_v11 = vpop.permute.xlu0 %5220  ;;  %v4739_v62 = vld [vmem:[%s11772_s2 + $0x80] sm:$0xff] }
0x1bc0   : > { %v5519_v12 = vmul.f32 %v5221_v11, %v11257_v9  ;;  %v5404_v39 = vpop.permute.xlu1 %5403  ;;  %v5524_v8 = vmul.f32 %v5250_v38, %v4739_v62  ;;  %v4736_v11 = vld [vmem:[%s11772_s2 + $0x68] sm:$0xff]  ;;  %v5643_v23 = vsel %vm2930_vm3, %v5550_v7, 0.0 }
0x1bc2   : > { %v5612_v13 = vsel %vm2930_vm3, %v5519_v12, 0.0  ;;  %v5641_v12 = vsel %vm2930_vm3, %v5548_v63, 0.0  ;;  %v5587_v36 = vsel %vm2930_vm3, %v5524_v8, 0.0 }
0x1bc3   : > { %v11262_v14 = vadd.f32 %v5612_v13, %v5611_v1  ;;  %v5375_v43 = vpop.permute.xlu0 %5374  ;;  %v5585_v13 = vsel %vm2930_vm3, %v5522_v0, 0.0  ;;  %v5642_v35 = vadd.f32 %v5641_v12, %v11239_v48 }
0x1bc4   : > { %v5547_v45 = vmul.f32 %v5375_v43, %v4730_v22  ;;  %v5261_v40 = vpop.permute.xlu1 %5260  ;;  %v5552_v43 = vmul.f32 %v5404_v39, %v4735_v54  ;;  %v11336_v39 = vld [vmem:[%s11772_s2 + $0xb0] sm:$0xff] }
0x1bc6   : > { %v5670_v41 = vsel %vm2930_vm3, %v5547_v45, 0.0  ;;  %v5526_v45 = vmul.f32 %v5261_v40, %v4741_v2 }
0x1bc7   : > { %v11265_v15 = vadd.f32 %v5670_v41, %v5669_v10  ;;  %v5232_v16 = vpop.permute.xlu0 %5231  ;;  %v5583_v10 = vsel %vm2930_vm3, %v5520_v61, 0.0  ;;  %v4743_v41 = vld [vmem:[%s11772_s2 + $0xa0] sm:$0xff]  ;;  %v4738_v61 = vld [vmem:[%s11772_s2 + $0x78] sm:$0xff] }
0x1bc8   : > { %v5415_v46 = vpop.permute.xlu1 %5414  ;;  %v5584_v26 = vadd.f32 %v5583_v10, %v11246_v56  ;;  %v5521_v27 = vmul.f32 %v5232_v16, %v4736_v11  ;;  %v5645_v56 = vsel %vm2930_vm3, %v5552_v43, 0.0  ;;  %v5589_v40 = vsel %vm2930_vm3, %v5526_v45, 0.0  ;;  %v4740_v10 = vld [vmem:[%s11772_s2 + $0x88] sm:$0xff] }
0x1bc9   : > { %v5554_v3 = vmul.f32 %v5415_v46, %v4737_v60  ;;  %v5644_v46 = vadd.f32 %v5643_v23, %v5642_v35 }
0x1bca   : > { %v5586_v38 = vadd.f32 %v5585_v13, %v5584_v26  ;;  %v5614_v48 = vsel %vm2930_vm3, %v5521_v27, 0.0 }
0x1bcb   : > { %v11269_v20 = vpop.permute.xlu0 %5385  ;;  %v5647_v0 = vsel %vm2930_vm3, %v5554_v3, 0.0  ;;  %v5646_v12 = vadd.f32 %v5645_v56, %v5644_v46  ;;  %v5615_v26 = vadd.f32 %v5614_v48, %v11262_v14  ;;  %v11363_v3 = vld [vmem:[%s11772_s2 + $0xd0] sm:$0xff]  ;;  %v4746_v46 = vld [vmem:[%s11772_s2 + $0xb8] sm:$0xff] }
0x1bcc   : > { %v5272_v49 = vpop.permute.xlu1 %5271  ;;  %v5549_v63 = vmul.f32 %v11269_v20, %v11250_v32  ;;  %v5588_v16 = vadd.f32 %v5587_v36, %v5586_v38 }
0x1bcd   : > { %v5528_v54 = vmul.f32 %v5272_v49, %v4743_v41  ;;  %v11348_v49 = vld [vmem:[%s11772_s2 + $0xc0] sm:$0xff] }
0x1bce   : > { %v5590_v13 = vadd.f32 %v5589_v40, %v5588_v16  ;;  %v5672_v20 = vsel %vm2930_vm3, %v5549_v63, 0.0 }
0x1bcf   : > { %v11275_v30 = vpop.permute.xlu0 %5242  ;;  %v5591_v32 = vsel %vm2930_vm3, %v5528_v54, 0.0 }
0x1bd0   : > { %v5426_v22 = vpop.permute.xlu1 %5425  ;;  %v5523_v7 = vmul.f32 %v11275_v30, %v4738_v61  ;;  %v4742_v30 = vld [vmem:[%s11772_s2 + $0x98] sm:$0xff] }
0x1bd1   : > { %v5556_v60 = vmul.f32 %v5426_v22, %v4739_v62 }
0x1bd2   : > { %v5616_v27 = vsel %vm2930_vm3, %v5523_v7, 0.0  ;;  %v4748_v7 = vld [vmem:[%s11772_s2 + $0xc8] sm:$0xff] }
0x1bd3   : > { %v11277_v34 = vpop.permute.xlu0 %5396  ;;  %v5649_v23 = vsel %vm2930_vm3, %v5556_v60, 0.0 }
0x1bd4   : > { %v5283_v51 = vpop.permute.xlu1 %5282  ;;  %v5551_v22 = vmul.f32 %v11277_v34, %v11257_v9 }
0x1bd5   : > { %v5530_v8 = vmul.f32 %v5283_v51, %v11336_v39  ;;  %v5648_v51 = vadd.f32 %v5647_v0, %v5646_v12 }
0x1bd6   : > { %v5674_v56 = vsel %vm2930_vm3, %v5551_v22, 0.0  ;;  %v4750_v22 = vld [vmem:[%s11772_s2 + $0xd8] sm:$0xff] }
0x1bd7   : > { %v11279_v37 = vpop.permute.xlu0 %5253  ;;  %v5593_v35 = vsel %vm2930_vm3, %v5530_v8, 0.0 }
0x1bd8   : > { %v5437_v31 = vpop.permute.xlu1 %5436  ;;  %v5525_v36 = vmul.f32 %v11279_v37, %v4740_v10  ;;  %v4744_v37 = vld [vmem:[%s11772_s2 + $0xa8] sm:$0xff] }
0x1bd9   : > { %v5558_v62 = vmul.f32 %v5437_v31, %v4741_v2  ;;  %v5592_v31 = vadd.f32 %v5591_v32, %v5590_v13  ;;  %v5673_v2 = vadd.f32 %v5672_v20, %v11265_v15 }
0x1bda   : > { %v5618_v15 = vsel %vm2930_vm3, %v5525_v36, 0.0 }
0x1bdb   : > { %v11281_v21 = vpop.permute.xlu0 %5407  ;;  %v5651_v40 = vsel %vm2930_vm3, %v5558_v62, 0.0 }
0x1bdc   : > { %v11297_v53 = vpop.permute.xlu1 %5293  ;;  %v5553_v34 = vmul.f32 %v11281_v21, %v4736_v11  ;;  %v5617_v21 = vadd.f32 %v5616_v27, %v5615_v26  ;;  %v5594_v11 = vadd.f32 %v5593_v35, %v5592_v31  ;;  %v4752_v35 = vld [vmem:[%s11772_s2 + $0xe8] sm:$0xff] }
0x1bdd   : > { %v5532_v9 = vmul.f32 %v11297_v53, %v11348_v49  ;;  %v5650_v53 = vadd.f32 %v5649_v23, %v5648_v51  ;;  %v4751_v51 = vld [vmem:[%s11772_s2 + $0xe0] sm:$0xff] }
0x1bde   : > { %v5619_v32 = vadd.f32 %v5618_v15, %v5617_v21 }
0x1bdf   : > { %v11283_v5 = vpop.permute.xlu0 %5264 }
0x1be0   : > { %v11301_v57 = vpop.permute.xlu1 %5447  ;;  %v5527_v38 = vmul.f32 %v11283_v5, %v4742_v30  ;;  %v5595_v5 = vsel %vm2930_vm3, %v5532_v9, 0.0 }
0x1be1   : > { %v5560_v14 = vmul.f32 %v11301_v57, %v4743_v41  ;;  %v5676_v41 = vsel %vm2930_vm3, %v5553_v34, 0.0 }
0x1be2   : > { %v5620_v48 = vsel %vm2930_vm3, %v5527_v38, 0.0 }
0x1be3   : > { %v11285_v42 = vpop.permute.xlu0 %5418  ;;  %v5653_v0 = vsel %vm2930_vm3, %v5560_v14, 0.0 }
0x1be4   : > { %v11305_v44 = vpop.permute.xlu1 %5304  ;;  %v5555_v63 = vmul.f32 %v11285_v42, %v4738_v61  ;;  %v5675_v42 = vadd.f32 %v5674_v56, %v5673_v2  ;;  %v5652_v61 = vadd.f32 %v5651_v40, %v5650_v53  ;;  %v4754_v56 = vld [vmem:[%s11772_s2 + $0xf8] sm:$0xff] }
0x1be5   : > { %v5534_v54 = vmul.f32 %v11305_v44, %v11363_v3 }
0x1be6   : > { %v5678_v12 = vsel %vm2930_vm3, %v5555_v63, 0.0  ;;  %v5654_v36 = vadd.f32 %v5653_v0, %v5652_v61 }
0x1be7   : > { %v11287_v47 = vpop.permute.xlu0 %5275  ;;  %v5597_v8 = vsel %vm2930_vm3, %v5534_v54, 0.0 }
0x1be8   : > { %v11309_v59 = vpop.permute.xlu1 %5458  ;;  %v5529_v16 = vmul.f32 %v11287_v47, %v4744_v37 }
0x1be9   : > { %v5562_v20 = vmul.f32 %v11309_v59, %v11336_v39  ;;  %v4753_v59 = vld [vmem:[%s11772_s2 + $0xf0] sm:$0xff]  ;;  %s9504_s2 = sshll.u32 %s9787_s1, 4  ;;  %s9505_s2 = int_to_ptr.vmem [resolvable:$false] %s9504_s2 }
0x1bea   : > { %v5622_v62 = vsel %vm2930_vm3, %v5529_v16, 0.0  ;;  %s9506_s4 = scalar_lea.vmem %s9505_s2, 256  ;;  %p9507_p9 = scmp.lt.s32.totalorder %s6546_s3, %s9505_s2 }
0x1beb   : > { %v11289_v50 = vpop.permute.xlu0 %5429 }
0x1bec   : > { %v11317_v1 = vpop.permute.xlu1 %5315  ;;  %v5557_v60 = vmul.f32 %v11289_v50, %v4740_v10  ;;  %v5596_v50 = vadd.f32 %v5595_v5, %v5594_v11  ;;  %v5677_v10 = vadd.f32 %v5676_v41, %v5675_v42 }
0x1bed   : > { %v5536_v38 = vmul.f32 %v11317_v1, %v4751_v51 }
0x1bee   : > { %v5680_v26 = vsel %vm2930_vm3, %v5557_v60, 0.0  ;;  %v5679_v27 = vadd.f32 %v5678_v12, %v5677_v10 }
0x1bef   : > { %v11291_v28 = vpop.permute.xlu0 %5286  ;;  %v5599_v42 = vsel %vm2930_vm3, %v5536_v38, 0.0 }
0x1bf0   : > { %v11331_v33 = vpop.permute.xlu1 %5469  ;;  %v5531_v13 = vmul.f32 %v11291_v28, %v4746_v46 }
0x1bf2   : > { %v5624_v34 = vsel %vm2930_vm3, %v5531_v13, 0.0 }
0x1bf3   : > { %v11293_v52 = vpop.permute.xlu0 %5440 }
0x1bf4   : > { %v11357_v45 = vpop.permute.xlu1 %5326  ;;  %v5559_v47 = vmul.f32 %v11293_v52, %v4742_v30  ;;  %v5621_v52 = vadd.f32 %v5620_v48, %v5619_v32  ;;  %v5598_v30 = vadd.f32 %v5597_v8, %v5596_v50 }
0x1bf6   : > { %v5682_v39 = vsel %vm2930_vm3, %v5559_v47, 0.0  ;;  %v5600_v50 = vadd.f32 %v5599_v42, %v5598_v30 }
0x1bf7   : > { %v11295_v19 = vpop.permute.xlu0 %5297 }
0x1bf8   : > { %v5481_v44 = vpop.permute.xlu1 %5480  ;;  %v5533_v23 = vmul.f32 %v11295_v19, %v4748_v7  ;;  %v5655_v19 = vsel %vm2930_vm3, %v5562_v20, 0.0 }
0x1bf9   : > { %v5656_v41 = vadd.f32 %v5655_v19, %v5654_v36  ;;  %v5566_v16 = vmul.f32 %v5481_v44, %v11363_v3 }
0x1bfa   : > { %v5626_v40 = vsel %vm2930_vm3, %v5533_v23, 0.0 }
0x1bfb   : > { %v11299_v55 = vpop.permute.xlu0 %5451  ;;  %v5659_v12 = vsel %vm2930_vm3, %v5566_v16, 0.0 }
0x1bfc   : > { %v5561_v28 = vmul.f32 %v11299_v55, %v4744_v37  ;;  %v5492_v31 = vpop.permute.xlu1 %5491  ;;  %v5623_v55 = vadd.f32 %v5622_v62, %v5621_v52  ;;  %v5681_v37 = vadd.f32 %v5680_v26, %v5679_v27 }
0x1bfd   : > { %v5568_v48 = vmul.f32 %v5492_v31, %v4751_v51 }
0x1bfe   : > { %v5684_v54 = vsel %vm2930_vm3, %v5561_v28, 0.0  ;;  %v5625_v21 = vadd.f32 %v5624_v34, %v5623_v55  ;;  %v5683_v11 = vadd.f32 %v5682_v39, %v5681_v37  ;;  %v4722_v28 = vld [vmem:[#allocation19 + $0x8] sm:$0xff]  ;;  %v4721_v34 = vld [vmem:[#allocation19] sm:$0xff] }
0x1bff   : > { %v11303_v58 = vpop.permute.xlu0 %5308 }
0x1c00   : > { %v5535_v2 = vmul.f32 %v11303_v58, %v4750_v22  ;;  %v5564_v58 = vmul.f32 %v11331_v33, %v11348_v49  ;;  %v5685_v60 = vadd.f32 %v5684_v54, %v5683_v11  ;;  %v5503_v33 = vpop.permute.xlu1 %5502 }
0x1c01   : > { %v5570_v13 = vmul.f32 %v5503_v33, %v4753_v59 }
0x1c02   : > { %v5628_v15 = vsel %vm2930_vm3, %v5535_v2, 0.0  ;;  %v5657_v0 = vsel %vm2930_vm3, %v5564_v58, 0.0 }
0x1c03   : > { %v11307_v24 = vpop.permute.xlu0 %5462  ;;  %v5658_v10 = vadd.f32 %v5657_v0, %v5656_v41  ;;  %v5663_v27 = vsel %vm2930_vm3, %v5570_v13, 0.0 }
0x1c04   : > { %v5563_v14 = vmul.f32 %v11307_v24, %v4746_v46  ;;  %v5538_v24 = vmul.f32 %v11357_v45, %v4753_v59 }
0x1c05   : > { %v5660_v26 = vadd.f32 %v5659_v12, %v5658_v10 }
0x1c06   : > { %v5686_v1 = vsel %vm2930_vm3, %v5563_v14, 0.0 }
0x1c07   : > { %v11314_v29 = vpop.permute.xlu0 %5319 }
0x1c08   : > { %v5537_v63 = vmul.f32 %v11314_v29, %v4752_v35  ;;  %v5627_v29 = vadd.f32 %v5626_v40, %v5625_v21 }
0x1c0a   : > { %v5630_v49 = vsel %vm2930_vm3, %v5537_v63, 0.0 }
0x1c0b   : > { %v11327_v17 = vpop.permute.xlu0 %5473 }
0x1c0c   : > { %v5565_v53 = vmul.f32 %v11327_v17, %v4748_v7  ;;  %v5629_v7 = vadd.f32 %v5628_v15, %v5627_v29 }
0x1c0e   : > { %v5688_v45 = vsel %vm2930_vm3, %v5565_v53, 0.0  ;;  %v5631_v47 = vadd.f32 %v5630_v49, %v5629_v7 }
0x1c0f   : > { %v11350_v43 = vpop.permute.xlu0 %5330 }
0x1c10   : > { %v5539_v46 = vmul.f32 %v11350_v43, %v4754_v56  ;;  %v5687_v43 = vadd.f32 %v5686_v1, %v5685_v60 }
0x1c12   : > { %v5632_v3 = vsel %vm2930_vm3, %v5539_v46, 0.0  ;;  %v5689_v32 = vadd.f32 %v5688_v45, %v5687_v43 }
0x1c13   : > { %v5485_v57 = vpop.permute.xlu0 %5484  ;;  %v5633_v51 = vadd.f32 %v5632_v3, %v5631_v47 }
0x1c14   : > { %v5567_v5 = vmul.f32 %v5485_v57, %v4750_v22  ;;  %v5601_v57 = vsel %vm2930_vm3, %v5538_v24, 0.0  ;;  %v5661_v22 = vsel %vm2930_vm3, %v5568_v48, 0.0 }
0x1c15   : > { %v5602_v52 = vadd.f32 %v5601_v57, %v5600_v50  ;;  %v5662_v30 = vadd.f32 %v5661_v22, %v5660_v26  ;;  %v6144_v26 = vld [vmem:[#allocation14] sm:$0xff] }
0x1c16   : > { %v5690_v44 = vsel %vm2930_vm3, %v5567_v5, 0.0 }
0x1c17   : > { %v5496_v9 = vpop.permute.xlu0 %5495  ;;  %v5691_v62 = vadd.f32 %v5690_v44, %v5689_v32  ;;  %v5664_v55 = vadd.f32 %v5663_v27, %v5662_v30  ;;  %v6146_v27 = vld [vmem:[#allocation14 + $0x10] sm:$0xff]  ;;  %v7327_v30 = vld [vmem:[%s11773_s0] ss:$0 sm:$0xff]  ;;  %s9500_s0 = scalar_lea.vmem %s6546_s3, 128 }
0x1c18   : > { %v5569_v61 = vmul.f32 %v5496_v9, %v4752_v35  ;;  %p9501_p8 = scmp.ne.s32.totalorder %s6546_s3, %s9500_s0  ;;  %p9508_p10 = scmp.lt.s32.totalorder %s9506_s4, %s9500_s0 }
0x1c1a   : > { %v5692_v20 = vsel %vm2930_vm3, %v5569_v61, 0.0  ;;  %p9502_p11 = pnand %p9501_p8, %p11775_p7  ;;  %p9509_p1 = por %p9508_p10, %p9507_p9 }
0x1c1b   : > { %v5507_v17 = vpop.permute.xlu0 %5506  ;;  %v5693_v35 = vadd.f32 %v5692_v20, %v5691_v62 }
0x1c1c   : > { %v5571_v8 = vmul.f32 %v5507_v17, %v4754_v56  ;;  %p9503_p2 = pneg %p9502_p11 }
0x1c1e   : > { %v5694_v23 = vsel %vm2930_vm3, %v5571_v8, 0.0  ;;  %p9510_p3 = pnand %p9509_p1, %p9503_p2 }
0x1c1f   : > { %v5695_v2 = vadd.f32 %v5694_v23, %v5693_v35  ;;  %v6145_v23 = vld [vmem:[#allocation14 + $0x8] sm:$0xff]  ;;  %v6147_v35 = vld [vmem:[#allocation14 + $0x18] sm:$0xff] }
0x1c4c   : > { %v7748_v36 = vpop.f32.mrb[22].mxu0 }
0x1c4d   : > { %v5806_v9 = vadd.f32 %v7748_v36, %v5633_v51  ;;  %v5800_v59 = vpop.f32.mrb[23].mxu0 }
0x1c4e   : > { %v5801_v39 = vadd.f32 %v5800_v59, %v5602_v52 }
0x1c4f   : > { %v5923_v31 = vadd.f32 %v5806_v9, %v4722_v28  ;;  %v7979_v9 = vpack.c.bf16 %v6147_v35, %v6146_v27  ;;  %v6435_v27 = vld [vmem:[%s11774_s5 + $0x58] sm:$0xff] }
0x1c50   : > { %v5922_v14 = vadd.f32 %v5801_v39, %v4721_v34  ;;  %v7755_v19 = vpop.f32.mrb[42].mxu1 }
0x1c51   : > { %v5919_v38 = vadd.f32 %v7755_v19, %v5695_v2  ;;  %v5913_v37 = vpop.f32.mrb[43].mxu1  ;;  %v5929_v56 = vsel %vm2930_vm3, %v5923_v31, -inf }
0x1c52   : > { %v5914_v40 = vadd.f32 %v5913_v37, %v5664_v55  ;;  %5930 = vmax.xlane.f32.xlu0 %v5929_v56  ;;  %v5926_v54 = vsel %vm2930_vm3, %v5922_v14, -inf }
0x1c53   : > { %v5925_v63 = vadd.f32 %v5919_v38, %v4722_v28  ;;  %5927 = vmax.xlane.f32.xlu1 %v5926_v54  ;;  %v7975_v28 = vpack.c.bf16 %v6145_v23, %v6144_v26  ;;  %v6432_v23 = vld [vmem:[%s11774_s5 + $0x40] sm:$0xff] }
0x1c54   : > { %v5924_v53 = vadd.f32 %v5914_v40, %v4721_v34 }
0x1c55   : > { %v5935_v58 = vsel %vm2930_vm3, %v5925_v63, -inf }
0x1c56   : > { %v5932_v21 = vsel %vm2930_vm3, %v5924_v53, -inf }
0x1c57   : > { %5936 = vmax.xlane.f32.xlu1 %v5935_v58  ;;  %5933 = vmax.xlane.f32.xlu0 %v5932_v21 }
0x1cdf   : > { %v5931_v24 = vpop.xlane.xlu0 %5930 }
0x1ce0   : > { %v5939_v11 = vsub.f32 %v5923_v31, %v5931_v24  ;;  %v5928_v15 = vpop.xlane.xlu1 %5927 }
0x1ce1   : > { %v5938_v1 = vsub.f32 %v5922_v14, %v5928_v15  ;;  %v6315_v15 = vld [vmem:[#allocation34 + $0x8] sm:$0xff] }
0x1ce2   : > { %v5944_v46 = vmul.f32 1.442695, %v5939_v11  ;;  %v6314_v11 = vld [vmem:[#allocation34] sm:$0xff] }
0x1ce3   : > { %v5942_v5 = vmul.f32 1.442695, %v5938_v1  ;;  %v7983_v1 = vpack.c.bf16 %v6315_v15, %v6314_v11 }
0x1ce4   : > { %8454 = vpow2.f32 %v5944_v46  ;;  %v5937_v41 = vpop.xlane.xlu1 %5936  ;;  %v5934_v16 = vpop.xlane.xlu0 %5933  ;;  %v6316_v46 = vld [vmem:[#allocation34 + $0x10] sm:$0xff] }
0x1ce5   : > { %8456 = vpow2.f32 %v5942_v5  ;;  %v5941_v29 = vsub.f32 %v5925_v63, %v5937_v41  ;;  %v5940_v60 = vsub.f32 %v5924_v53, %v5934_v16  ;;  %v6317_v5 = vld [vmem:[#allocation34 + $0x18] sm:$0xff] }
0x1ce6   : > { %v7987_v41 = vpack.c.bf16 %v6317_v5, %v6316_v46 }
0x1ce7   : > { %v5948_v17 = vmul.f32 1.442695, %v5941_v29  ;;  %v5946_v42 = vmul.f32 1.442695, %v5940_v60 }
0x1ce9   : > { %8458 = vpow2.f32 %v5948_v17 }
0x1cea   : > { %8460 = vpow2.f32 %v5946_v42 }
0x1cee   : > { %v8455_v33 = vpop.eup %8454 }
0x1cef   : > { %v8457_v49 = vpop.eup %8456  ;;  %v5953_v45 = vsel %vm2930_vm3, %v8455_v33, 0.0 }
0x1cf0   : > { %5954 = vadd.xlane.f32.xlu1 %v5953_v45  ;;  %v5950_v61 = vsel %vm2930_vm3, %v8457_v49, 0.0  ;;  %v7330_v45 = vld [vmem:[#allocation32] ss:$0 sm:$0xff] }
0x1cf1   : > { %5951 = vadd.xlane.f32.xlu0 %v5950_v61 }
0x1cf3   : > { %v8459_v0 = vpop.eup %8458 }
0x1cf4   : > { %v8461_v48 = vpop.eup %8460  ;;  %v5959_v7 = vsel %vm2930_vm3, %v8459_v0, 0.0 }
0x1cf5   : > { %5960 = vadd.xlane.f32.xlu1 %v5959_v7  ;;  %v5956_v43 = vsel %vm2930_vm3, %v8461_v48, 0.0 }
0x1cf6   : > { %5957 = vadd.xlane.f32.xlu0 %v5956_v43 }
0x1d7d   : > { %v5955_v57 = vpop.xlane.xlu1 %5954 }
0x1d7e   : > { %8462 = vrcp.f32 %v5955_v57  ;;  %v5952_v3 = vpop.xlane.xlu0 %5951 }
0x1d7f   : > { %8464 = vrcp.f32 %v5952_v3 }
0x1d82   : > { %v5961_v44 = vpop.xlane.xlu1 %5960 }
0x1d83   : > { %8466 = vrcp.f32 %v5961_v44  ;;  %v5958_v8 = vpop.xlane.xlu0 %5957 }
0x1d84   : > { %8468 = vrcp.f32 %v5958_v8  ;;  %v6424_v8 = vld [vmem:[%s11774_s5] sm:$0xff] }
0x1d88   : > { %v8463_v12 = vpop.eup %8462 }
0x1d89   : > { %v8465_v13 = vpop.eup %8464  ;;  %v5967_v47 = vmul.f32 %v8463_v12, %v8455_v33  ;;  %v6425_v12 = vld [vmem:[%s11774_s5 + $0x8] sm:$0xff] }
0x1d8a   : > { %v5966_v32 = vmul.f32 %v8465_v13, %v8457_v49  ;;  %v7991_v13 = vpack.c.bf16 %v6425_v12, %v6424_v8 }
0x1d8c   : > { %v7963_v50 = vpack.c.bf16 %v5967_v47, %v5966_v32  ;;  %v6426_v47 = vld [vmem:[%s11774_s5 + $0x10] sm:$0xff]  ;;  %v6427_v32 = vld [vmem:[%s11774_s5 + $0x18] sm:$0xff] }
0x1d8d   : > { %v8467_v10 = vpop.eup %8466 }
0x1d8e   : > { %v8469_v20 = vpop.eup %8468  ;;  %7965 = vmatprep.subr.msk.bf16.mxu0 %vm7964_vm6, %v7963_v50  ;;  %v5969_v22 = vmul.f32 %v8467_v10, %v8459_v0  ;;  %v7331_v0 = vld [vmem:[#allocation31] ss:$0 sm:$0xff] }
0x1d8f   : > { %7968 = vmatpush3.bf16.xpose.msk.msra.mxu0 %vm7964_vm6, %v7963_v50  ;;  %v5968_v62 = vmul.f32 %v8469_v20, %v8461_v48  ;;  %v7995_v50 = vpack.c.bf16 %v6427_v32, %v6426_v47  ;;  %v6428_v10 = vld [vmem:[%s11774_s5 + $0x20] sm:$0xff]  ;;  %v6429_v20 = vld [vmem:[%s11774_s5 + $0x28] sm:$0xff] }
0x1d90   : > { %7976 = vmatprep.subr.bf16.mxu0 %v7975_v28 }
0x1d91   : > { %v7969_v51 = vpack.c.bf16 %v5969_v22, %v5968_v62  ;;  %v7999_v22 = vpack.c.bf16 %v6429_v20, %v6428_v10  ;;  %v6430_v62 = vld [vmem:[%s11774_s5 + $0x30] sm:$0xff] }
0x1d93   : > { %7971 = vmatprep.subr.msk.bf16.mxu1 %vm7964_vm6, %v7969_v51 }
0x1d94   : > { %7974 = vmatpush3.bf16.xpose.msk.msra.mxu1 %vm7964_vm6, %v7969_v51  ;;  %v6431_v51 = vld [vmem:[%s11774_s5 + $0x38] sm:$0xff] }
0x1d95   : > { %7984 = vmatprep.subr.bf16.mxu1 %v7983_v1  ;;  %v8003_v26 = vpack.c.bf16 %v6431_v51, %v6430_v62 }
0x1d96   : > { %7761 = vmatmul.mubr.msk.f32.vlgmr.msra.gmra.mrb[24].mxu0 %vm2930_vm3, %v11267_v18 }
0x1d97   : > { %7978 = vmatpush3.bf16.msra.mxu0 %v7975_v28  ;;  %v6433_v28 = vld [vmem:[%s11774_s5 + $0x48] sm:$0xff] }
0x1d98   : > { %7980 = vmatprep.subr.bf16.mxu0 %v7979_v9 }
0x1d9b   : > { %7768 = vmatmul.mubr.msk.f32.vlgmr.msra.gmra.mrb[44].mxu1 %vm2930_vm3, %v11271_v25  ;;  %7982 = vmatpush3.bf16.msra.mxu0 %v7979_v9  ;;  %v6436_v9 = vld [vmem:[%s11774_s5 + $0x60] sm:$0xff] }
0x1d9c   : > { %7986 = vmatpush3.bf16.msra.mxu1 %v7983_v1  ;;  %7992 = vmatprep.subr.bf16.mxu0 %v7991_v13 }
0x1d9d   : > { %7988 = vmatprep.subr.bf16.mxu1 %v7987_v41 }
0x1da0   : > { %7990 = vmatpush3.bf16.msra.mxu1 %v7987_v41 }
0x1e69   : > { %v7762_v36 = vpop.f32.mrb[24].mxu0 }
0x1e6a   : > { %v6048_v52 = vpop.f32.mrb[25].mxu0 }
0x1e6b   : > { %6155 = vxpose.xlu0.b32.start [1/4] (short) (narrow) %v6048_v52, 16  ;;  %v6434_v52 = vld [vmem:[%s11774_s5 + $0x50] sm:$0xff] }
0x1e6c   : > { %v8011_v35 = vpack.c.bf16 %v6435_v27, %v6434_v52 }
0x1e6e   : > { %v7769_v34 = vpop.f32.mrb[44].mxu1 }
0x1e6f   : > { %v6135_v59 = vpop.f32.mrb[45].mxu1  ;;  %6156 = vxpose.xlu0.b32.cont [2/4] (short) (narrow) %v7762_v36, 16  ;;  %v8007_v36 = vpack.c.bf16 %v6433_v28, %v6432_v23 }
0x1e73   : > { %6157 = vxpose.xlu0.b32.cont [3/4] (short) (narrow) %v6135_v59, 16 }
0x1e77   : > { %6158 = vxpose.xlu0.b32.end [4/4] (short) (narrow) %v7769_v34, 16  ;;  %v6437_v34 = vld [vmem:[%s11774_s5 + $0x68] sm:$0xff] }
0x1e78   : > { %v8015_v59 = vpack.c.bf16 %v6437_v34, %v6436_v9 }
0x1eeb   : > { %v6171_v18 = vpop.trf.xlu0 }
0x1eec   : > { %7778 = vmatprep.mubr.msk.f32.mxu0 %vm2416_vm0, %v6171_v18  ;;  %v6438_v18 = vld [vmem:[%s11774_s5 + $0x70] sm:$0xff] }
0x1eef   : > { %v6172_v25 = vpop.trf.xlu0 }
0x1ef0   : > { %7779 = vmatmul.mubr.msk.f32.vlgmr.msra.gmra.mrb[26].mxu0 %vm2416_vm0, %v6172_v25  ;;  %v6439_v25 = vld [vmem:[%s11774_s5 + $0x78] sm:$0xff] }
0x1ef1   : > { %7994 = vmatpush3.bf16.msra.mxu0 %v7991_v13 }
0x1ef2   : > { %7996 = vmatprep.subr.bf16.mxu0 %v7995_v50 }
0x1ef5   : > { %7998 = vmatpush3.bf16.msra.mxu0 %v7995_v50 }
0x1ef6   : > { %8000 = vmatprep.subr.bf16.mxu0 %v7999_v22 }
0x1ef9   : > { %8002 = vmatpush3.bf16.msra.mxu0 %v7999_v22 }
0x1efa   : > { %8004 = vmatprep.subr.bf16.mxu0 %v8003_v26 }
0x1efd   : > { %8006 = vmatpush3.bf16.msra.mxu0 %v8003_v26 }
0x1efe   : > { %8008 = vmatprep.subr.bf16.mxu0 %v8007_v36 }
0x1f01   : > { %8010 = vmatpush3.bf16.msra.mxu0 %v8007_v36 }
0x1f02   : > { %8012 = vmatprep.subr.bf16.mxu0 %v8011_v35 }
0x1f05   : > { %8014 = vmatpush3.bf16.msra.mxu0 %v8011_v35 }
0x1f06   : > { %8016 = vmatprep.subr.bf16.mxu0 %v8015_v59 }
0x1f09   : > { %8018 = vmatpush3.bf16.msra.mxu0 %v8015_v59 }
0x1fc3   : > { %v7780_v39 = vpop.f32.mrb[26].mxu0 }
0x1fc4   : > { %v6259_v31 = vpop.f32.mrb[27].mxu0  ;;  %v6265_v2 = vadd.f32 %v7780_v39, %v7327_v30  ;;  %v7332_v39 = vld [vmem:[#allocation28] ss:$0 sm:$0xff] }
0x1fc5   : > { %v6260_v14 = vadd.f32 %v7327_v30, %v6259_v31  ;;  %v8019_v30 = vpack.c.bf16 %v6439_v25, %v6438_v18 }
0x1fc6   : > { %v11453_v55 = vadd.f32 %v6265_v2, %v11033_v6 }
0x1fc7   : > { %v11450_v19 = vadd.f32 %v6260_v14, %v11030_v4  ;;  %8020 = vmatprep.subr.bf16.mxu0 %v8019_v30 }
0x1fc8   : > { %v6275_v37 = vsel %vm2416_vm0, %v11453_v55, 0.0  ;;  %8022 = vmatpush3.bf16.msra.mxu0 %v8019_v30 }
0x1fc9   : > { %v6272_v38 = vsel %vm2416_vm0, %v11450_v19, 0.0 }
0x1fca   : > { %6273 = vadd.xlane.f32.xlu1 %v6272_v38 }
0x1fce   : > { %6276 = vadd.xlane.f32.xlu1 %v6275_v37 }
0x2057   : > { %v6274_v56 = vpop.xlane.xlu1 %6273 }
0x2058   : > { %v6278_v40 = vmul.f32 0.03125, %v6274_v56 }
0x205a   : > { %v6280_v54 = vsub.f32 %v11450_v19, %v6278_v40 }
0x205b   : > { %v6277_v63 = vpop.xlane.xlu1 %6276 }
0x205c   : > { %v6279_v53 = vmul.f32 0.03125, %v6277_v63  ;;  %v6282_v58 = vmul.f32 %v6280_v54, %v6280_v54 }
0x205e   : > { %v6281_v4 = vsub.f32 %v11453_v55, %v6279_v53  ;;  %v6284_v6 = vsel %vm2416_vm0, %v6282_v58, 0.0 }
0x205f   : > { %6285 = vadd.xlane.f32.xlu1 %v6284_v6 }
0x2060   : > { %v6283_v21 = vmul.f32 %v6281_v4, %v6281_v4 }
0x2062   : > { %v6287_v24 = vsel %vm2416_vm0, %v6283_v21, 0.0 }
0x2063   : > { %6288 = vadd.xlane.f32.xlu1 %v6287_v24 }
0x20ec   : > { %v6286_v16 = vpop.xlane.xlu1 %6285 }
0x20ed   : > { %v6290_v29 = vmul.f32 0.03125, %v6286_v16 }
0x20ef   : > { %v6292_v60 = vadd.f32 1e-05, %v6290_v29 }
0x20f0   : > { %v6289_v17 = vpop.xlane.xlu1 %6288 }
0x20f1   : > { %8470 = vrsqrt.f32 %v6292_v60  ;;  %v6291_v42 = vmul.f32 0.03125, %v6289_v17 }
0x20f3   : > { %v6293_v33 = vadd.f32 1e-05, %v6291_v42 }
0x20f5   : > { %8472 = vrsqrt.f32 %v6293_v33 }
0x20fb   : > { %v8471_v49 = vpop.eup %8470 }
0x20fc   : > { %v6296_v61 = vmul.f32 %v8471_v49, %v6280_v54 }
0x20fe   : > { %v6304_v48 = vmul.f32 %v7330_v45, %v6296_v61 }
0x20ff   : > { %v8473_v7 = vpop.eup %8472 }
0x2100   : > { %v6297_v43 = vmul.f32 %v8473_v7, %v6281_v4  ;;  %v6312_v57 = vadd.f32 %v7331_v0, %v6304_v48 }
0x2102   : > { %v6305_v3 = vmul.f32 %v7330_v45, %v6297_v43  ;;  %7789 = vmatprep.mubr.msk.f32.mxu1 %vm2416_vm0, %v6312_v57 }
0x2104   : > { %v6313_v44 = vadd.f32 %v7331_v0, %v6305_v3 }
0x2106   : > { %7790 = vmatmul.mubr.msk.f32.vlgmr.msra.gmra.mrb[46].mxu1 %vm2416_vm0, %v6313_v44 }
0x21d9   : > { %v7791_v31 = vpop.f32.mrb[46].mxu1 }
0x21da   : > { %v6403_v2 = vadd.f32 %v7791_v31, %v7332_v39  ;;  %v6397_v14 = vpop.f32.mrb[47].mxu1 }
0x21db   : > { %v6398_v38 = vadd.f32 %v7332_v39, %v6397_v14 }
0x21dc   : > { %v6407_v37 = vmul.f32 %v6403_v2, %v6403_v2 }
0x21dd   : > { %v6406_v56 = vmul.f32 %v6398_v38, %v6398_v38 }
0x21de   : > { %v6409_v40 = vmul.f32 %v6407_v37, %v6403_v2 }
0x21df   : > { %v6408_v54 = vmul.f32 %v6406_v56, %v6398_v38 }
0x21e0   : > { %v6411_v63 = vmul.f32 0.044715, %v6409_v40 }
0x21e1   : > { %v6410_v53 = vmul.f32 0.044715, %v6408_v54 }
0x21e2   : > { %v6413_v58 = vadd.f32 %v6411_v63, %v6403_v2 }
0x21e3   : > { %v6412_v4 = vadd.f32 %v6410_v53, %v6398_v38 }
0x21e4   : > { %v6415_v6 = vmul.f32 0.7978846, %v6413_v58 }
0x21e5   : > { %v6414_v21 = vmul.f32 0.7978846, %v6412_v4 }
0x21e6   : > { %8474 = vtanh.f32 %v6415_v6 }
0x21e7   : > { %8476 = vtanh.f32 %v6414_v21 }
0x21f0   : > { %v8475_v24 = vpop.eup %8474 }
0x21f1   : > { %v8477_v11 = vpop.eup %8476  ;;  %v6419_v15 = vadd.f32 1.0, %v8475_v24 }
0x21f2   : > { %v6418_v1 = vadd.f32 1.0, %v8477_v11 }
0x21f3   : > { %v6421_v46 = vmul.f32 0.5, %v6419_v15 }
0x21f4   : > { %v6420_v5 = vmul.f32 0.5, %v6418_v1 }
0x21f5   : > { %v6423_v16 = vmul.f32 %v6421_v46, %v6403_v2 }
0x21f6   : > { %v6422_v41 = vmul.f32 %v6420_v5, %v6398_v38 }
0x21f8   : > { %7824 = vmatprep.mubr.f32.mxu0 %v6422_v41 }
0x21f9   : > { %7825 = vmatmul.mubr.f32.vlgmr.msra.gmra.mrb[28].mxu0 %v6423_v16 }
0x21fa   : > { %9513 = shalt.err (!%p9510_p3)
}
0x21fb   : > { %s9514_s20 = scalar_lea.hbm %s11483_s9, 128  ;;  %s9518_s1 = scalar_lea.hbm %s10089_s27, 256 }
0x21fc   : > { %p9515_p6 = scmp.ne.s32.totalorder %s11483_s9, %s9514_s20  ;;  %p9519_p4 = scmp.lt.u32.totalorder %s11483_s9, %s10089_s27 }
0x21fd   : > { %p9520_p0 = scmp.lt.u32.totalorder %s9518_s1, %s9514_s20  ;;  %p9522_p8 = scmp.lt.u32.totalorder %s9514_s20, %s11483_s9 }
0x21fe   : > { %p9516_p5 = pnand %p9515_p6, %p11775_p7 }
0x21ff   : > { %p9521_p13 = por %p9520_p0, %p9519_p4 }
0x2200   : > { %p9517_p12 = pneg %p9516_p5 }
0x2201   : > { %p9523_p11 = por %p9522_p8, %p9521_p13 }
0x2203   : > { %p9524_p2 = pnand %p9523_p11, %p9517_p12 }
0x2205   : > { %9527 = shalt.err (!%p9524_p2)
}
0x2206   : > { %s11776_s16 = sld [smem:[#allocation137_spill]]  ;;  %s7206_s4 = sshll.u32 %s10715_s11, 4  ;;  %v7335_v29 = vld [vmem:[#allocation29] ss:$0 sm:$0xff] }
0x2207   : > { %8175 = dma.vmem_to_hbm [thread:$0]  (%p11775_p7), %s6546_s3, 128, %s11483_s9, %s6527_s15  }
0x2208   : > { %s7345_s2 = sshll.u32 %s10117_s28, 8  ;;  %s2326_s6 = scalar_lea.vmem [#allocation63], %s7206_s4 }
0x2209   : > { %s6558_s0 = sshll.u32 %s2326_s6, 4  ;;  %s6532_s28 = scalar_lea.sflag [#allocation64], %s10715_s11  ;;  %s11507_s0 = int_to_ptr.vmem [resolvable:$true] %s6558_s0 }
0x220a   : > { %s9528_s9 = scalar_lea.vmem %s11507_s0, 256  ;;  %s9788_s3 = smov [#allocation63]  }
0x220b   : > { %p9529_p9 = scmp.ne.s32.totalorder %s11507_s0, %s9528_s9  ;;  %s9532_s15 = sshll.u32 %s9788_s3, 4  ;;  %s9533_s15 = int_to_ptr.vmem [resolvable:$false] %s9532_s15 }
0x220c   : > { %s11505_s20 = scalar_lea.hbm %s11776_s16, %s7345_s2  ;;  %s9534_s1 = scalar_lea.vmem %s9533_s15, 512 }
0x220d   : > { %p9530_p10 = pnand %p9529_p9, %p11775_p7  ;;  %p9535_p3 = scmp.lt.s32.totalorder %s11507_s0, %s9533_s15 }
0x220e   : > { %p9536_p6 = scmp.lt.s32.totalorder %s9534_s1, %s9528_s9 }
0x220f   : > { %p9531_p1 = pneg %p9530_p10 }
0x2210   : > { %p9537_p5 = por %p9536_p6, %p9535_p3 }
0x2212   : > { %p9538_p12 = pnand %p9537_p5, %p9531_p1 }
0x22cc   : > { %v7826_v60 = vpop.f32.mrb[28].mxu0 }
0x22cd   : > { %v6519_v17 = vadd.f32 %v7826_v60, %v7335_v29  ;;  %v6513_v42 = vpop.f32.mrb[29].mxu0 }
0x22ce   : > { %v6514_v33 = vadd.f32 %v7335_v29, %v6513_v42 }
0x22cf   : > { %v6523_v49 = vadd.f32 %v6519_v17, %v11453_v55 }
0x22d0   : > { %v6522_v45 = vadd.f32 %v6514_v33, %v11450_v19 }
0x22d1   : > { %6525 = vst.msk [vmem:[%s2326_s6 + $0x8] sm:$0xff] %vm2416_vm0, %v6523_v49 }
0x22d2   : > { %6524 = vst.msk [vmem:[%s2326_s6] sm:$0xff] %vm2416_vm0, %v6522_v45 }
0x22d3   : > { %9541 = shalt.err (!%p9538_p12)
}
0x22d4   : > { %s9542_s4 = scalar_lea.hbm %s11505_s20, 256  ;;  %s9546_s2 = scalar_lea.hbm %s11776_s16, 512 }
0x22d5   : > { %p9543_p4 = scmp.ne.s32.totalorder %s11505_s20, %s9542_s4  ;;  %p9547_p8 = scmp.lt.u32.totalorder %s11505_s20, %s11776_s16 }
0x22d6   : > { %p9548_p11 = scmp.lt.u32.totalorder %s9546_s2, %s9542_s4  ;;  %p9550_p9 = scmp.lt.u32.totalorder %s9542_s4, %s11505_s20 }
0x22d7   : > { %p9544_p0 = pnand %p9543_p4, %p11775_p7 }
0x22d8   : > { %p9549_p2 = por %p9548_p11, %p9547_p8 }
0x22d9   : > { %p9545_p13 = pneg %p9544_p0 }
0x22da   : > { %p9551_p10 = por %p9550_p9, %p9549_p2 }
0x22dc   : > { %p9552_p1 = pnand %p9551_p10, %p9545_p13 }
0x22de   : > { %9555 = shalt.err (!%p9552_p1)
}
0x22df   : > { %s9789_s6 = smov 128   ;;  %s9790_s9 = smov 8  }
0x22e0   : > { %8176 = dma.vmem_to_hbm [thread:$0]  (%p11775_p7), %s11507_s0, 256, %s11505_s20, %s6532_s28, %s9789_s6, %s9789_s6, %s9790_s9  }
0x22e1 PF: > { %s11777_s3 = sld [smem:[#allocation138_spill]]  ;;  %s11778_s15 = sld [smem:[#allocation141_spill]] }
0x22e2   : > { %p11780_p6 = scmp.ge.s32.totalorder %s9678_s26, 2 }
0x22e7   : > { %s6573_s1 = sand.u32 1, %s11777_s3   ;;  %p11779_p3 = scmp.ne.s32.totalorder %s11778_s15, 0 }
0x22e8   : > { %s6574_s4 = scalar_lea.sflag [#allocation4], %s6573_s1 }
0x22e9   : > { %p8187_p5 = pnand %p11780_p6, %p11779_p3 }
0x22eb   : > { %9657 = dma.done.wait (!%p8187_p5), %s6574_s4, 128  }
0x22ec   : > { %9659 = vsyncadd (!%p8187_p5), %s6574_s4, 4294967168  ;;  %s6583_s2 = scalar_lea.sflag [#allocation64], %s6573_s1 }
0x22ed   : > { %9661 = dma.done.wait (!%p8187_p5), %s6583_s2, 256  }
0x22ee   : > { %9663 = vsyncadd (!%p8187_p5), %s6583_s2, 4294967040  ;;  %s11781_s26 = sld [smem:[#allocation139_spill]]  ;;  %s11782_s18 = sld [smem:[#allocation140_spill]] }
0x22ef   : > { %s11783_s0 = smov %s9670_s22  ;;  %s11784_s22 = smov %s9674_s23 }
0x22f4   : > { %p157_p7 = scmp.ge.s32.totalorder %s11781_s26, 4   ;;  %s11785_s23 = smov %s11782_s18 }
0x22f6   :  { %159 = sbr.rel (!%p157_p7) target bundleno = 144 (0x90), region = 540 }
0x22fd   :  { %6588 = vsyncpa [#allocation3], 1 }
0x22fe   :  { %6590 = vsyncpa [#allocation3 + $0x1], 1 }
0x22ff   :  { %6591 = vsyncpa [#allocation6], 1 }
0x2300   :  { %6593 = vsyncpa [#allocation6 + $0x1], 1 }
0x2301   :  { %6594 = vsyncpa [#allocation9], 1 }
0x2302   :  { %6595 = vsyncpa [#allocation12], 1 }
0x2303   :  { %6596 = vsyncpa [#allocation15], 1 }
0x2304   :  { %6597 = vsyncpa [#allocation18], 1 }
0x2305   :  { %6598 = vsyncpa [#allocation21], 1 }
0x2306   :  { %6599 = vsyncpa [#allocation24], 1 }
0x2307   :  { %6600 = vsyncpa [#allocation27], 1 }
0x2308   :  { %6601 = vsyncpa [#allocation30], 1 }
0x2309   :  { %6602 = vsyncpa [#allocation33], 1 }
0x230a   :  { %6603 = vsyncpa [#allocation36], 1 }
0x230b   :  { %6604 = vsyncpa [#allocation39], 1 }
0x230c   :  { %6605 = vsyncpa [#allocation42], 1 }
0x230d   :  { %6606 = vsyncpa [#allocation45], 1 }
0x230e   :  { %6607 = vsyncpa [#allocation48], 1 }
0x230f   :  { %6608 = vsyncpa [#allocation51], 1 }
0x2310   :  { %6609 = vsyncpa [#allocation54], 1 }
0x2311   :  { %6610 = vsyncpa [#allocation57], 1 }
0x2312   :  { %6611 = vsyncpa [#allocation60], 1 }
0x2313   :  { %6612 = vsyncpa [#allocation4], 1 }
0x2314   :  { %6614 = vsyncpa [#allocation4 + $0x1], 1 }
0x2315   :  { %6615 = vsyncpa [#allocation64], 1 }
0x2316   :  { %6617 = vsyncpa [#allocation64 + $0x1], 1 }

</bundles_post_ra>
